<compile_context>
chip_gen: v5e
topology: v5e:2x2
jax: 0.10.0
libtpu: 0.0.40
codegen_flags: <defaults>
</compile_context>

<pallas_src>
import functools
import math

import jax
import jax.numpy as jnp
from jax.experimental import pallas as pl
from jax.experimental.pallas import tpu as pltpu

# ----------------------------- configs -------------------------------------
VOCAB_BERT = 96
VOCAB_GPT2 = 128
SEQ = 8
BATCH = 2
BERT_HIDDEN = 32
BERT_HEADS = 2
BERT_FF = 64
BERT_LAYERS = 2
GPT2_EMBD = 48
GPT2_HEADS = 2
GPT2_FF = 96
GPT2_LAYERS = 2
MAX_POS = 32
NEG_INF = -1e9
BF16 = jnp.bfloat16


# ----------------------------- in-kernel helpers ----------------------------
def _ln(x, g, b, eps):
    """LayerNorm in f32 (g, b are (1, D) and broadcast)."""
    mean = jnp.mean(x, axis=-1, keepdims=True)
    var = jnp.mean((x - mean) ** 2, axis=-1, keepdims=True)
    return (x - mean) * jax.lax.rsqrt(var + eps) * g + b


def _mm(a_f32, w_bf16):
    """bf16-operand matmul with f32 accumulation."""
    return jnp.dot(a_f32.astype(BF16), w_bf16, preferred_element_type=jnp.float32)


def _mha(x, wq, bq, wk, bk, wv, bv, wo, bo, bias, n_heads, scale):
    """All-heads attention with zero in-kernel head reshuffling.

    x: (S, d_model) f32.  Weights come pre-packed per head on leading axes:
      wq/wk/wv: (H, d_model, d_head) bf16, bq/bk/bv: (H, 1, d_head) f32,
      wo:       (H, d_head, d_model) bf16, bo: (1, d_model) f32.
    bias: additive, broadcastable to (H, S, S).
    Every contraction is a head-batched einsum (bf16 operands, f32 accumulate);
    the per-head output projections are summed so contexts are never concatenated.
    """
    S, dm = x.shape
    xb = jnp.broadcast_to(x.astype(BF16), (n_heads, S, dm))
    q = jnp.einsum("hsd,hdf->hsf", xb, wq, preferred_element_type=jnp.float32) + bq
    k = jnp.einsum("hsd,hdf->hsf", xb, wk, preferred_element_type=jnp.float32) + bk
    v = jnp.einsum("hsd,hdf->hsf", xb, wv, preferred_element_type=jnp.float32) + bv
    s = jnp.einsum("hqf,hkf->hqk", q.astype(BF16), k.astype(BF16),
                   preferred_element_type=jnp.float32) * scale + bias
    m = jnp.max(s, axis=-1, keepdims=True)
    p = jnp.exp(s - m)
    p = p * pl.reciprocal(jnp.sum(p, axis=-1, keepdims=True), approx=True)
    ctx = jnp.einsum("hqk,hkf->hqf", p.astype(BF16), v.astype(BF16),
                     preferred_element_type=jnp.float32)
    out = jnp.einsum("hqf,hfd->hqd", ctx.astype(BF16), wo,
                     preferred_element_type=jnp.float32)
    return jnp.sum(out, axis=0) + bo                                   # (S, d_model)


# ----------------------------- fused Pallas kernel ---------------------------
def _bert_gpt2_kernel(
        x0_ref, bmask_ref, base_ref, gmask_ref, lbl_ref,
        beg_ref, beb_ref,
        bwqkv_ref, bbqkv_ref, bwo_ref, bbo_ref,
        bln1g_ref, bln1b_ref, bwi_ref, bbi_ref, bwo2_ref, bbo2_ref,
        bln2g_ref, bln2b_ref,
        pw_ref, pb_ref,
        gln1g_ref, gln1b_ref, gwqkv_ref, gbqkv_ref, gwo_ref, gbo_ref,
        gln2g_ref, gln2b_ref, gwfc_ref, gbfc_ref, gwmp_ref, gbmp_ref,
        glnfg_ref, glnfb_ref, wte_t_ref,
        logits_ref, num_ref, den_ref,
        *, bert_layers, bert_heads, gpt2_layers, gpt2_heads):
    """One grid step = one batch row through BERT -> proj -> GPT-2 -> lm_head -> CE."""
    seq = x0_ref.shape[1]
    d = x0_ref.shape[2]
    e = base_ref.shape[2]
    bscale = 1.0 / math.sqrt(d // bert_heads)
    gscale = 1.0 / math.sqrt(e // gpt2_heads)

    # ------------------ BERT encoder (post-LN, exact erf GELU) ---------------
    x = _ln(x0_ref[0], beg_ref[...], beb_ref[...], 1e-12)               # (S, d)
    bbias = ((1.0 - bmask_ref[0]) * NEG_INF)[None]                      # (1, 1, S)

    for l in range(bert_layers):
        attn = _mha(x,
                    bwqkv_ref[3 * l + 0], bbqkv_ref[3 * l + 0],
                    bwqkv_ref[3 * l + 1], bbqkv_ref[3 * l + 1],
                    bwqkv_ref[3 * l + 2], bbqkv_ref[3 * l + 2],
                    bwo_ref[l], bbo_ref[l], bbias, bert_heads, bscale)
        x = _ln(x + attn, bln1g_ref[l], bln1b_ref[l], 1e-12)            # post-LN
        h = _mm(x, bwi_ref[l]) + bbi_ref[l]
        h = 0.5 * h * (1.0 + jax.lax.erf(h * (1.0 / math.sqrt(2.0))))   # erf GELU
        h = _mm(h, bwo2_ref[l]) + bbo2_ref[l]
        x = _ln(x + h, bln2g_ref[l], bln2b_ref[l], 1e-12)

    proj = _mm(x, pw_ref[...]) + pb_ref[...]                            # (S, e)

    # ------------------ GPT-2 decoder (pre-LN, gelu_new) ---------------------
    hst = base_ref[0] + proj                                            # wte+wpe+proj
    row = jax.lax.broadcasted_iota(jnp.int32, (seq, seq), 0)
    col = jax.lax.broadcasted_iota(jnp.int32, (seq, seq), 1)
    causal = jnp.where(col <= row, 0.0, NEG_INF)                        # (S, S)
    gpad = (1.0 - gmask_ref[0]) * NEG_INF                               # (1, S)
    gbias = (causal + gpad)[None]                                       # (1, S, S)

    for l in range(gpt2_layers):
        a_in = _ln(hst, gln1g_ref[l], gln1b_ref[l], 1e-5)               # pre-LN
        hst = hst + _mha(a_in,
                         gwqkv_ref[3 * l + 0], gbqkv_ref[3 * l + 0],
                         gwqkv_ref[3 * l + 1], gbqkv_ref[3 * l + 1],
                         gwqkv_ref[3 * l + 2], gbqkv_ref[3 * l + 2],
                         gwo_ref[l], gbo_ref[l], gbias, gpt2_heads, gscale)
        m_in = _ln(hst, gln2g_ref[l], gln2b_ref[l], 1e-5)
        m = _mm(m_in, gwfc_ref[l]) + gbfc_ref[l]
        m = 0.5 * m * (1.0 + jnp.tanh(math.sqrt(2.0 / math.pi)          # gelu_new
                                      * (m + 0.044715 * m * m * m)))
        hst = hst + _mm(m, gwmp_ref[l]) + gbmp_ref[l]

    hst = _ln(hst, glnfg_ref[...], glnfb_ref[...], 1e-5)

    # tied lm_head (wte pre-transposed to (e, V)): plain lane-dense (S, 128) matmul
    logits = _mm(hst, wte_t_ref[...])                                   # (S, V) f32
    logits_ref[...] = logits[None].astype(logits_ref.dtype)

    # shifted cross-entropy reduced to per-row (sum, count); final divide outside
    lbl = lbl_ref[0]                                                    # (S, 1) int32
    mx = jnp.max(logits, axis=-1, keepdims=True)
    lse = jnp.log(jnp.sum(jnp.exp(logits - mx), axis=-1, keepdims=True)) + mx
    vcol = jax.lax.broadcasted_iota(jnp.int32, logits.shape, 1)
    picked = jnp.sum(jnp.where(vcol == lbl, logits, 0.0), axis=-1, keepdims=True)
    per_tok = lse - picked                                              # (S, 1)
    valid = (lbl != -100).astype(jnp.float32)
    num_ref[...] = jnp.sum(per_tok * valid, axis=0, keepdims=True)[None]
    den_ref[...] = jnp.sum(valid, axis=0, keepdims=True)[None]


# ----------------------------- wrapper ---------------------------------------
def bert_gpt2_forward(params, input_ids, attention_mask, gpt2_input_ids,
                      gpt2_attention_mask, labels):
    bp, gp = params["bert"], params["gpt2"]
    b, s = input_ids.shape
    d = bp["word_emb"].shape[-1]
    v, e = gp["wte"].shape
    lb, lg = BERT_LAYERS, GPT2_LAYERS
    hb, hg = BERT_HEADS, GPT2_HEADS
    dh_b, dh_g = d // hb, e // hg

    # embedding-table gathers stay in plain JAX
    pos = jnp.arange(s)
    x0 = (bp["word_emb"][input_ids] + bp["pos_emb"][pos][None]
          + bp["tok_type_emb"][0][None, None])                          # (B, S, d)
    base = gp["wte"][gpt2_input_ids] + gp["wpe"][pos][None]             # (B, S, e)
    bmask = attention_mask.astype(jnp.float32).reshape(b, 1, s)
    gmask = gpt2_attention_mask.astype(jnp.float32).reshape(b, 1, s)

    if labels is not None:
        # predict token t+1 at position t; last position ignored (ignore_index=-100)
        lbl_next = jnp.concatenate(
            [labels[:, 1:], jnp.full((b, 1), -100, labels.dtype)], axis=1)
    else:
        lbl_next = jnp.full((b, s), -100, jnp.int32)
    lbl_next = lbl_next.astype(jnp.int32).reshape(b, s, 1)

    # Weight repacks done once by XLA OUTSIDE the kernel (so the kernel has zero
    # lane slices / transposes): QKV split per head on leading axes, attention
    # output-projection rows grouped per head, lm_head pre-transposed.
    def repack_qkv(w, bia, nh, dhd):
        layers, dm, _ = w.shape
        w5 = w.reshape(layers, dm, 3, nh, dhd).transpose(0, 2, 3, 1, 4)
        b5 = bia.reshape(layers, 1, 3, nh, dhd).transpose(0, 2, 3, 1, 4)
        return (w5.reshape(layers * 3, nh, dm, dhd).astype(BF16),
                b5.reshape(layers * 3, nh, 1, dhd))

    def repack_oproj(w, nh, dhd):
        layers, _, dm2 = w.shape
        return w.reshape(layers, nh, dhd, dm2).astype(BF16)

    bwqkv, bbqkv = repack_qkv(bp["wqkv"], bp["bqkv"], hb, dh_b)
    bwo = repack_oproj(bp["wo"], hb, dh_b)
    gwqkv, gbqkv = repack_qkv(gp["w_attn"], gp["b_attn"], hg, dh_g)
    gwo = repack_oproj(gp["w_proj"], hg, dh_g)
    wte_t = gp["wte"].T.astype(BF16)                                     # (e, V)

    operands = [
        x0, bmask, base, gmask, lbl_next,
        bp["emb_ln_g"], bp["emb_ln_b"],
        bwqkv, bbqkv, bwo, bp["bo"],
        bp["ln1_g"], bp["ln1_b"],
        bp["wi"].astype(BF16), bp["bi"],
        bp["wo2"].astype(BF16), bp["bo2"],
        bp["ln2_g"], bp["ln2_b"],
        params["proj_w"].astype(BF16), params["proj_b"],
        gp["ln1_g"], gp["ln1_b"],
        gwqkv, gbqkv, gwo, gp["b_proj"],
        gp["ln2_g"], gp["ln2_b"],
        gp["w_fc"].astype(BF16), gp["b_fc"],
        gp["w_mproj"].astype(BF16), gp["b_mproj"],
        gp["lnf_g"], gp["lnf_b"], wte_t,
    ]

    def per_row(shape):
        nd = len(shape)
        return pl.BlockSpec((1,) + tuple(shape[1:]),
                            lambda i: (i,) + (0,) * (nd - 1))

    def bcast(shape):
        nd = len(shape)
        return pl.BlockSpec(tuple(shape), lambda i: (0,) * nd)

    in_specs = ([per_row(a.shape) for a in operands[:5]]
                + [bcast(a.shape) for a in operands[5:]])

    out_shape = (jax.ShapeDtypeStruct((b, s, v), jnp.float32),
                 jax.ShapeDtypeStruct((b, 1, 1), jnp.float32),
                 jax.ShapeDtypeStruct((b, 1, 1), jnp.float32))
    out_specs = (pl.BlockSpec((1, s, v), lambda i: (i, 0, 0)),
                 pl.BlockSpec((1, 1, 1), lambda i: (i, 0, 0)),
                 pl.BlockSpec((1, 1, 1), lambda i: (i, 0, 0)))

    # advisory cost estimate for the XLA scheduler
    n_tok = b * s
    flops = 0
    flops += lb * (3 * 2 * n_tok * d * d + 2 * 2 * n_tok * s * d
                   + 2 * n_tok * d * d + 2 * 2 * n_tok * d * BERT_FF)
    flops += 2 * n_tok * d * e
    flops += lg * (3 * 2 * n_tok * e * e + 2 * 2 * n_tok * s * e
                   + 2 * n_tok * e * e + 2 * 2 * n_tok * e * GPT2_FF)
    flops += 2 * n_tok * e * v
    transcendentals = (n_tok * s * (lb * hb + lg * hg)
                       + n_tok * (lb * BERT_FF + lg * GPT2_FF) + n_tok * v)
    bytes_accessed = (sum(int(a.size) * a.dtype.itemsize for a in operands)
                      + n_tok * v * 4 + 2 * b * 4)
    cost = pl.CostEstimate(flops=int(flops),
                           transcendentals=int(transcendentals),
                           bytes_accessed=int(bytes_accessed))

    kern = functools.partial(_bert_gpt2_kernel,
                             bert_layers=lb, bert_heads=hb,
                             gpt2_layers=lg, gpt2_heads=hg)

    logits3d, loss_num, loss_den = pl.pallas_call(
        kern,
        out_shape=out_shape,
        grid=(b,),
        in_specs=in_specs,
        out_specs=out_specs,
        compiler_params=pltpu.CompilerParams(
            dimension_semantics=("parallel",),          # v7x: rows split across TCs
            vmem_limit_bytes=32 * 1024 * 1024),
        cost_estimate=cost,
    )(*operands)

    if labels is None:
        return None, logits3d
    loss = jnp.sum(loss_num) / jnp.maximum(jnp.sum(loss_den), 1.0)
    return loss, logits3d


# ----------------------------- parameter init -------------------------------
def init_params(key):
    ks = jax.random.split(key, 64)
    it = iter(range(64))

    def nrm(shape, std=0.02):
        return jax.random.normal(ks[next(it)], shape, jnp.float32) * std

    def zeros(shape):
        return jnp.zeros(shape, jnp.float32)

    def ones(shape):
        return jnp.ones(shape, jnp.float32)

    d, e = BERT_HIDDEN, GPT2_EMBD
    lb, lg = BERT_LAYERS, GPT2_LAYERS
    bert = dict(
        word_emb=nrm((VOCAB_BERT, d)), pos_emb=nrm((MAX_POS, d)), tok_type_emb=nrm((2, d)),
        emb_ln_g=ones((1, d)), emb_ln_b=zeros((1, d)),
        wqkv=nrm((lb, d, 3 * d)), bqkv=zeros((lb, 1, 3 * d)),     # fused Q/K/V (HF layout)
        wo=nrm((lb, d, d)), bo=zeros((lb, 1, d)),
        ln1_g=ones((lb, 1, d)), ln1_b=zeros((lb, 1, d)),
        wi=nrm((lb, d, BERT_FF)), bi=zeros((lb, 1, BERT_FF)),
        wo2=nrm((lb, BERT_FF, d)), bo2=zeros((lb, 1, d)),
        ln2_g=ones((lb, 1, d)), ln2_b=zeros((lb, 1, d)),
    )
    gpt2 = dict(
        wte=nrm((VOCAB_GPT2, e)), wpe=nrm((MAX_POS, e)),
        lnf_g=ones((1, e)), lnf_b=zeros((1, e)),
        ln1_g=ones((lg, 1, e)), ln1_b=zeros((lg, 1, e)),
        w_attn=nrm((lg, e, 3 * e)), b_attn=zeros((lg, 1, 3 * e)),
        w_proj=nrm((lg, e, e)), b_proj=zeros((lg, 1, e)),
        ln2_g=ones((lg, 1, e)), ln2_b=zeros((lg, 1, e)),
        w_fc=nrm((lg, e, GPT2_FF)), b_fc=zeros((lg, 1, GPT2_FF)),
        w_mproj=nrm((lg, GPT2_FF, e)), b_mproj=zeros((lg, 1, e)),
    )
    return dict(bert=bert, gpt2=gpt2, proj_w=nrm((d, e)), proj_b=zeros((1, e)))


# ----------------------------- main ------------------------------------------
if __name__ == "__main__":
    key = jax.random.PRNGKey(0)
    pkey, k1, k2 = jax.random.split(key, 3)
    params = init_params(pkey)

    input_ids = jax.random.randint(k1, (BATCH, SEQ), 0, VOCAB_BERT, dtype=jnp.int32)
    attention_mask = jnp.array([[1] * SEQ, [1] * (SEQ - 2) + [0, 0]], jnp.int32)
    gpt2_input_ids = jax.random.randint(k2, (BATCH, SEQ), 0, VOCAB_GPT2, dtype=jnp.int32)
    gpt2_attention_mask = jnp.ones((BATCH, SEQ), jnp.int32)
    labels = gpt2_input_ids  # standard LM labels (shift happens inside the model)

    fwd = jax.jit(bert_gpt2_forward)
    loss, logits = fwd(params, input_ids, attention_mask,
                       gpt2_input_ids, gpt2_attention_mask, labels)
    jax.block_until_ready((loss, logits))
    assert logits.shape == (BATCH, SEQ, VOCAB_GPT2)
    assert loss.shape == ()
    print("KERNEL_OK")
</pallas_src>

<mosaic_0001>
module attributes {stable_mosaic.version = 11 : i64} {
  func.func @_bert_gpt2_kernel(%arg0: i32, %arg1: memref<1x8x32xf32, #tpu.memory_space<vmem>>, %arg2: memref<1x1x8xf32, #tpu.memory_space<vmem>>, %arg3: memref<1x8x48xf32, #tpu.memory_space<vmem>>, %arg4: memref<1x1x8xf32, #tpu.memory_space<vmem>>, %arg5: memref<1x8x1xi32, #tpu.memory_space<vmem>>, %arg6: memref<1x32xf32, #tpu.memory_space<vmem>>, %arg7: memref<1x32xf32, #tpu.memory_space<vmem>>, %arg8: memref<6x2x32x16xbf16, #tpu.memory_space<vmem>>, %arg9: memref<6x2x1x16xf32, #tpu.memory_space<vmem>>, %arg10: memref<2x2x16x32xbf16, #tpu.memory_space<vmem>>, %arg11: memref<2x1x32xf32, #tpu.memory_space<vmem>>, %arg12: memref<2x1x32xf32, #tpu.memory_space<vmem>>, %arg13: memref<2x1x32xf32, #tpu.memory_space<vmem>>, %arg14: memref<2x32x64xbf16, #tpu.memory_space<vmem>>, %arg15: memref<2x1x64xf32, #tpu.memory_space<vmem>>, %arg16: memref<2x64x32xbf16, #tpu.memory_space<vmem>>, %arg17: memref<2x1x32xf32, #tpu.memory_space<vmem>>, %arg18: memref<2x1x32xf32, #tpu.memory_space<vmem>>, %arg19: memref<2x1x32xf32, #tpu.memory_space<vmem>>, %arg20: memref<32x48xbf16, #tpu.memory_space<vmem>>, %arg21: memref<1x48xf32, #tpu.memory_space<vmem>>, %arg22: memref<2x1x48xf32, #tpu.memory_space<vmem>>, %arg23: memref<2x1x48xf32, #tpu.memory_space<vmem>>, %arg24: memref<6x2x48x24xbf16, #tpu.memory_space<vmem>>, %arg25: memref<6x2x1x24xf32, #tpu.memory_space<vmem>>, %arg26: memref<2x2x24x48xbf16, #tpu.memory_space<vmem>>, %arg27: memref<2x1x48xf32, #tpu.memory_space<vmem>>, %arg28: memref<2x1x48xf32, #tpu.memory_space<vmem>>, %arg29: memref<2x1x48xf32, #tpu.memory_space<vmem>>, %arg30: memref<2x48x96xbf16, #tpu.memory_space<vmem>>, %arg31: memref<2x1x96xf32, #tpu.memory_space<vmem>>, %arg32: memref<2x96x48xbf16, #tpu.memory_space<vmem>>, %arg33: memref<2x1x48xf32, #tpu.memory_space<vmem>>, %arg34: memref<1x48xf32, #tpu.memory_space<vmem>>, %arg35: memref<1x48xf32, #tpu.memory_space<vmem>>, %arg36: memref<48x128xbf16, #tpu.memory_space<vmem>>, %arg37: memref<1x8x128xf32, #tpu.memory_space<vmem>>, %arg38: memref<1x1x1xf32, #tpu.memory_space<vmem>>, %arg39: memref<1x1x1xf32, #tpu.memory_space<vmem>>) attributes {dimension_semantics = [#tpu.dimension_semantics<parallel>], iteration_bounds = array<i64: 2>, scalar_prefetch = 0 : i64, scratch_operands = 0 : i64, tpu.core_type = #tpu.core_type<tc>, window_params = [{transform_indices = @transform_0, window_bounds = array<i64: 1, 8, 32>}, {transform_indices = @transform_1, window_bounds = array<i64: 1, 1, 8>}, {transform_indices = @transform_2, window_bounds = array<i64: 1, 8, 48>}, {transform_indices = @transform_3, window_bounds = array<i64: 1, 1, 8>}, {transform_indices = @transform_4, window_bounds = array<i64: 1, 8, 1>}, {pipeline_mode = #tpu.pipeline_mode<synchronous>, transform_indices = @transform_5, window_bounds = array<i64: 1, 32>}, {pipeline_mode = #tpu.pipeline_mode<synchronous>, transform_indices = @transform_6, window_bounds = array<i64: 1, 32>}, {pipeline_mode = #tpu.pipeline_mode<synchronous>, transform_indices = @transform_7, window_bounds = array<i64: 6, 2, 32, 16>}, {pipeline_mode = #tpu.pipeline_mode<synchronous>, transform_indices = @transform_8, window_bounds = array<i64: 6, 2, 1, 16>}, {pipeline_mode = #tpu.pipeline_mode<synchronous>, transform_indices = @transform_9, window_bounds = array<i64: 2, 2, 16, 32>}, {pipeline_mode = #tpu.pipeline_mode<synchronous>, transform_indices = @transform_10, window_bounds = array<i64: 2, 1, 32>}, {pipeline_mode = #tpu.pipeline_mode<synchronous>, transform_indices = @transform_11, window_bounds = array<i64: 2, 1, 32>}, {pipeline_mode = #tpu.pipeline_mode<synchronous>, transform_indices = @transform_12, window_bounds = array<i64: 2, 1, 32>}, {pipeline_mode = #tpu.pipeline_mode<synchronous>, transform_indices = @transform_13, window_bounds = array<i64: 2, 32, 64>}, {pipeline_mode = #tpu.pipeline_mode<synchronous>, transform_indices = @transform_14, window_bounds = array<i64: 2, 1, 64>}, {pipeline_mode = #tpu.pipeline_mode<synchronous>, transform_indices = @transform_15, window_bounds = array<i64: 2, 64, 32>}, {pipeline_mode = #tpu.pipeline_mode<synchronous>, transform_indices = @transform_16, window_bounds = array<i64: 2, 1, 32>}, {pipeline_mode = #tpu.pipeline_mode<synchronous>, transform_indices = @transform_17, window_bounds = array<i64: 2, 1, 32>}, {pipeline_mode = #tpu.pipeline_mode<synchronous>, transform_indices = @transform_18, window_bounds = array<i64: 2, 1, 32>}, {pipeline_mode = #tpu.pipeline_mode<synchronous>, transform_indices = @transform_19, window_bounds = array<i64: 32, 48>}, {pipeline_mode = #tpu.pipeline_mode<synchronous>, transform_indices = @transform_20, window_bounds = array<i64: 1, 48>}, {pipeline_mode = #tpu.pipeline_mode<synchronous>, transform_indices = @transform_21, window_bounds = array<i64: 2, 1, 48>}, {pipeline_mode = #tpu.pipeline_mode<synchronous>, transform_indices = @transform_22, window_bounds = array<i64: 2, 1, 48>}, {pipeline_mode = #tpu.pipeline_mode<synchronous>, transform_indices = @transform_23, window_bounds = array<i64: 6, 2, 48, 24>}, {pipeline_mode = #tpu.pipeline_mode<synchronous>, transform_indices = @transform_24, window_bounds = array<i64: 6, 2, 1, 24>}, {pipeline_mode = #tpu.pipeline_mode<synchronous>, transform_indices = @transform_25, window_bounds = array<i64: 2, 2, 24, 48>}, {pipeline_mode = #tpu.pipeline_mode<synchronous>, transform_indices = @transform_26, window_bounds = array<i64: 2, 1, 48>}, {pipeline_mode = #tpu.pipeline_mode<synchronous>, transform_indices = @transform_27, window_bounds = array<i64: 2, 1, 48>}, {pipeline_mode = #tpu.pipeline_mode<synchronous>, transform_indices = @transform_28, window_bounds = array<i64: 2, 1, 48>}, {pipeline_mode = #tpu.pipeline_mode<synchronous>, transform_indices = @transform_29, window_bounds = array<i64: 2, 48, 96>}, {pipeline_mode = #tpu.pipeline_mode<synchronous>, transform_indices = @transform_30, window_bounds = array<i64: 2, 1, 96>}, {pipeline_mode = #tpu.pipeline_mode<synchronous>, transform_indices = @transform_31, window_bounds = array<i64: 2, 96, 48>}, {pipeline_mode = #tpu.pipeline_mode<synchronous>, transform_indices = @transform_32, window_bounds = array<i64: 2, 1, 48>}, {pipeline_mode = #tpu.pipeline_mode<synchronous>, transform_indices = @transform_33, window_bounds = array<i64: 1, 48>}, {pipeline_mode = #tpu.pipeline_mode<synchronous>, transform_indices = @transform_34, window_bounds = array<i64: 1, 48>}, {pipeline_mode = #tpu.pipeline_mode<synchronous>, transform_indices = @transform_35, window_bounds = array<i64: 48, 128>}, {transform_indices = @transform_36, window_bounds = array<i64: 1, 8, 128>}, {transform_indices = @transform_37, window_bounds = array<i64: 1, 1, 1>}, {transform_indices = @transform_38, window_bounds = array<i64: 1, 1, 1>}]} {
    %c0 = arith.constant 0 : index
    %c0_0 = arith.constant 0 : index
    %c0_1 = arith.constant 0 : index
    %0 = vector.load %arg1[%c0, %c0_0, %c0_1] : memref<1x8x32xf32, #tpu.memory_space<vmem>>, vector<1x8x32xf32>
    %1 = vector.shape_cast %0 : vector<1x8x32xf32> to vector<8x32xf32>
    %c0_2 = arith.constant 0 : index
    %c0_3 = arith.constant 0 : index
    %2 = vector.load %arg6[%c0_2, %c0_3] : memref<1x32xf32, #tpu.memory_space<vmem>>, vector<1x32xf32>
    %c0_4 = arith.constant 0 : index
    %c0_5 = arith.constant 0 : index
    %3 = vector.load %arg7[%c0_4, %c0_5] : memref<1x32xf32, #tpu.memory_space<vmem>>, vector<1x32xf32>
    %cst = arith.constant dense<0.000000e+00> : vector<8xf32>
    %4 = vector.multi_reduction <add>, %1, %cst [1] : vector<8x32xf32> to vector<8xf32>
    %5 = vector.shape_cast %4 : vector<8xf32> to vector<8x1xf32>
    %cst_6 = arith.constant 3.200000e+01 : f32
    %6 = vector.broadcast %cst_6 : f32 to vector<8x1xf32>
    %7 = arith.divf %5, %6 : vector<8x1xf32>
    %8 = vector.broadcast %7 : vector<8x1xf32> to vector<8x32xf32>
    %9 = arith.subf %1, %8 : vector<8x32xf32>
    %10 = arith.mulf %9, %9 : vector<8x32xf32>
    %cst_7 = arith.constant dense<0.000000e+00> : vector<8xf32>
    %11 = vector.multi_reduction <add>, %10, %cst_7 [1] : vector<8x32xf32> to vector<8xf32>
    %12 = vector.shape_cast %11 : vector<8xf32> to vector<8x1xf32>
    %cst_8 = arith.constant 3.200000e+01 : f32
    %13 = vector.broadcast %cst_8 : f32 to vector<8x1xf32>
    %14 = arith.divf %12, %13 : vector<8x1xf32>
    %15 = vector.broadcast %7 : vector<8x1xf32> to vector<8x32xf32>
    %16 = arith.subf %1, %15 : vector<8x32xf32>
    %cst_9 = arith.constant 9.99999996E-13 : f32
    %17 = vector.broadcast %cst_9 : f32 to vector<8x1xf32>
    %18 = arith.addf %14, %17 : vector<8x1xf32>
    %19 = math.rsqrt %18 : vector<8x1xf32>
    %20 = vector.broadcast %19 : vector<8x1xf32> to vector<8x32xf32>
    %21 = arith.mulf %16, %20 : vector<8x32xf32>
    %22 = vector.broadcast %2 : vector<1x32xf32> to vector<8x32xf32>
    %23 = arith.mulf %21, %22 : vector<8x32xf32>
    %24 = vector.broadcast %3 : vector<1x32xf32> to vector<8x32xf32>
    %25 = arith.addf %23, %24 : vector<8x32xf32>
    %c0_10 = arith.constant 0 : index
    %c0_11 = arith.constant 0 : index
    %c0_12 = arith.constant 0 : index
    %26 = vector.load %arg2[%c0_10, %c0_11, %c0_12] : memref<1x1x8xf32, #tpu.memory_space<vmem>>, vector<1x1x8xf32>
    %27 = vector.shape_cast %26 : vector<1x1x8xf32> to vector<1x8xf32>
    %cst_13 = arith.constant 1.000000e+00 : f32
    %28 = vector.broadcast %cst_13 : f32 to vector<1x8xf32>
    %29 = arith.subf %28, %27 : vector<1x8xf32>
    %cst_14 = arith.constant -1.000000e+09 : f32
    %30 = vector.broadcast %cst_14 : f32 to vector<1x8xf32>
    %31 = arith.mulf %29, %30 : vector<1x8xf32>
    %32 = vector.shape_cast %31 : vector<1x8xf32> to vector<1x1x8xf32>
    %c0_15 = arith.constant 0 : index
    %c0_16 = arith.constant 0 : index
    %c0_17 = arith.constant 0 : index
    %c0_18 = arith.constant 0 : index
    %33 = vector.load %arg8[%c0_15, %c0_16, %c0_17, %c0_18] : memref<6x2x32x16xbf16, #tpu.memory_space<vmem>>, vector<1x2x32x16xbf16>
    %34 = vector.shape_cast %33 : vector<1x2x32x16xbf16> to vector<2x32x16xbf16>
    %c0_19 = arith.constant 0 : index
    %c0_20 = arith.constant 0 : index
    %c0_21 = arith.constant 0 : index
    %c0_22 = arith.constant 0 : index
    %35 = vector.load %arg9[%c0_19, %c0_20, %c0_21, %c0_22] : memref<6x2x1x16xf32, #tpu.memory_space<vmem>>, vector<1x2x1x16xf32>
    %36 = vector.shape_cast %35 : vector<1x2x1x16xf32> to vector<2x1x16xf32>
    %c1 = arith.constant 1 : index
    %c0_23 = arith.constant 0 : index
    %c0_24 = arith.constant 0 : index
    %c0_25 = arith.constant 0 : index
    %37 = vector.load %arg8[%c1, %c0_23, %c0_24, %c0_25] : memref<6x2x32x16xbf16, #tpu.memory_space<vmem>>, vector<1x2x32x16xbf16>
    %38 = vector.shape_cast %37 : vector<1x2x32x16xbf16> to vector<2x32x16xbf16>
    %c1_26 = arith.constant 1 : index
    %c0_27 = arith.constant 0 : index
    %c0_28 = arith.constant 0 : index
    %c0_29 = arith.constant 0 : index
    %39 = vector.load %arg9[%c1_26, %c0_27, %c0_28, %c0_29] : memref<6x2x1x16xf32, #tpu.memory_space<vmem>>, vector<1x2x1x16xf32>
    %40 = vector.shape_cast %39 : vector<1x2x1x16xf32> to vector<2x1x16xf32>
    %c2 = arith.constant 2 : index
    %c0_30 = arith.constant 0 : index
    %c0_31 = arith.constant 0 : index
    %c0_32 = arith.constant 0 : index
    %41 = vector.load %arg8[%c2, %c0_30, %c0_31, %c0_32] : memref<6x2x32x16xbf16, #tpu.memory_space<vmem>>, vector<1x2x32x16xbf16>
    %42 = vector.shape_cast %41 : vector<1x2x32x16xbf16> to vector<2x32x16xbf16>
    %c2_33 = arith.constant 2 : index
    %c0_34 = arith.constant 0 : index
    %c0_35 = arith.constant 0 : index
    %c0_36 = arith.constant 0 : index
    %43 = vector.load %arg9[%c2_33, %c0_34, %c0_35, %c0_36] : memref<6x2x1x16xf32, #tpu.memory_space<vmem>>, vector<1x2x1x16xf32>
    %44 = vector.shape_cast %43 : vector<1x2x1x16xf32> to vector<2x1x16xf32>
    %c0_37 = arith.constant 0 : index
    %c0_38 = arith.constant 0 : index
    %c0_39 = arith.constant 0 : index
    %c0_40 = arith.constant 0 : index
    %45 = vector.load %arg10[%c0_37, %c0_38, %c0_39, %c0_40] : memref<2x2x16x32xbf16, #tpu.memory_space<vmem>>, vector<1x2x16x32xbf16>
    %46 = vector.shape_cast %45 : vector<1x2x16x32xbf16> to vector<2x16x32xbf16>
    %c0_41 = arith.constant 0 : index
    %c0_42 = arith.constant 0 : index
    %c0_43 = arith.constant 0 : index
    %47 = vector.load %arg11[%c0_41, %c0_42, %c0_43] : memref<2x1x32xf32, #tpu.memory_space<vmem>>, vector<1x1x32xf32>
    %48 = vector.shape_cast %47 : vector<1x1x32xf32> to vector<1x32xf32>
    %49 = arith.truncf %25 : vector<8x32xf32> to vector<8x32xbf16>
    %50 = vector.shape_cast %49 : vector<8x32xbf16> to vector<1x8x32xbf16>
    %51 = vector.broadcast %50 : vector<1x8x32xbf16> to vector<2x8x32xbf16>
    "tpu.trace_start"() <{level = 10 : i32, message = "hsd,hdf->hsf"}> : () -> ()
    %cst_44 = arith.constant dense<0.000000e+00> : vector<2x8x16xf32>
    %52 = tpu.matmul %51, %34, %cst_44 {dimension_numbers = #tpu.dot_dimension_numbers<[2], [1], [1], [2], [0, 0, 0, 1, 1, 2], [0], [0]>} : vector<2x8x32xbf16>, vector<2x32x16xbf16>, vector<2x8x16xf32> -> vector<2x8x16xf32>
    "tpu.trace_stop"() : () -> ()
    %53 = vector.broadcast %36 : vector<2x1x16xf32> to vector<2x8x16xf32>
    %54 = arith.addf %52, %53 : vector<2x8x16xf32>
    "tpu.trace_start"() <{level = 10 : i32, message = "hsd,hdf->hsf"}> : () -> ()
    %cst_45 = arith.constant dense<0.000000e+00> : vector<2x8x16xf32>
    %55 = tpu.matmul %51, %38, %cst_45 {dimension_numbers = #tpu.dot_dimension_numbers<[2], [1], [1], [2], [0, 0, 0, 1, 1, 2], [0], [0]>} : vector<2x8x32xbf16>, vector<2x32x16xbf16>, vector<2x8x16xf32> -> vector<2x8x16xf32>
    "tpu.trace_stop"() : () -> ()
    %56 = vector.broadcast %40 : vector<2x1x16xf32> to vector<2x8x16xf32>
    %57 = arith.addf %55, %56 : vector<2x8x16xf32>
    "tpu.trace_start"() <{level = 10 : i32, message = "hsd,hdf->hsf"}> : () -> ()
    %cst_46 = arith.constant dense<0.000000e+00> : vector<2x8x16xf32>
    %58 = tpu.matmul %51, %42, %cst_46 {dimension_numbers = #tpu.dot_dimension_numbers<[2], [1], [1], [2], [0, 0, 0, 1, 1, 2], [0], [0]>} : vector<2x8x32xbf16>, vector<2x32x16xbf16>, vector<2x8x16xf32> -> vector<2x8x16xf32>
    "tpu.trace_stop"() : () -> ()
    %59 = vector.broadcast %44 : vector<2x1x16xf32> to vector<2x8x16xf32>
    %60 = arith.addf %58, %59 : vector<2x8x16xf32>
    %61 = arith.truncf %54 : vector<2x8x16xf32> to vector<2x8x16xbf16>
    %62 = arith.truncf %57 : vector<2x8x16xf32> to vector<2x8x16xbf16>
    "tpu.trace_start"() <{level = 10 : i32, message = "hqf,hkf->hqk"}> : () -> ()
    %cst_47 = arith.constant dense<0.000000e+00> : vector<2x8x8xf32>
    %63 = tpu.matmul %61, %62, %cst_47 {dimension_numbers = #tpu.dot_dimension_numbers<[2], [2], [1], [1], [0, 0, 0, 1, 1, 1], [0], [0]>} : vector<2x8x16xbf16>, vector<2x8x16xbf16>, vector<2x8x8xf32> -> vector<2x8x8xf32>
    "tpu.trace_stop"() : () -> ()
    %cst_48 = arith.constant 2.500000e-01 : f32
    %64 = vector.broadcast %cst_48 : f32 to vector<2x8x8xf32>
    %65 = arith.mulf %63, %64 : vector<2x8x8xf32>
    %66 = vector.broadcast %32 : vector<1x1x8xf32> to vector<2x8x8xf32>
    %67 = arith.addf %65, %66 : vector<2x8x8xf32>
    %cst_49 = arith.constant dense<0xFF800000> : vector<2x8xf32>
    %68 = vector.multi_reduction <maximumf>, %67, %cst_49 [2] : vector<2x8x8xf32> to vector<2x8xf32>
    %69 = vector.shape_cast %68 : vector<2x8xf32> to vector<2x8x1xf32>
    %70 = vector.broadcast %69 : vector<2x8x1xf32> to vector<2x8x8xf32>
    %71 = arith.subf %67, %70 : vector<2x8x8xf32>
    %72 = math.exp %71 : vector<2x8x8xf32>
    %cst_50 = arith.constant dense<0.000000e+00> : vector<2x8xf32>
    %73 = vector.multi_reduction <add>, %72, %cst_50 [2] : vector<2x8x8xf32> to vector<2x8xf32>
    %74 = vector.shape_cast %73 : vector<2x8xf32> to vector<2x8x1xf32>
    %75 = tpu.reciprocal %74 {approx = true} : vector<2x8x1xf32> -> vector<2x8x1xf32>
    %76 = vector.broadcast %75 : vector<2x8x1xf32> to vector<2x8x8xf32>
    %77 = arith.mulf %72, %76 : vector<2x8x8xf32>
    %78 = arith.truncf %77 : vector<2x8x8xf32> to vector<2x8x8xbf16>
    %79 = arith.truncf %60 : vector<2x8x16xf32> to vector<2x8x16xbf16>
    "tpu.trace_start"() <{level = 10 : i32, message = "hqk,hkf->hqf"}> : () -> ()
    %cst_51 = arith.constant dense<0.000000e+00> : vector<2x8x16xf32>
    %80 = tpu.matmul %78, %79, %cst_51 {dimension_numbers = #tpu.dot_dimension_numbers<[2], [1], [1], [2], [0, 0, 0, 1, 1, 2], [0], [0]>} : vector<2x8x8xbf16>, vector<2x8x16xbf16>, vector<2x8x16xf32> -> vector<2x8x16xf32>
    "tpu.trace_stop"() : () -> ()
    %81 = arith.truncf %80 : vector<2x8x16xf32> to vector<2x8x16xbf16>
    "tpu.trace_start"() <{level = 10 : i32, message = "hqf,hfd->hqd"}> : () -> ()
    %cst_52 = arith.constant dense<0.000000e+00> : vector<2x8x32xf32>
    %82 = tpu.matmul %81, %46, %cst_52 {dimension_numbers = #tpu.dot_dimension_numbers<[2], [1], [1], [2], [0, 0, 0, 1, 1, 2], [0], [0]>} : vector<2x8x16xbf16>, vector<2x16x32xbf16>, vector<2x8x32xf32> -> vector<2x8x32xf32>
    "tpu.trace_stop"() : () -> ()
    %cst_53 = arith.constant dense<0.000000e+00> : vector<8x32xf32>
    %83 = vector.multi_reduction <add>, %82, %cst_53 [0] : vector<2x8x32xf32> to vector<8x32xf32>
    %84 = vector.broadcast %48 : vector<1x32xf32> to vector<8x32xf32>
    %85 = arith.addf %83, %84 : vector<8x32xf32>
    %86 = arith.addf %25, %85 : vector<8x32xf32>
    %c0_54 = arith.constant 0 : index
    %c0_55 = arith.constant 0 : index
    %c0_56 = arith.constant 0 : index
    %87 = vector.load %arg12[%c0_54, %c0_55, %c0_56] : memref<2x1x32xf32, #tpu.memory_space<vmem>>, vector<1x1x32xf32>
    %88 = vector.shape_cast %87 : vector<1x1x32xf32> to vector<1x32xf32>
    %c0_57 = arith.constant 0 : index
    %c0_58 = arith.constant 0 : index
    %c0_59 = arith.constant 0 : index
    %89 = vector.load %arg13[%c0_57, %c0_58, %c0_59] : memref<2x1x32xf32, #tpu.memory_space<vmem>>, vector<1x1x32xf32>
    %90 = vector.shape_cast %89 : vector<1x1x32xf32> to vector<1x32xf32>
    %cst_60 = arith.constant dense<0.000000e+00> : vector<8xf32>
    %91 = vector.multi_reduction <add>, %86, %cst_60 [1] : vector<8x32xf32> to vector<8xf32>
    %92 = vector.shape_cast %91 : vector<8xf32> to vector<8x1xf32>
    %cst_61 = arith.constant 3.200000e+01 : f32
    %93 = vector.broadcast %cst_61 : f32 to vector<8x1xf32>
    %94 = arith.divf %92, %93 : vector<8x1xf32>
    %95 = vector.broadcast %94 : vector<8x1xf32> to vector<8x32xf32>
    %96 = arith.subf %86, %95 : vector<8x32xf32>
    %97 = arith.mulf %96, %96 : vector<8x32xf32>
    %cst_62 = arith.constant dense<0.000000e+00> : vector<8xf32>
    %98 = vector.multi_reduction <add>, %97, %cst_62 [1] : vector<8x32xf32> to vector<8xf32>
    %99 = vector.shape_cast %98 : vector<8xf32> to vector<8x1xf32>
    %cst_63 = arith.constant 3.200000e+01 : f32
    %100 = vector.broadcast %cst_63 : f32 to vector<8x1xf32>
    %101 = arith.divf %99, %100 : vector<8x1xf32>
    %102 = vector.broadcast %94 : vector<8x1xf32> to vector<8x32xf32>
    %103 = arith.subf %86, %102 : vector<8x32xf32>
    %cst_64 = arith.constant 9.99999996E-13 : f32
    %104 = vector.broadcast %cst_64 : f32 to vector<8x1xf32>
    %105 = arith.addf %101, %104 : vector<8x1xf32>
    %106 = math.rsqrt %105 : vector<8x1xf32>
    %107 = vector.broadcast %106 : vector<8x1xf32> to vector<8x32xf32>
    %108 = arith.mulf %103, %107 : vector<8x32xf32>
    %109 = vector.broadcast %88 : vector<1x32xf32> to vector<8x32xf32>
    %110 = arith.mulf %108, %109 : vector<8x32xf32>
    %111 = vector.broadcast %90 : vector<1x32xf32> to vector<8x32xf32>
    %112 = arith.addf %110, %111 : vector<8x32xf32>
    %c0_65 = arith.constant 0 : index
    %c0_66 = arith.constant 0 : index
    %c0_67 = arith.constant 0 : index
    %113 = vector.load %arg14[%c0_65, %c0_66, %c0_67] : memref<2x32x64xbf16, #tpu.memory_space<vmem>>, vector<1x32x64xbf16>
    %114 = vector.shape_cast %113 : vector<1x32x64xbf16> to vector<32x64xbf16>
    %115 = arith.truncf %112 : vector<8x32xf32> to vector<8x32xbf16>
    %cst_68 = arith.constant dense<0.000000e+00> : vector<8x64xf32>
    %116 = tpu.matmul %115, %114, %cst_68 {dimension_numbers = #tpu.dot_dimension_numbers<[1], [0], [0], [1], [0, 0, 1, 1], [], []>} : vector<8x32xbf16>, vector<32x64xbf16>, vector<8x64xf32> -> vector<8x64xf32>
    %c0_69 = arith.constant 0 : index
    %c0_70 = arith.constant 0 : index
    %c0_71 = arith.constant 0 : index
    %117 = vector.load %arg15[%c0_69, %c0_70, %c0_71] : memref<2x1x64xf32, #tpu.memory_space<vmem>>, vector<1x1x64xf32>
    %118 = vector.shape_cast %117 : vector<1x1x64xf32> to vector<1x64xf32>
    %119 = vector.broadcast %118 : vector<1x64xf32> to vector<8x64xf32>
    %120 = arith.addf %116, %119 : vector<8x64xf32>
    %cst_72 = arith.constant 5.000000e-01 : f32
    %121 = vector.broadcast %cst_72 : f32 to vector<8x64xf32>
    %122 = arith.mulf %121, %120 : vector<8x64xf32>
    %cst_73 = arith.constant 0.707106769 : f32
    %123 = vector.broadcast %cst_73 : f32 to vector<8x64xf32>
    %124 = arith.mulf %120, %123 : vector<8x64xf32>
    %125 = math.erf %124 : vector<8x64xf32>
    %cst_74 = arith.constant 1.000000e+00 : f32
    %126 = vector.broadcast %cst_74 : f32 to vector<8x64xf32>
    %127 = arith.addf %126, %125 : vector<8x64xf32>
    %128 = arith.mulf %122, %127 : vector<8x64xf32>
    %c0_75 = arith.constant 0 : index
    %c0_76 = arith.constant 0 : index
    %c0_77 = arith.constant 0 : index
    %129 = vector.load %arg16[%c0_75, %c0_76, %c0_77] : memref<2x64x32xbf16, #tpu.memory_space<vmem>>, vector<1x64x32xbf16>
    %130 = vector.shape_cast %129 : vector<1x64x32xbf16> to vector<64x32xbf16>
    %131 = arith.truncf %128 : vector<8x64xf32> to vector<8x64xbf16>
    %cst_78 = arith.constant dense<0.000000e+00> : vector<8x32xf32>
    %132 = tpu.matmul %131, %130, %cst_78 {dimension_numbers = #tpu.dot_dimension_numbers<[1], [0], [0], [1], [0, 0, 1, 1], [], []>} : vector<8x64xbf16>, vector<64x32xbf16>, vector<8x32xf32> -> vector<8x32xf32>
    %c0_79 = arith.constant 0 : index
    %c0_80 = arith.constant 0 : index
    %c0_81 = arith.constant 0 : index
    %133 = vector.load %arg17[%c0_79, %c0_80, %c0_81] : memref<2x1x32xf32, #tpu.memory_space<vmem>>, vector<1x1x32xf32>
    %134 = vector.shape_cast %133 : vector<1x1x32xf32> to vector<1x32xf32>
    %135 = vector.broadcast %134 : vector<1x32xf32> to vector<8x32xf32>
    %136 = arith.addf %132, %135 : vector<8x32xf32>
    %137 = arith.addf %112, %136 : vector<8x32xf32>
    %c0_82 = arith.constant 0 : index
    %c0_83 = arith.constant 0 : index
    %c0_84 = arith.constant 0 : index
    %138 = vector.load %arg18[%c0_82, %c0_83, %c0_84] : memref<2x1x32xf32, #tpu.memory_space<vmem>>, vector<1x1x32xf32>
    %139 = vector.shape_cast %138 : vector<1x1x32xf32> to vector<1x32xf32>
    %c0_85 = arith.constant 0 : index
    %c0_86 = arith.constant 0 : index
    %c0_87 = arith.constant 0 : index
    %140 = vector.load %arg19[%c0_85, %c0_86, %c0_87] : memref<2x1x32xf32, #tpu.memory_space<vmem>>, vector<1x1x32xf32>
    %141 = vector.shape_cast %140 : vector<1x1x32xf32> to vector<1x32xf32>
    %cst_88 = arith.constant dense<0.000000e+00> : vector<8xf32>
    %142 = vector.multi_reduction <add>, %137, %cst_88 [1] : vector<8x32xf32> to vector<8xf32>
    %143 = vector.shape_cast %142 : vector<8xf32> to vector<8x1xf32>
    %cst_89 = arith.constant 3.200000e+01 : f32
    %144 = vector.broadcast %cst_89 : f32 to vector<8x1xf32>
    %145 = arith.divf %143, %144 : vector<8x1xf32>
    %146 = vector.broadcast %145 : vector<8x1xf32> to vector<8x32xf32>
    %147 = arith.subf %137, %146 : vector<8x32xf32>
    %148 = arith.mulf %147, %147 : vector<8x32xf32>
    %cst_90 = arith.constant dense<0.000000e+00> : vector<8xf32>
    %149 = vector.multi_reduction <add>, %148, %cst_90 [1] : vector<8x32xf32> to vector<8xf32>
    %150 = vector.shape_cast %149 : vector<8xf32> to vector<8x1xf32>
    %cst_91 = arith.constant 3.200000e+01 : f32
    %151 = vector.broadcast %cst_91 : f32 to vector<8x1xf32>
    %152 = arith.divf %150, %151 : vector<8x1xf32>
    %153 = vector.broadcast %145 : vector<8x1xf32> to vector<8x32xf32>
    %154 = arith.subf %137, %153 : vector<8x32xf32>
    %cst_92 = arith.constant 9.99999996E-13 : f32
    %155 = vector.broadcast %cst_92 : f32 to vector<8x1xf32>
    %156 = arith.addf %152, %155 : vector<8x1xf32>
    %157 = math.rsqrt %156 : vector<8x1xf32>
    %158 = vector.broadcast %157 : vector<8x1xf32> to vector<8x32xf32>
    %159 = arith.mulf %154, %158 : vector<8x32xf32>
    %160 = vector.broadcast %139 : vector<1x32xf32> to vector<8x32xf32>
    %161 = arith.mulf %159, %160 : vector<8x32xf32>
    %162 = vector.broadcast %141 : vector<1x32xf32> to vector<8x32xf32>
    %163 = arith.addf %161, %162 : vector<8x32xf32>
    %c3 = arith.constant 3 : index
    %c0_93 = arith.constant 0 : index
    %c0_94 = arith.constant 0 : index
    %c0_95 = arith.constant 0 : index
    %164 = vector.load %arg8[%c3, %c0_93, %c0_94, %c0_95] : memref<6x2x32x16xbf16, #tpu.memory_space<vmem>>, vector<1x2x32x16xbf16>
    %165 = vector.shape_cast %164 : vector<1x2x32x16xbf16> to vector<2x32x16xbf16>
    %c3_96 = arith.constant 3 : index
    %c0_97 = arith.constant 0 : index
    %c0_98 = arith.constant 0 : index
    %c0_99 = arith.constant 0 : index
    %166 = vector.load %arg9[%c3_96, %c0_97, %c0_98, %c0_99] : memref<6x2x1x16xf32, #tpu.memory_space<vmem>>, vector<1x2x1x16xf32>
    %167 = vector.shape_cast %166 : vector<1x2x1x16xf32> to vector<2x1x16xf32>
    %c4 = arith.constant 4 : index
    %c0_100 = arith.constant 0 : index
    %c0_101 = arith.constant 0 : index
    %c0_102 = arith.constant 0 : index
    %168 = vector.load %arg8[%c4, %c0_100, %c0_101, %c0_102] : memref<6x2x32x16xbf16, #tpu.memory_space<vmem>>, vector<1x2x32x16xbf16>
    %169 = vector.shape_cast %168 : vector<1x2x32x16xbf16> to vector<2x32x16xbf16>
    %c4_103 = arith.constant 4 : index
    %c0_104 = arith.constant 0 : index
    %c0_105 = arith.constant 0 : index
    %c0_106 = arith.constant 0 : index
    %170 = vector.load %arg9[%c4_103, %c0_104, %c0_105, %c0_106] : memref<6x2x1x16xf32, #tpu.memory_space<vmem>>, vector<1x2x1x16xf32>
    %171 = vector.shape_cast %170 : vector<1x2x1x16xf32> to vector<2x1x16xf32>
    %c5 = arith.constant 5 : index
    %c0_107 = arith.constant 0 : index
    %c0_108 = arith.constant 0 : index
    %c0_109 = arith.constant 0 : index
    %172 = vector.load %arg8[%c5, %c0_107, %c0_108, %c0_109] : memref<6x2x32x16xbf16, #tpu.memory_space<vmem>>, vector<1x2x32x16xbf16>
    %173 = vector.shape_cast %172 : vector<1x2x32x16xbf16> to vector<2x32x16xbf16>
    %c5_110 = arith.constant 5 : index
    %c0_111 = arith.constant 0 : index
    %c0_112 = arith.constant 0 : index
    %c0_113 = arith.constant 0 : index
    %174 = vector.load %arg9[%c5_110, %c0_111, %c0_112, %c0_113] : memref<6x2x1x16xf32, #tpu.memory_space<vmem>>, vector<1x2x1x16xf32>
    %175 = vector.shape_cast %174 : vector<1x2x1x16xf32> to vector<2x1x16xf32>
    %c1_114 = arith.constant 1 : index
    %c0_115 = arith.constant 0 : index
    %c0_116 = arith.constant 0 : index
    %c0_117 = arith.constant 0 : index
    %176 = vector.load %arg10[%c1_114, %c0_115, %c0_116, %c0_117] : memref<2x2x16x32xbf16, #tpu.memory_space<vmem>>, vector<1x2x16x32xbf16>
    %177 = vector.shape_cast %176 : vector<1x2x16x32xbf16> to vector<2x16x32xbf16>
    %c1_118 = arith.constant 1 : index
    %c0_119 = arith.constant 0 : index
    %c0_120 = arith.constant 0 : index
    %178 = vector.load %arg11[%c1_118, %c0_119, %c0_120] : memref<2x1x32xf32, #tpu.memory_space<vmem>>, vector<1x1x32xf32>
    %179 = vector.shape_cast %178 : vector<1x1x32xf32> to vector<1x32xf32>
    %180 = arith.truncf %163 : vector<8x32xf32> to vector<8x32xbf16>
    %181 = vector.shape_cast %180 : vector<8x32xbf16> to vector<1x8x32xbf16>
    %182 = vector.broadcast %181 : vector<1x8x32xbf16> to vector<2x8x32xbf16>
    "tpu.trace_start"() <{level = 10 : i32, message = "hsd,hdf->hsf"}> : () -> ()
    %cst_121 = arith.constant dense<0.000000e+00> : vector<2x8x16xf32>
    %183 = tpu.matmul %182, %165, %cst_121 {dimension_numbers = #tpu.dot_dimension_numbers<[2], [1], [1], [2], [0, 0, 0, 1, 1, 2], [0], [0]>} : vector<2x8x32xbf16>, vector<2x32x16xbf16>, vector<2x8x16xf32> -> vector<2x8x16xf32>
    "tpu.trace_stop"() : () -> ()
    %184 = vector.broadcast %167 : vector<2x1x16xf32> to vector<2x8x16xf32>
    %185 = arith.addf %183, %184 : vector<2x8x16xf32>
    "tpu.trace_start"() <{level = 10 : i32, message = "hsd,hdf->hsf"}> : () -> ()
    %cst_122 = arith.constant dense<0.000000e+00> : vector<2x8x16xf32>
    %186 = tpu.matmul %182, %169, %cst_122 {dimension_numbers = #tpu.dot_dimension_numbers<[2], [1], [1], [2], [0, 0, 0, 1, 1, 2], [0], [0]>} : vector<2x8x32xbf16>, vector<2x32x16xbf16>, vector<2x8x16xf32> -> vector<2x8x16xf32>
    "tpu.trace_stop"() : () -> ()
    %187 = vector.broadcast %171 : vector<2x1x16xf32> to vector<2x8x16xf32>
    %188 = arith.addf %186, %187 : vector<2x8x16xf32>
    "tpu.trace_start"() <{level = 10 : i32, message = "hsd,hdf->hsf"}> : () -> ()
    %cst_123 = arith.constant dense<0.000000e+00> : vector<2x8x16xf32>
    %189 = tpu.matmul %182, %173, %cst_123 {dimension_numbers = #tpu.dot_dimension_numbers<[2], [1], [1], [2], [0, 0, 0, 1, 1, 2], [0], [0]>} : vector<2x8x32xbf16>, vector<2x32x16xbf16>, vector<2x8x16xf32> -> vector<2x8x16xf32>
    "tpu.trace_stop"() : () -> ()
    %190 = vector.broadcast %175 : vector<2x1x16xf32> to vector<2x8x16xf32>
    %191 = arith.addf %189, %190 : vector<2x8x16xf32>
    %192 = arith.truncf %185 : vector<2x8x16xf32> to vector<2x8x16xbf16>
    %193 = arith.truncf %188 : vector<2x8x16xf32> to vector<2x8x16xbf16>
    "tpu.trace_start"() <{level = 10 : i32, message = "hqf,hkf->hqk"}> : () -> ()
    %cst_124 = arith.constant dense<0.000000e+00> : vector<2x8x8xf32>
    %194 = tpu.matmul %192, %193, %cst_124 {dimension_numbers = #tpu.dot_dimension_numbers<[2], [2], [1], [1], [0, 0, 0, 1, 1, 1], [0], [0]>} : vector<2x8x16xbf16>, vector<2x8x16xbf16>, vector<2x8x8xf32> -> vector<2x8x8xf32>
    "tpu.trace_stop"() : () -> ()
    %cst_125 = arith.constant 2.500000e-01 : f32
    %195 = vector.broadcast %cst_125 : f32 to vector<2x8x8xf32>
    %196 = arith.mulf %194, %195 : vector<2x8x8xf32>
    %197 = vector.broadcast %32 : vector<1x1x8xf32> to vector<2x8x8xf32>
    %198 = arith.addf %196, %197 : vector<2x8x8xf32>
    %cst_126 = arith.constant dense<0xFF800000> : vector<2x8xf32>
    %199 = vector.multi_reduction <maximumf>, %198, %cst_126 [2] : vector<2x8x8xf32> to vector<2x8xf32>
    %200 = vector.shape_cast %199 : vector<2x8xf32> to vector<2x8x1xf32>
    %201 = vector.broadcast %200 : vector<2x8x1xf32> to vector<2x8x8xf32>
    %202 = arith.subf %198, %201 : vector<2x8x8xf32>
    %203 = math.exp %202 : vector<2x8x8xf32>
    %cst_127 = arith.constant dense<0.000000e+00> : vector<2x8xf32>
    %204 = vector.multi_reduction <add>, %203, %cst_127 [2] : vector<2x8x8xf32> to vector<2x8xf32>
    %205 = vector.shape_cast %204 : vector<2x8xf32> to vector<2x8x1xf32>
    %206 = tpu.reciprocal %205 {approx = true} : vector<2x8x1xf32> -> vector<2x8x1xf32>
    %207 = vector.broadcast %206 : vector<2x8x1xf32> to vector<2x8x8xf32>
    %208 = arith.mulf %203, %207 : vector<2x8x8xf32>
    %209 = arith.truncf %208 : vector<2x8x8xf32> to vector<2x8x8xbf16>
    %210 = arith.truncf %191 : vector<2x8x16xf32> to vector<2x8x16xbf16>
    "tpu.trace_start"() <{level = 10 : i32, message = "hqk,hkf->hqf"}> : () -> ()
    %cst_128 = arith.constant dense<0.000000e+00> : vector<2x8x16xf32>
    %211 = tpu.matmul %209, %210, %cst_128 {dimension_numbers = #tpu.dot_dimension_numbers<[2], [1], [1], [2], [0, 0, 0, 1, 1, 2], [0], [0]>} : vector<2x8x8xbf16>, vector<2x8x16xbf16>, vector<2x8x16xf32> -> vector<2x8x16xf32>
    "tpu.trace_stop"() : () -> ()
    %212 = arith.truncf %211 : vector<2x8x16xf32> to vector<2x8x16xbf16>
    "tpu.trace_start"() <{level = 10 : i32, message = "hqf,hfd->hqd"}> : () -> ()
    %cst_129 = arith.constant dense<0.000000e+00> : vector<2x8x32xf32>
    %213 = tpu.matmul %212, %177, %cst_129 {dimension_numbers = #tpu.dot_dimension_numbers<[2], [1], [1], [2], [0, 0, 0, 1, 1, 2], [0], [0]>} : vector<2x8x16xbf16>, vector<2x16x32xbf16>, vector<2x8x32xf32> -> vector<2x8x32xf32>
    "tpu.trace_stop"() : () -> ()
    %cst_130 = arith.constant dense<0.000000e+00> : vector<8x32xf32>
    %214 = vector.multi_reduction <add>, %213, %cst_130 [0] : vector<2x8x32xf32> to vector<8x32xf32>
    %215 = vector.broadcast %179 : vector<1x32xf32> to vector<8x32xf32>
    %216 = arith.addf %214, %215 : vector<8x32xf32>
    %217 = arith.addf %163, %216 : vector<8x32xf32>
    %c1_131 = arith.constant 1 : index
    %c0_132 = arith.constant 0 : index
    %c0_133 = arith.constant 0 : index
    %218 = vector.load %arg12[%c1_131, %c0_132, %c0_133] : memref<2x1x32xf32, #tpu.memory_space<vmem>>, vector<1x1x32xf32>
    %219 = vector.shape_cast %218 : vector<1x1x32xf32> to vector<1x32xf32>
    %c1_134 = arith.constant 1 : index
    %c0_135 = arith.constant 0 : index
    %c0_136 = arith.constant 0 : index
    %220 = vector.load %arg13[%c1_134, %c0_135, %c0_136] : memref<2x1x32xf32, #tpu.memory_space<vmem>>, vector<1x1x32xf32>
    %221 = vector.shape_cast %220 : vector<1x1x32xf32> to vector<1x32xf32>
    %cst_137 = arith.constant dense<0.000000e+00> : vector<8xf32>
    %222 = vector.multi_reduction <add>, %217, %cst_137 [1] : vector<8x32xf32> to vector<8xf32>
    %223 = vector.shape_cast %222 : vector<8xf32> to vector<8x1xf32>
    %cst_138 = arith.constant 3.200000e+01 : f32
    %224 = vector.broadcast %cst_138 : f32 to vector<8x1xf32>
    %225 = arith.divf %223, %224 : vector<8x1xf32>
    %226 = vector.broadcast %225 : vector<8x1xf32> to vector<8x32xf32>
    %227 = arith.subf %217, %226 : vector<8x32xf32>
    %228 = arith.mulf %227, %227 : vector<8x32xf32>
    %cst_139 = arith.constant dense<0.000000e+00> : vector<8xf32>
    %229 = vector.multi_reduction <add>, %228, %cst_139 [1] : vector<8x32xf32> to vector<8xf32>
    %230 = vector.shape_cast %229 : vector<8xf32> to vector<8x1xf32>
    %cst_140 = arith.constant 3.200000e+01 : f32
    %231 = vector.broadcast %cst_140 : f32 to vector<8x1xf32>
    %232 = arith.divf %230, %231 : vector<8x1xf32>
    %233 = vector.broadcast %225 : vector<8x1xf32> to vector<8x32xf32>
    %234 = arith.subf %217, %233 : vector<8x32xf32>
    %cst_141 = arith.constant 9.99999996E-13 : f32
    %235 = vector.broadcast %cst_141 : f32 to vector<8x1xf32>
    %236 = arith.addf %232, %235 : vector<8x1xf32>
    %237 = math.rsqrt %236 : vector<8x1xf32>
    %238 = vector.broadcast %237 : vector<8x1xf32> to vector<8x32xf32>
    %239 = arith.mulf %234, %238 : vector<8x32xf32>
    %240 = vector.broadcast %219 : vector<1x32xf32> to vector<8x32xf32>
    %241 = arith.mulf %239, %240 : vector<8x32xf32>
    %242 = vector.broadcast %221 : vector<1x32xf32> to vector<8x32xf32>
    %243 = arith.addf %241, %242 : vector<8x32xf32>
    %c1_142 = arith.constant 1 : index
    %c0_143 = arith.constant 0 : index
    %c0_144 = arith.constant 0 : index
    %244 = vector.load %arg14[%c1_142, %c0_143, %c0_144] : memref<2x32x64xbf16, #tpu.memory_space<vmem>>, vector<1x32x64xbf16>
    %245 = vector.shape_cast %244 : vector<1x32x64xbf16> to vector<32x64xbf16>
    %246 = arith.truncf %243 : vector<8x32xf32> to vector<8x32xbf16>
    %cst_145 = arith.constant dense<0.000000e+00> : vector<8x64xf32>
    %247 = tpu.matmul %246, %245, %cst_145 {dimension_numbers = #tpu.dot_dimension_numbers<[1], [0], [0], [1], [0, 0, 1, 1], [], []>} : vector<8x32xbf16>, vector<32x64xbf16>, vector<8x64xf32> -> vector<8x64xf32>
    %c1_146 = arith.constant 1 : index
    %c0_147 = arith.constant 0 : index
    %c0_148 = arith.constant 0 : index
    %248 = vector.load %arg15[%c1_146, %c0_147, %c0_148] : memref<2x1x64xf32, #tpu.memory_space<vmem>>, vector<1x1x64xf32>
    %249 = vector.shape_cast %248 : vector<1x1x64xf32> to vector<1x64xf32>
    %250 = vector.broadcast %249 : vector<1x64xf32> to vector<8x64xf32>
    %251 = arith.addf %247, %250 : vector<8x64xf32>
    %cst_149 = arith.constant 5.000000e-01 : f32
    %252 = vector.broadcast %cst_149 : f32 to vector<8x64xf32>
    %253 = arith.mulf %252, %251 : vector<8x64xf32>
    %cst_150 = arith.constant 0.707106769 : f32
    %254 = vector.broadcast %cst_150 : f32 to vector<8x64xf32>
    %255 = arith.mulf %251, %254 : vector<8x64xf32>
    %256 = math.erf %255 : vector<8x64xf32>
    %cst_151 = arith.constant 1.000000e+00 : f32
    %257 = vector.broadcast %cst_151 : f32 to vector<8x64xf32>
    %258 = arith.addf %257, %256 : vector<8x64xf32>
    %259 = arith.mulf %253, %258 : vector<8x64xf32>
    %c1_152 = arith.constant 1 : index
    %c0_153 = arith.constant 0 : index
    %c0_154 = arith.constant 0 : index
    %260 = vector.load %arg16[%c1_152, %c0_153, %c0_154] : memref<2x64x32xbf16, #tpu.memory_space<vmem>>, vector<1x64x32xbf16>
    %261 = vector.shape_cast %260 : vector<1x64x32xbf16> to vector<64x32xbf16>
    %262 = arith.truncf %259 : vector<8x64xf32> to vector<8x64xbf16>
    %cst_155 = arith.constant dense<0.000000e+00> : vector<8x32xf32>
    %263 = tpu.matmul %262, %261, %cst_155 {dimension_numbers = #tpu.dot_dimension_numbers<[1], [0], [0], [1], [0, 0, 1, 1], [], []>} : vector<8x64xbf16>, vector<64x32xbf16>, vector<8x32xf32> -> vector<8x32xf32>
    %c1_156 = arith.constant 1 : index
    %c0_157 = arith.constant 0 : index
    %c0_158 = arith.constant 0 : index
    %264 = vector.load %arg17[%c1_156, %c0_157, %c0_158] : memref<2x1x32xf32, #tpu.memory_space<vmem>>, vector<1x1x32xf32>
    %265 = vector.shape_cast %264 : vector<1x1x32xf32> to vector<1x32xf32>
    %266 = vector.broadcast %265 : vector<1x32xf32> to vector<8x32xf32>
    %267 = arith.addf %263, %266 : vector<8x32xf32>
    %268 = arith.addf %243, %267 : vector<8x32xf32>
    %c1_159 = arith.constant 1 : index
    %c0_160 = arith.constant 0 : index
    %c0_161 = arith.constant 0 : index
    %269 = vector.load %arg18[%c1_159, %c0_160, %c0_161] : memref<2x1x32xf32, #tpu.memory_space<vmem>>, vector<1x1x32xf32>
    %270 = vector.shape_cast %269 : vector<1x1x32xf32> to vector<1x32xf32>
    %c1_162 = arith.constant 1 : index
    %c0_163 = arith.constant 0 : index
    %c0_164 = arith.constant 0 : index
    %271 = vector.load %arg19[%c1_162, %c0_163, %c0_164] : memref<2x1x32xf32, #tpu.memory_space<vmem>>, vector<1x1x32xf32>
    %272 = vector.shape_cast %271 : vector<1x1x32xf32> to vector<1x32xf32>
    %cst_165 = arith.constant dense<0.000000e+00> : vector<8xf32>
    %273 = vector.multi_reduction <add>, %268, %cst_165 [1] : vector<8x32xf32> to vector<8xf32>
    %274 = vector.shape_cast %273 : vector<8xf32> to vector<8x1xf32>
    %cst_166 = arith.constant 3.200000e+01 : f32
    %275 = vector.broadcast %cst_166 : f32 to vector<8x1xf32>
    %276 = arith.divf %274, %275 : vector<8x1xf32>
    %277 = vector.broadcast %276 : vector<8x1xf32> to vector<8x32xf32>
    %278 = arith.subf %268, %277 : vector<8x32xf32>
    %279 = arith.mulf %278, %278 : vector<8x32xf32>
    %cst_167 = arith.constant dense<0.000000e+00> : vector<8xf32>
    %280 = vector.multi_reduction <add>, %279, %cst_167 [1] : vector<8x32xf32> to vector<8xf32>
    %281 = vector.shape_cast %280 : vector<8xf32> to vector<8x1xf32>
    %cst_168 = arith.constant 3.200000e+01 : f32
    %282 = vector.broadcast %cst_168 : f32 to vector<8x1xf32>
    %283 = arith.divf %281, %282 : vector<8x1xf32>
    %284 = vector.broadcast %276 : vector<8x1xf32> to vector<8x32xf32>
    %285 = arith.subf %268, %284 : vector<8x32xf32>
    %cst_169 = arith.constant 9.99999996E-13 : f32
    %286 = vector.broadcast %cst_169 : f32 to vector<8x1xf32>
    %287 = arith.addf %283, %286 : vector<8x1xf32>
    %288 = math.rsqrt %287 : vector<8x1xf32>
    %289 = vector.broadcast %288 : vector<8x1xf32> to vector<8x32xf32>
    %290 = arith.mulf %285, %289 : vector<8x32xf32>
    %291 = vector.broadcast %270 : vector<1x32xf32> to vector<8x32xf32>
    %292 = arith.mulf %290, %291 : vector<8x32xf32>
    %293 = vector.broadcast %272 : vector<1x32xf32> to vector<8x32xf32>
    %294 = arith.addf %292, %293 : vector<8x32xf32>
    %c0_170 = arith.constant 0 : index
    %c0_171 = arith.constant 0 : index
    %295 = vector.load %arg20[%c0_170, %c0_171] : memref<32x48xbf16, #tpu.memory_space<vmem>>, vector<32x48xbf16>
    %296 = arith.truncf %294 : vector<8x32xf32> to vector<8x32xbf16>
    %cst_172 = arith.constant dense<0.000000e+00> : vector<8x48xf32>
    %297 = tpu.matmul %296, %295, %cst_172 {dimension_numbers = #tpu.dot_dimension_numbers<[1], [0], [0], [1], [0, 0, 1, 1], [], []>} : vector<8x32xbf16>, vector<32x48xbf16>, vector<8x48xf32> -> vector<8x48xf32>
    %c0_173 = arith.constant 0 : index
    %c0_174 = arith.constant 0 : index
    %298 = vector.load %arg21[%c0_173, %c0_174] : memref<1x48xf32, #tpu.memory_space<vmem>>, vector<1x48xf32>
    %299 = vector.broadcast %298 : vector<1x48xf32> to vector<8x48xf32>
    %300 = arith.addf %297, %299 : vector<8x48xf32>
    %c0_175 = arith.constant 0 : index
    %c0_176 = arith.constant 0 : index
    %c0_177 = arith.constant 0 : index
    %301 = vector.load %arg3[%c0_175, %c0_176, %c0_177] : memref<1x8x48xf32, #tpu.memory_space<vmem>>, vector<1x8x48xf32>
    %302 = vector.shape_cast %301 : vector<1x8x48xf32> to vector<8x48xf32>
    %303 = arith.addf %302, %300 : vector<8x48xf32>
    %304 = tpu.iota {dimensions = array<i32: 0>} : vector<8x8xi32>
    %305 = tpu.iota {dimensions = array<i32: 1>} : vector<8x8xi32>
    %306 = arith.cmpi sle, %305, %304 : vector<8x8xi32>
    %cst_178 = arith.constant 0.000000e+00 : f32
    %cst_179 = arith.constant -1.000000e+09 : f32
    %307 = vector.broadcast %cst_178 : f32 to vector<8x8xf32>
    %308 = vector.broadcast %cst_179 : f32 to vector<8x8xf32>
    %309 = arith.select %306, %307, %308 : vector<8x8xi1>, vector<8x8xf32>
    %c0_180 = arith.constant 0 : index
    %c0_181 = arith.constant 0 : index
    %c0_182 = arith.constant 0 : index
    %310 = vector.load %arg4[%c0_180, %c0_181, %c0_182] : memref<1x1x8xf32, #tpu.memory_space<vmem>>, vector<1x1x8xf32>
    %311 = vector.shape_cast %310 : vector<1x1x8xf32> to vector<1x8xf32>
    %cst_183 = arith.constant 1.000000e+00 : f32
    %312 = vector.broadcast %cst_183 : f32 to vector<1x8xf32>
    %313 = arith.subf %312, %311 : vector<1x8xf32>
    %cst_184 = arith.constant -1.000000e+09 : f32
    %314 = vector.broadcast %cst_184 : f32 to vector<1x8xf32>
    %315 = arith.mulf %313, %314 : vector<1x8xf32>
    %316 = vector.broadcast %315 : vector<1x8xf32> to vector<8x8xf32>
    %317 = arith.addf %309, %316 : vector<8x8xf32>
    %318 = vector.shape_cast %317 : vector<8x8xf32> to vector<1x8x8xf32>
    %c0_185 = arith.constant 0 : index
    %c0_186 = arith.constant 0 : index
    %c0_187 = arith.constant 0 : index
    %319 = vector.load %arg22[%c0_185, %c0_186, %c0_187] : memref<2x1x48xf32, #tpu.memory_space<vmem>>, vector<1x1x48xf32>
    %320 = vector.shape_cast %319 : vector<1x1x48xf32> to vector<1x48xf32>
    %c0_188 = arith.constant 0 : index
    %c0_189 = arith.constant 0 : index
    %c0_190 = arith.constant 0 : index
    %321 = vector.load %arg23[%c0_188, %c0_189, %c0_190] : memref<2x1x48xf32, #tpu.memory_space<vmem>>, vector<1x1x48xf32>
    %322 = vector.shape_cast %321 : vector<1x1x48xf32> to vector<1x48xf32>
    %cst_191 = arith.constant dense<0.000000e+00> : vector<8xf32>
    %323 = vector.multi_reduction <add>, %303, %cst_191 [1] : vector<8x48xf32> to vector<8xf32>
    %324 = vector.shape_cast %323 : vector<8xf32> to vector<8x1xf32>
    %cst_192 = arith.constant 4.800000e+01 : f32
    %325 = vector.broadcast %cst_192 : f32 to vector<8x1xf32>
    %326 = arith.divf %324, %325 : vector<8x1xf32>
    %327 = vector.broadcast %326 : vector<8x1xf32> to vector<8x48xf32>
    %328 = arith.subf %303, %327 : vector<8x48xf32>
    %329 = arith.mulf %328, %328 : vector<8x48xf32>
    %cst_193 = arith.constant dense<0.000000e+00> : vector<8xf32>
    %330 = vector.multi_reduction <add>, %329, %cst_193 [1] : vector<8x48xf32> to vector<8xf32>
    %331 = vector.shape_cast %330 : vector<8xf32> to vector<8x1xf32>
    %cst_194 = arith.constant 4.800000e+01 : f32
    %332 = vector.broadcast %cst_194 : f32 to vector<8x1xf32>
    %333 = arith.divf %331, %332 : vector<8x1xf32>
    %334 = vector.broadcast %326 : vector<8x1xf32> to vector<8x48xf32>
    %335 = arith.subf %303, %334 : vector<8x48xf32>
    %cst_195 = arith.constant 9.99999974E-6 : f32
    %336 = vector.broadcast %cst_195 : f32 to vector<8x1xf32>
    %337 = arith.addf %333, %336 : vector<8x1xf32>
    %338 = math.rsqrt %337 : vector<8x1xf32>
    %339 = vector.broadcast %338 : vector<8x1xf32> to vector<8x48xf32>
    %340 = arith.mulf %335, %339 : vector<8x48xf32>
    %341 = vector.broadcast %320 : vector<1x48xf32> to vector<8x48xf32>
    %342 = arith.mulf %340, %341 : vector<8x48xf32>
    %343 = vector.broadcast %322 : vector<1x48xf32> to vector<8x48xf32>
    %344 = arith.addf %342, %343 : vector<8x48xf32>
    %c0_196 = arith.constant 0 : index
    %c0_197 = arith.constant 0 : index
    %c0_198 = arith.constant 0 : index
    %c0_199 = arith.constant 0 : index
    %345 = vector.load %arg24[%c0_196, %c0_197, %c0_198, %c0_199] : memref<6x2x48x24xbf16, #tpu.memory_space<vmem>>, vector<1x2x48x24xbf16>
    %346 = vector.shape_cast %345 : vector<1x2x48x24xbf16> to vector<2x48x24xbf16>
    %c0_200 = arith.constant 0 : index
    %c0_201 = arith.constant 0 : index
    %c0_202 = arith.constant 0 : index
    %c0_203 = arith.constant 0 : index
    %347 = vector.load %arg25[%c0_200, %c0_201, %c0_202, %c0_203] : memref<6x2x1x24xf32, #tpu.memory_space<vmem>>, vector<1x2x1x24xf32>
    %348 = vector.shape_cast %347 : vector<1x2x1x24xf32> to vector<2x1x24xf32>
    %c1_204 = arith.constant 1 : index
    %c0_205 = arith.constant 0 : index
    %c0_206 = arith.constant 0 : index
    %c0_207 = arith.constant 0 : index
    %349 = vector.load %arg24[%c1_204, %c0_205, %c0_206, %c0_207] : memref<6x2x48x24xbf16, #tpu.memory_space<vmem>>, vector<1x2x48x24xbf16>
    %350 = vector.shape_cast %349 : vector<1x2x48x24xbf16> to vector<2x48x24xbf16>
    %c1_208 = arith.constant 1 : index
    %c0_209 = arith.constant 0 : index
    %c0_210 = arith.constant 0 : index
    %c0_211 = arith.constant 0 : index
    %351 = vector.load %arg25[%c1_208, %c0_209, %c0_210, %c0_211] : memref<6x2x1x24xf32, #tpu.memory_space<vmem>>, vector<1x2x1x24xf32>
    %352 = vector.shape_cast %351 : vector<1x2x1x24xf32> to vector<2x1x24xf32>
    %c2_212 = arith.constant 2 : index
    %c0_213 = arith.constant 0 : index
    %c0_214 = arith.constant 0 : index
    %c0_215 = arith.constant 0 : index
    %353 = vector.load %arg24[%c2_212, %c0_213, %c0_214, %c0_215] : memref<6x2x48x24xbf16, #tpu.memory_space<vmem>>, vector<1x2x48x24xbf16>
    %354 = vector.shape_cast %353 : vector<1x2x48x24xbf16> to vector<2x48x24xbf16>
    %c2_216 = arith.constant 2 : index
    %c0_217 = arith.constant 0 : index
    %c0_218 = arith.constant 0 : index
    %c0_219 = arith.constant 0 : index
    %355 = vector.load %arg25[%c2_216, %c0_217, %c0_218, %c0_219] : memref<6x2x1x24xf32, #tpu.memory_space<vmem>>, vector<1x2x1x24xf32>
    %356 = vector.shape_cast %355 : vector<1x2x1x24xf32> to vector<2x1x24xf32>
    %c0_220 = arith.constant 0 : index
    %c0_221 = arith.constant 0 : index
    %c0_222 = arith.constant 0 : index
    %c0_223 = arith.constant 0 : index
    %357 = vector.load %arg26[%c0_220, %c0_221, %c0_222, %c0_223] : memref<2x2x24x48xbf16, #tpu.memory_space<vmem>>, vector<1x2x24x48xbf16>
    %358 = vector.shape_cast %357 : vector<1x2x24x48xbf16> to vector<2x24x48xbf16>
    %c0_224 = arith.constant 0 : index
    %c0_225 = arith.constant 0 : index
    %c0_226 = arith.constant 0 : index
    %359 = vector.load %arg27[%c0_224, %c0_225, %c0_226] : memref<2x1x48xf32, #tpu.memory_space<vmem>>, vector<1x1x48xf32>
    %360 = vector.shape_cast %359 : vector<1x1x48xf32> to vector<1x48xf32>
    %361 = arith.truncf %344 : vector<8x48xf32> to vector<8x48xbf16>
    %362 = vector.shape_cast %361 : vector<8x48xbf16> to vector<1x8x48xbf16>
    %363 = vector.broadcast %362 : vector<1x8x48xbf16> to vector<2x8x48xbf16>
    "tpu.trace_start"() <{level = 10 : i32, message = "hsd,hdf->hsf"}> : () -> ()
    %cst_227 = arith.constant dense<0.000000e+00> : vector<2x8x24xf32>
    %364 = tpu.matmul %363, %346, %cst_227 {dimension_numbers = #tpu.dot_dimension_numbers<[2], [1], [1], [2], [0, 0, 0, 1, 1, 2], [0], [0]>} : vector<2x8x48xbf16>, vector<2x48x24xbf16>, vector<2x8x24xf32> -> vector<2x8x24xf32>
    "tpu.trace_stop"() : () -> ()
    %365 = vector.broadcast %348 : vector<2x1x24xf32> to vector<2x8x24xf32>
    %366 = arith.addf %364, %365 : vector<2x8x24xf32>
    "tpu.trace_start"() <{level = 10 : i32, message = "hsd,hdf->hsf"}> : () -> ()
    %cst_228 = arith.constant dense<0.000000e+00> : vector<2x8x24xf32>
    %367 = tpu.matmul %363, %350, %cst_228 {dimension_numbers = #tpu.dot_dimension_numbers<[2], [1], [1], [2], [0, 0, 0, 1, 1, 2], [0], [0]>} : vector<2x8x48xbf16>, vector<2x48x24xbf16>, vector<2x8x24xf32> -> vector<2x8x24xf32>
    "tpu.trace_stop"() : () -> ()
    %368 = vector.broadcast %352 : vector<2x1x24xf32> to vector<2x8x24xf32>
    %369 = arith.addf %367, %368 : vector<2x8x24xf32>
    "tpu.trace_start"() <{level = 10 : i32, message = "hsd,hdf->hsf"}> : () -> ()
    %cst_229 = arith.constant dense<0.000000e+00> : vector<2x8x24xf32>
    %370 = tpu.matmul %363, %354, %cst_229 {dimension_numbers = #tpu.dot_dimension_numbers<[2], [1], [1], [2], [0, 0, 0, 1, 1, 2], [0], [0]>} : vector<2x8x48xbf16>, vector<2x48x24xbf16>, vector<2x8x24xf32> -> vector<2x8x24xf32>
    "tpu.trace_stop"() : () -> ()
    %371 = vector.broadcast %356 : vector<2x1x24xf32> to vector<2x8x24xf32>
    %372 = arith.addf %370, %371 : vector<2x8x24xf32>
    %373 = arith.truncf %366 : vector<2x8x24xf32> to vector<2x8x24xbf16>
    %374 = arith.truncf %369 : vector<2x8x24xf32> to vector<2x8x24xbf16>
    "tpu.trace_start"() <{level = 10 : i32, message = "hqf,hkf->hqk"}> : () -> ()
    %cst_230 = arith.constant dense<0.000000e+00> : vector<2x8x8xf32>
    %375 = tpu.matmul %373, %374, %cst_230 {dimension_numbers = #tpu.dot_dimension_numbers<[2], [2], [1], [1], [0, 0, 0, 1, 1, 1], [0], [0]>} : vector<2x8x24xbf16>, vector<2x8x24xbf16>, vector<2x8x8xf32> -> vector<2x8x8xf32>
    "tpu.trace_stop"() : () -> ()
    %cst_231 = arith.constant 0.204124153 : f32
    %376 = vector.broadcast %cst_231 : f32 to vector<2x8x8xf32>
    %377 = arith.mulf %375, %376 : vector<2x8x8xf32>
    %378 = vector.broadcast %318 : vector<1x8x8xf32> to vector<2x8x8xf32>
    %379 = arith.addf %377, %378 : vector<2x8x8xf32>
    %cst_232 = arith.constant dense<0xFF800000> : vector<2x8xf32>
    %380 = vector.multi_reduction <maximumf>, %379, %cst_232 [2] : vector<2x8x8xf32> to vector<2x8xf32>
    %381 = vector.shape_cast %380 : vector<2x8xf32> to vector<2x8x1xf32>
    %382 = vector.broadcast %381 : vector<2x8x1xf32> to vector<2x8x8xf32>
    %383 = arith.subf %379, %382 : vector<2x8x8xf32>
    %384 = math.exp %383 : vector<2x8x8xf32>
    %cst_233 = arith.constant dense<0.000000e+00> : vector<2x8xf32>
    %385 = vector.multi_reduction <add>, %384, %cst_233 [2] : vector<2x8x8xf32> to vector<2x8xf32>
    %386 = vector.shape_cast %385 : vector<2x8xf32> to vector<2x8x1xf32>
    %387 = tpu.reciprocal %386 {approx = true} : vector<2x8x1xf32> -> vector<2x8x1xf32>
    %388 = vector.broadcast %387 : vector<2x8x1xf32> to vector<2x8x8xf32>
    %389 = arith.mulf %384, %388 : vector<2x8x8xf32>
    %390 = arith.truncf %389 : vector<2x8x8xf32> to vector<2x8x8xbf16>
    %391 = arith.truncf %372 : vector<2x8x24xf32> to vector<2x8x24xbf16>
    "tpu.trace_start"() <{level = 10 : i32, message = "hqk,hkf->hqf"}> : () -> ()
    %cst_234 = arith.constant dense<0.000000e+00> : vector<2x8x24xf32>
    %392 = tpu.matmul %390, %391, %cst_234 {dimension_numbers = #tpu.dot_dimension_numbers<[2], [1], [1], [2], [0, 0, 0, 1, 1, 2], [0], [0]>} : vector<2x8x8xbf16>, vector<2x8x24xbf16>, vector<2x8x24xf32> -> vector<2x8x24xf32>
    "tpu.trace_stop"() : () -> ()
    %393 = arith.truncf %392 : vector<2x8x24xf32> to vector<2x8x24xbf16>
    "tpu.trace_start"() <{level = 10 : i32, message = "hqf,hfd->hqd"}> : () -> ()
    %cst_235 = arith.constant dense<0.000000e+00> : vector<2x8x48xf32>
    %394 = tpu.matmul %393, %358, %cst_235 {dimension_numbers = #tpu.dot_dimension_numbers<[2], [1], [1], [2], [0, 0, 0, 1, 1, 2], [0], [0]>} : vector<2x8x24xbf16>, vector<2x24x48xbf16>, vector<2x8x48xf32> -> vector<2x8x48xf32>
    "tpu.trace_stop"() : () -> ()
    %cst_236 = arith.constant dense<0.000000e+00> : vector<8x48xf32>
    %395 = vector.multi_reduction <add>, %394, %cst_236 [0] : vector<2x8x48xf32> to vector<8x48xf32>
    %396 = vector.broadcast %360 : vector<1x48xf32> to vector<8x48xf32>
    %397 = arith.addf %395, %396 : vector<8x48xf32>
    %398 = arith.addf %303, %397 : vector<8x48xf32>
    %c0_237 = arith.constant 0 : index
    %c0_238 = arith.constant 0 : index
    %c0_239 = arith.constant 0 : index
    %399 = vector.load %arg28[%c0_237, %c0_238, %c0_239] : memref<2x1x48xf32, #tpu.memory_space<vmem>>, vector<1x1x48xf32>
    %400 = vector.shape_cast %399 : vector<1x1x48xf32> to vector<1x48xf32>
    %c0_240 = arith.constant 0 : index
    %c0_241 = arith.constant 0 : index
    %c0_242 = arith.constant 0 : index
    %401 = vector.load %arg29[%c0_240, %c0_241, %c0_242] : memref<2x1x48xf32, #tpu.memory_space<vmem>>, vector<1x1x48xf32>
    %402 = vector.shape_cast %401 : vector<1x1x48xf32> to vector<1x48xf32>
    %cst_243 = arith.constant dense<0.000000e+00> : vector<8xf32>
    %403 = vector.multi_reduction <add>, %398, %cst_243 [1] : vector<8x48xf32> to vector<8xf32>
    %404 = vector.shape_cast %403 : vector<8xf32> to vector<8x1xf32>
    %cst_244 = arith.constant 4.800000e+01 : f32
    %405 = vector.broadcast %cst_244 : f32 to vector<8x1xf32>
    %406 = arith.divf %404, %405 : vector<8x1xf32>
    %407 = vector.broadcast %406 : vector<8x1xf32> to vector<8x48xf32>
    %408 = arith.subf %398, %407 : vector<8x48xf32>
    %409 = arith.mulf %408, %408 : vector<8x48xf32>
    %cst_245 = arith.constant dense<0.000000e+00> : vector<8xf32>
    %410 = vector.multi_reduction <add>, %409, %cst_245 [1] : vector<8x48xf32> to vector<8xf32>
    %411 = vector.shape_cast %410 : vector<8xf32> to vector<8x1xf32>
    %cst_246 = arith.constant 4.800000e+01 : f32
    %412 = vector.broadcast %cst_246 : f32 to vector<8x1xf32>
    %413 = arith.divf %411, %412 : vector<8x1xf32>
    %414 = vector.broadcast %406 : vector<8x1xf32> to vector<8x48xf32>
    %415 = arith.subf %398, %414 : vector<8x48xf32>
    %cst_247 = arith.constant 9.99999974E-6 : f32
    %416 = vector.broadcast %cst_247 : f32 to vector<8x1xf32>
    %417 = arith.addf %413, %416 : vector<8x1xf32>
    %418 = math.rsqrt %417 : vector<8x1xf32>
    %419 = vector.broadcast %418 : vector<8x1xf32> to vector<8x48xf32>
    %420 = arith.mulf %415, %419 : vector<8x48xf32>
    %421 = vector.broadcast %400 : vector<1x48xf32> to vector<8x48xf32>
    %422 = arith.mulf %420, %421 : vector<8x48xf32>
    %423 = vector.broadcast %402 : vector<1x48xf32> to vector<8x48xf32>
    %424 = arith.addf %422, %423 : vector<8x48xf32>
    %c0_248 = arith.constant 0 : index
    %c0_249 = arith.constant 0 : index
    %c0_250 = arith.constant 0 : index
    %425 = vector.load %arg30[%c0_248, %c0_249, %c0_250] : memref<2x48x96xbf16, #tpu.memory_space<vmem>>, vector<1x48x96xbf16>
    %426 = vector.shape_cast %425 : vector<1x48x96xbf16> to vector<48x96xbf16>
    %427 = arith.truncf %424 : vector<8x48xf32> to vector<8x48xbf16>
    %cst_251 = arith.constant dense<0.000000e+00> : vector<8x96xf32>
    %428 = tpu.matmul %427, %426, %cst_251 {dimension_numbers = #tpu.dot_dimension_numbers<[1], [0], [0], [1], [0, 0, 1, 1], [], []>} : vector<8x48xbf16>, vector<48x96xbf16>, vector<8x96xf32> -> vector<8x96xf32>
    %c0_252 = arith.constant 0 : index
    %c0_253 = arith.constant 0 : index
    %c0_254 = arith.constant 0 : index
    %429 = vector.load %arg31[%c0_252, %c0_253, %c0_254] : memref<2x1x96xf32, #tpu.memory_space<vmem>>, vector<1x1x96xf32>
    %430 = vector.shape_cast %429 : vector<1x1x96xf32> to vector<1x96xf32>
    %431 = vector.broadcast %430 : vector<1x96xf32> to vector<8x96xf32>
    %432 = arith.addf %428, %431 : vector<8x96xf32>
    %cst_255 = arith.constant 5.000000e-01 : f32
    %433 = vector.broadcast %cst_255 : f32 to vector<8x96xf32>
    %434 = arith.mulf %433, %432 : vector<8x96xf32>
    %cst_256 = arith.constant 4.471500e-02 : f32
    %435 = vector.broadcast %cst_256 : f32 to vector<8x96xf32>
    %436 = arith.mulf %435, %432 : vector<8x96xf32>
    %437 = arith.mulf %436, %432 : vector<8x96xf32>
    %438 = arith.mulf %437, %432 : vector<8x96xf32>
    %439 = arith.addf %432, %438 : vector<8x96xf32>
    %cst_257 = arith.constant 0.797884583 : f32
    %440 = vector.broadcast %cst_257 : f32 to vector<8x96xf32>
    %441 = arith.mulf %440, %439 : vector<8x96xf32>
    %442 = math.tanh %441 : vector<8x96xf32>
    %cst_258 = arith.constant 1.000000e+00 : f32
    %443 = vector.broadcast %cst_258 : f32 to vector<8x96xf32>
    %444 = arith.addf %443, %442 : vector<8x96xf32>
    %445 = arith.mulf %434, %444 : vector<8x96xf32>
    %c0_259 = arith.constant 0 : index
    %c0_260 = arith.constant 0 : index
    %c0_261 = arith.constant 0 : index
    %446 = vector.load %arg32[%c0_259, %c0_260, %c0_261] : memref<2x96x48xbf16, #tpu.memory_space<vmem>>, vector<1x96x48xbf16>
    %447 = vector.shape_cast %446 : vector<1x96x48xbf16> to vector<96x48xbf16>
    %448 = arith.truncf %445 : vector<8x96xf32> to vector<8x96xbf16>
    %cst_262 = arith.constant dense<0.000000e+00> : vector<8x48xf32>
    %449 = tpu.matmul %448, %447, %cst_262 {dimension_numbers = #tpu.dot_dimension_numbers<[1], [0], [0], [1], [0, 0, 1, 1], [], []>} : vector<8x96xbf16>, vector<96x48xbf16>, vector<8x48xf32> -> vector<8x48xf32>
    %450 = arith.addf %398, %449 : vector<8x48xf32>
    %c0_263 = arith.constant 0 : index
    %c0_264 = arith.constant 0 : index
    %c0_265 = arith.constant 0 : index
    %451 = vector.load %arg33[%c0_263, %c0_264, %c0_265] : memref<2x1x48xf32, #tpu.memory_space<vmem>>, vector<1x1x48xf32>
    %452 = vector.shape_cast %451 : vector<1x1x48xf32> to vector<1x48xf32>
    %453 = vector.broadcast %452 : vector<1x48xf32> to vector<8x48xf32>
    %454 = arith.addf %450, %453 : vector<8x48xf32>
    %c1_266 = arith.constant 1 : index
    %c0_267 = arith.constant 0 : index
    %c0_268 = arith.constant 0 : index
    %455 = vector.load %arg22[%c1_266, %c0_267, %c0_268] : memref<2x1x48xf32, #tpu.memory_space<vmem>>, vector<1x1x48xf32>
    %456 = vector.shape_cast %455 : vector<1x1x48xf32> to vector<1x48xf32>
    %c1_269 = arith.constant 1 : index
    %c0_270 = arith.constant 0 : index
    %c0_271 = arith.constant 0 : index
    %457 = vector.load %arg23[%c1_269, %c0_270, %c0_271] : memref<2x1x48xf32, #tpu.memory_space<vmem>>, vector<1x1x48xf32>
    %458 = vector.shape_cast %457 : vector<1x1x48xf32> to vector<1x48xf32>
    %cst_272 = arith.constant dense<0.000000e+00> : vector<8xf32>
    %459 = vector.multi_reduction <add>, %454, %cst_272 [1] : vector<8x48xf32> to vector<8xf32>
    %460 = vector.shape_cast %459 : vector<8xf32> to vector<8x1xf32>
    %cst_273 = arith.constant 4.800000e+01 : f32
    %461 = vector.broadcast %cst_273 : f32 to vector<8x1xf32>
    %462 = arith.divf %460, %461 : vector<8x1xf32>
    %463 = vector.broadcast %462 : vector<8x1xf32> to vector<8x48xf32>
    %464 = arith.subf %454, %463 : vector<8x48xf32>
    %465 = arith.mulf %464, %464 : vector<8x48xf32>
    %cst_274 = arith.constant dense<0.000000e+00> : vector<8xf32>
    %466 = vector.multi_reduction <add>, %465, %cst_274 [1] : vector<8x48xf32> to vector<8xf32>
    %467 = vector.shape_cast %466 : vector<8xf32> to vector<8x1xf32>
    %cst_275 = arith.constant 4.800000e+01 : f32
    %468 = vector.broadcast %cst_275 : f32 to vector<8x1xf32>
    %469 = arith.divf %467, %468 : vector<8x1xf32>
    %470 = vector.broadcast %462 : vector<8x1xf32> to vector<8x48xf32>
    %471 = arith.subf %454, %470 : vector<8x48xf32>
    %cst_276 = arith.constant 9.99999974E-6 : f32
    %472 = vector.broadcast %cst_276 : f32 to vector<8x1xf32>
    %473 = arith.addf %469, %472 : vector<8x1xf32>
    %474 = math.rsqrt %473 : vector<8x1xf32>
    %475 = vector.broadcast %474 : vector<8x1xf32> to vector<8x48xf32>
    %476 = arith.mulf %471, %475 : vector<8x48xf32>
    %477 = vector.broadcast %456 : vector<1x48xf32> to vector<8x48xf32>
    %478 = arith.mulf %476, %477 : vector<8x48xf32>
    %479 = vector.broadcast %458 : vector<1x48xf32> to vector<8x48xf32>
    %480 = arith.addf %478, %479 : vector<8x48xf32>
    %c3_277 = arith.constant 3 : index
    %c0_278 = arith.constant 0 : index
    %c0_279 = arith.constant 0 : index
    %c0_280 = arith.constant 0 : index
    %481 = vector.load %arg24[%c3_277, %c0_278, %c0_279, %c0_280] : memref<6x2x48x24xbf16, #tpu.memory_space<vmem>>, vector<1x2x48x24xbf16>
    %482 = vector.shape_cast %481 : vector<1x2x48x24xbf16> to vector<2x48x24xbf16>
    %c3_281 = arith.constant 3 : index
    %c0_282 = arith.constant 0 : index
    %c0_283 = arith.constant 0 : index
    %c0_284 = arith.constant 0 : index
    %483 = vector.load %arg25[%c3_281, %c0_282, %c0_283, %c0_284] : memref<6x2x1x24xf32, #tpu.memory_space<vmem>>, vector<1x2x1x24xf32>
    %484 = vector.shape_cast %483 : vector<1x2x1x24xf32> to vector<2x1x24xf32>
    %c4_285 = arith.constant 4 : index
    %c0_286 = arith.constant 0 : index
    %c0_287 = arith.constant 0 : index
    %c0_288 = arith.constant 0 : index
    %485 = vector.load %arg24[%c4_285, %c0_286, %c0_287, %c0_288] : memref<6x2x48x24xbf16, #tpu.memory_space<vmem>>, vector<1x2x48x24xbf16>
    %486 = vector.shape_cast %485 : vector<1x2x48x24xbf16> to vector<2x48x24xbf16>
    %c4_289 = arith.constant 4 : index
    %c0_290 = arith.constant 0 : index
    %c0_291 = arith.constant 0 : index
    %c0_292 = arith.constant 0 : index
    %487 = vector.load %arg25[%c4_289, %c0_290, %c0_291, %c0_292] : memref<6x2x1x24xf32, #tpu.memory_space<vmem>>, vector<1x2x1x24xf32>
    %488 = vector.shape_cast %487 : vector<1x2x1x24xf32> to vector<2x1x24xf32>
    %c5_293 = arith.constant 5 : index
    %c0_294 = arith.constant 0 : index
    %c0_295 = arith.constant 0 : index
    %c0_296 = arith.constant 0 : index
    %489 = vector.load %arg24[%c5_293, %c0_294, %c0_295, %c0_296] : memref<6x2x48x24xbf16, #tpu.memory_space<vmem>>, vector<1x2x48x24xbf16>
    %490 = vector.shape_cast %489 : vector<1x2x48x24xbf16> to vector<2x48x24xbf16>
    %c5_297 = arith.constant 5 : index
    %c0_298 = arith.constant 0 : index
    %c0_299 = arith.constant 0 : index
    %c0_300 = arith.constant 0 : index
    %491 = vector.load %arg25[%c5_297, %c0_298, %c0_299, %c0_300] : memref<6x2x1x24xf32, #tpu.memory_space<vmem>>, vector<1x2x1x24xf32>
    %492 = vector.shape_cast %491 : vector<1x2x1x24xf32> to vector<2x1x24xf32>
    %c1_301 = arith.constant 1 : index
    %c0_302 = arith.constant 0 : index
    %c0_303 = arith.constant 0 : index
    %c0_304 = arith.constant 0 : index
    %493 = vector.load %arg26[%c1_301, %c0_302, %c0_303, %c0_304] : memref<2x2x24x48xbf16, #tpu.memory_space<vmem>>, vector<1x2x24x48xbf16>
    %494 = vector.shape_cast %493 : vector<1x2x24x48xbf16> to vector<2x24x48xbf16>
    %c1_305 = arith.constant 1 : index
    %c0_306 = arith.constant 0 : index
    %c0_307 = arith.constant 0 : index
    %495 = vector.load %arg27[%c1_305, %c0_306, %c0_307] : memref<2x1x48xf32, #tpu.memory_space<vmem>>, vector<1x1x48xf32>
    %496 = vector.shape_cast %495 : vector<1x1x48xf32> to vector<1x48xf32>
    %497 = arith.truncf %480 : vector<8x48xf32> to vector<8x48xbf16>
    %498 = vector.shape_cast %497 : vector<8x48xbf16> to vector<1x8x48xbf16>
    %499 = vector.broadcast %498 : vector<1x8x48xbf16> to vector<2x8x48xbf16>
    "tpu.trace_start"() <{level = 10 : i32, message = "hsd,hdf->hsf"}> : () -> ()
    %cst_308 = arith.constant dense<0.000000e+00> : vector<2x8x24xf32>
    %500 = tpu.matmul %499, %482, %cst_308 {dimension_numbers = #tpu.dot_dimension_numbers<[2], [1], [1], [2], [0, 0, 0, 1, 1, 2], [0], [0]>} : vector<2x8x48xbf16>, vector<2x48x24xbf16>, vector<2x8x24xf32> -> vector<2x8x24xf32>
    "tpu.trace_stop"() : () -> ()
    %501 = vector.broadcast %484 : vector<2x1x24xf32> to vector<2x8x24xf32>
    %502 = arith.addf %500, %501 : vector<2x8x24xf32>
    "tpu.trace_start"() <{level = 10 : i32, message = "hsd,hdf->hsf"}> : () -> ()
    %cst_309 = arith.constant dense<0.000000e+00> : vector<2x8x24xf32>
    %503 = tpu.matmul %499, %486, %cst_309 {dimension_numbers = #tpu.dot_dimension_numbers<[2], [1], [1], [2], [0, 0, 0, 1, 1, 2], [0], [0]>} : vector<2x8x48xbf16>, vector<2x48x24xbf16>, vector<2x8x24xf32> -> vector<2x8x24xf32>
    "tpu.trace_stop"() : () -> ()
    %504 = vector.broadcast %488 : vector<2x1x24xf32> to vector<2x8x24xf32>
    %505 = arith.addf %503, %504 : vector<2x8x24xf32>
    "tpu.trace_start"() <{level = 10 : i32, message = "hsd,hdf->hsf"}> : () -> ()
    %cst_310 = arith.constant dense<0.000000e+00> : vector<2x8x24xf32>
    %506 = tpu.matmul %499, %490, %cst_310 {dimension_numbers = #tpu.dot_dimension_numbers<[2], [1], [1], [2], [0, 0, 0, 1, 1, 2], [0], [0]>} : vector<2x8x48xbf16>, vector<2x48x24xbf16>, vector<2x8x24xf32> -> vector<2x8x24xf32>
    "tpu.trace_stop"() : () -> ()
    %507 = vector.broadcast %492 : vector<2x1x24xf32> to vector<2x8x24xf32>
    %508 = arith.addf %506, %507 : vector<2x8x24xf32>
    %509 = arith.truncf %502 : vector<2x8x24xf32> to vector<2x8x24xbf16>
    %510 = arith.truncf %505 : vector<2x8x24xf32> to vector<2x8x24xbf16>
    "tpu.trace_start"() <{level = 10 : i32, message = "hqf,hkf->hqk"}> : () -> ()
    %cst_311 = arith.constant dense<0.000000e+00> : vector<2x8x8xf32>
    %511 = tpu.matmul %509, %510, %cst_311 {dimension_numbers = #tpu.dot_dimension_numbers<[2], [2], [1], [1], [0, 0, 0, 1, 1, 1], [0], [0]>} : vector<2x8x24xbf16>, vector<2x8x24xbf16>, vector<2x8x8xf32> -> vector<2x8x8xf32>
    "tpu.trace_stop"() : () -> ()
    %cst_312 = arith.constant 0.204124153 : f32
    %512 = vector.broadcast %cst_312 : f32 to vector<2x8x8xf32>
    %513 = arith.mulf %511, %512 : vector<2x8x8xf32>
    %514 = vector.broadcast %318 : vector<1x8x8xf32> to vector<2x8x8xf32>
    %515 = arith.addf %513, %514 : vector<2x8x8xf32>
    %cst_313 = arith.constant dense<0xFF800000> : vector<2x8xf32>
    %516 = vector.multi_reduction <maximumf>, %515, %cst_313 [2] : vector<2x8x8xf32> to vector<2x8xf32>
    %517 = vector.shape_cast %516 : vector<2x8xf32> to vector<2x8x1xf32>
    %518 = vector.broadcast %517 : vector<2x8x1xf32> to vector<2x8x8xf32>
    %519 = arith.subf %515, %518 : vector<2x8x8xf32>
    %520 = math.exp %519 : vector<2x8x8xf32>
    %cst_314 = arith.constant dense<0.000000e+00> : vector<2x8xf32>
    %521 = vector.multi_reduction <add>, %520, %cst_314 [2] : vector<2x8x8xf32> to vector<2x8xf32>
    %522 = vector.shape_cast %521 : vector<2x8xf32> to vector<2x8x1xf32>
    %523 = tpu.reciprocal %522 {approx = true} : vector<2x8x1xf32> -> vector<2x8x1xf32>
    %524 = vector.broadcast %523 : vector<2x8x1xf32> to vector<2x8x8xf32>
    %525 = arith.mulf %520, %524 : vector<2x8x8xf32>
    %526 = arith.truncf %525 : vector<2x8x8xf32> to vector<2x8x8xbf16>
    %527 = arith.truncf %508 : vector<2x8x24xf32> to vector<2x8x24xbf16>
    "tpu.trace_start"() <{level = 10 : i32, message = "hqk,hkf->hqf"}> : () -> ()
    %cst_315 = arith.constant dense<0.000000e+00> : vector<2x8x24xf32>
    %528 = tpu.matmul %526, %527, %cst_315 {dimension_numbers = #tpu.dot_dimension_numbers<[2], [1], [1], [2], [0, 0, 0, 1, 1, 2], [0], [0]>} : vector<2x8x8xbf16>, vector<2x8x24xbf16>, vector<2x8x24xf32> -> vector<2x8x24xf32>
    "tpu.trace_stop"() : () -> ()
    %529 = arith.truncf %528 : vector<2x8x24xf32> to vector<2x8x24xbf16>
    "tpu.trace_start"() <{level = 10 : i32, message = "hqf,hfd->hqd"}> : () -> ()
    %cst_316 = arith.constant dense<0.000000e+00> : vector<2x8x48xf32>
    %530 = tpu.matmul %529, %494, %cst_316 {dimension_numbers = #tpu.dot_dimension_numbers<[2], [1], [1], [2], [0, 0, 0, 1, 1, 2], [0], [0]>} : vector<2x8x24xbf16>, vector<2x24x48xbf16>, vector<2x8x48xf32> -> vector<2x8x48xf32>
    "tpu.trace_stop"() : () -> ()
    %cst_317 = arith.constant dense<0.000000e+00> : vector<8x48xf32>
    %531 = vector.multi_reduction <add>, %530, %cst_317 [0] : vector<2x8x48xf32> to vector<8x48xf32>
    %532 = vector.broadcast %496 : vector<1x48xf32> to vector<8x48xf32>
    %533 = arith.addf %531, %532 : vector<8x48xf32>
    %534 = arith.addf %454, %533 : vector<8x48xf32>
    %c1_318 = arith.constant 1 : index
    %c0_319 = arith.constant 0 : index
    %c0_320 = arith.constant 0 : index
    %535 = vector.load %arg28[%c1_318, %c0_319, %c0_320] : memref<2x1x48xf32, #tpu.memory_space<vmem>>, vector<1x1x48xf32>
    %536 = vector.shape_cast %535 : vector<1x1x48xf32> to vector<1x48xf32>
    %c1_321 = arith.constant 1 : index
    %c0_322 = arith.constant 0 : index
    %c0_323 = arith.constant 0 : index
    %537 = vector.load %arg29[%c1_321, %c0_322, %c0_323] : memref<2x1x48xf32, #tpu.memory_space<vmem>>, vector<1x1x48xf32>
    %538 = vector.shape_cast %537 : vector<1x1x48xf32> to vector<1x48xf32>
    %cst_324 = arith.constant dense<0.000000e+00> : vector<8xf32>
    %539 = vector.multi_reduction <add>, %534, %cst_324 [1] : vector<8x48xf32> to vector<8xf32>
    %540 = vector.shape_cast %539 : vector<8xf32> to vector<8x1xf32>
    %cst_325 = arith.constant 4.800000e+01 : f32
    %541 = vector.broadcast %cst_325 : f32 to vector<8x1xf32>
    %542 = arith.divf %540, %541 : vector<8x1xf32>
    %543 = vector.broadcast %542 : vector<8x1xf32> to vector<8x48xf32>
    %544 = arith.subf %534, %543 : vector<8x48xf32>
    %545 = arith.mulf %544, %544 : vector<8x48xf32>
    %cst_326 = arith.constant dense<0.000000e+00> : vector<8xf32>
    %546 = vector.multi_reduction <add>, %545, %cst_326 [1] : vector<8x48xf32> to vector<8xf32>
    %547 = vector.shape_cast %546 : vector<8xf32> to vector<8x1xf32>
    %cst_327 = arith.constant 4.800000e+01 : f32
    %548 = vector.broadcast %cst_327 : f32 to vector<8x1xf32>
    %549 = arith.divf %547, %548 : vector<8x1xf32>
    %550 = vector.broadcast %542 : vector<8x1xf32> to vector<8x48xf32>
    %551 = arith.subf %534, %550 : vector<8x48xf32>
    %cst_328 = arith.constant 9.99999974E-6 : f32
    %552 = vector.broadcast %cst_328 : f32 to vector<8x1xf32>
    %553 = arith.addf %549, %552 : vector<8x1xf32>
    %554 = math.rsqrt %553 : vector<8x1xf32>
    %555 = vector.broadcast %554 : vector<8x1xf32> to vector<8x48xf32>
    %556 = arith.mulf %551, %555 : vector<8x48xf32>
    %557 = vector.broadcast %536 : vector<1x48xf32> to vector<8x48xf32>
    %558 = arith.mulf %556, %557 : vector<8x48xf32>
    %559 = vector.broadcast %538 : vector<1x48xf32> to vector<8x48xf32>
    %560 = arith.addf %558, %559 : vector<8x48xf32>
    %c1_329 = arith.constant 1 : index
    %c0_330 = arith.constant 0 : index
    %c0_331 = arith.constant 0 : index
    %561 = vector.load %arg30[%c1_329, %c0_330, %c0_331] : memref<2x48x96xbf16, #tpu.memory_space<vmem>>, vector<1x48x96xbf16>
    %562 = vector.shape_cast %561 : vector<1x48x96xbf16> to vector<48x96xbf16>
    %563 = arith.truncf %560 : vector<8x48xf32> to vector<8x48xbf16>
    %cst_332 = arith.constant dense<0.000000e+00> : vector<8x96xf32>
    %564 = tpu.matmul %563, %562, %cst_332 {dimension_numbers = #tpu.dot_dimension_numbers<[1], [0], [0], [1], [0, 0, 1, 1], [], []>} : vector<8x48xbf16>, vector<48x96xbf16>, vector<8x96xf32> -> vector<8x96xf32>
    %c1_333 = arith.constant 1 : index
    %c0_334 = arith.constant 0 : index
    %c0_335 = arith.constant 0 : index
    %565 = vector.load %arg31[%c1_333, %c0_334, %c0_335] : memref<2x1x96xf32, #tpu.memory_space<vmem>>, vector<1x1x96xf32>
    %566 = vector.shape_cast %565 : vector<1x1x96xf32> to vector<1x96xf32>
    %567 = vector.broadcast %566 : vector<1x96xf32> to vector<8x96xf32>
    %568 = arith.addf %564, %567 : vector<8x96xf32>
    %cst_336 = arith.constant 5.000000e-01 : f32
    %569 = vector.broadcast %cst_336 : f32 to vector<8x96xf32>
    %570 = arith.mulf %569, %568 : vector<8x96xf32>
    %cst_337 = arith.constant 4.471500e-02 : f32
    %571 = vector.broadcast %cst_337 : f32 to vector<8x96xf32>
    %572 = arith.mulf %571, %568 : vector<8x96xf32>
    %573 = arith.mulf %572, %568 : vector<8x96xf32>
    %574 = arith.mulf %573, %568 : vector<8x96xf32>
    %575 = arith.addf %568, %574 : vector<8x96xf32>
    %cst_338 = arith.constant 0.797884583 : f32
    %576 = vector.broadcast %cst_338 : f32 to vector<8x96xf32>
    %577 = arith.mulf %576, %575 : vector<8x96xf32>
    %578 = math.tanh %577 : vector<8x96xf32>
    %cst_339 = arith.constant 1.000000e+00 : f32
    %579 = vector.broadcast %cst_339 : f32 to vector<8x96xf32>
    %580 = arith.addf %579, %578 : vector<8x96xf32>
    %581 = arith.mulf %570, %580 : vector<8x96xf32>
    %c1_340 = arith.constant 1 : index
    %c0_341 = arith.constant 0 : index
    %c0_342 = arith.constant 0 : index
    %582 = vector.load %arg32[%c1_340, %c0_341, %c0_342] : memref<2x96x48xbf16, #tpu.memory_space<vmem>>, vector<1x96x48xbf16>
    %583 = vector.shape_cast %582 : vector<1x96x48xbf16> to vector<96x48xbf16>
    %584 = arith.truncf %581 : vector<8x96xf32> to vector<8x96xbf16>
    %cst_343 = arith.constant dense<0.000000e+00> : vector<8x48xf32>
    %585 = tpu.matmul %584, %583, %cst_343 {dimension_numbers = #tpu.dot_dimension_numbers<[1], [0], [0], [1], [0, 0, 1, 1], [], []>} : vector<8x96xbf16>, vector<96x48xbf16>, vector<8x48xf32> -> vector<8x48xf32>
    %586 = arith.addf %534, %585 : vector<8x48xf32>
    %c1_344 = arith.constant 1 : index
    %c0_345 = arith.constant 0 : index
    %c0_346 = arith.constant 0 : index
    %587 = vector.load %arg33[%c1_344, %c0_345, %c0_346] : memref<2x1x48xf32, #tpu.memory_space<vmem>>, vector<1x1x48xf32>
    %588 = vector.shape_cast %587 : vector<1x1x48xf32> to vector<1x48xf32>
    %589 = vector.broadcast %588 : vector<1x48xf32> to vector<8x48xf32>
    %590 = arith.addf %586, %589 : vector<8x48xf32>
    %c0_347 = arith.constant 0 : index
    %c0_348 = arith.constant 0 : index
    %591 = vector.load %arg34[%c0_347, %c0_348] : memref<1x48xf32, #tpu.memory_space<vmem>>, vector<1x48xf32>
    %c0_349 = arith.constant 0 : index
    %c0_350 = arith.constant 0 : index
    %592 = vector.load %arg35[%c0_349, %c0_350] : memref<1x48xf32, #tpu.memory_space<vmem>>, vector<1x48xf32>
    %cst_351 = arith.constant dense<0.000000e+00> : vector<8xf32>
    %593 = vector.multi_reduction <add>, %590, %cst_351 [1] : vector<8x48xf32> to vector<8xf32>
    %594 = vector.shape_cast %593 : vector<8xf32> to vector<8x1xf32>
    %cst_352 = arith.constant 4.800000e+01 : f32
    %595 = vector.broadcast %cst_352 : f32 to vector<8x1xf32>
    %596 = arith.divf %594, %595 : vector<8x1xf32>
    %597 = vector.broadcast %596 : vector<8x1xf32> to vector<8x48xf32>
    %598 = arith.subf %590, %597 : vector<8x48xf32>
    %599 = arith.mulf %598, %598 : vector<8x48xf32>
    %cst_353 = arith.constant dense<0.000000e+00> : vector<8xf32>
    %600 = vector.multi_reduction <add>, %599, %cst_353 [1] : vector<8x48xf32> to vector<8xf32>
    %601 = vector.shape_cast %600 : vector<8xf32> to vector<8x1xf32>
    %cst_354 = arith.constant 4.800000e+01 : f32
    %602 = vector.broadcast %cst_354 : f32 to vector<8x1xf32>
    %603 = arith.divf %601, %602 : vector<8x1xf32>
    %604 = vector.broadcast %596 : vector<8x1xf32> to vector<8x48xf32>
    %605 = arith.subf %590, %604 : vector<8x48xf32>
    %cst_355 = arith.constant 9.99999974E-6 : f32
    %606 = vector.broadcast %cst_355 : f32 to vector<8x1xf32>
    %607 = arith.addf %603, %606 : vector<8x1xf32>
    %608 = math.rsqrt %607 : vector<8x1xf32>
    %609 = vector.broadcast %608 : vector<8x1xf32> to vector<8x48xf32>
    %610 = arith.mulf %605, %609 : vector<8x48xf32>
    %611 = vector.broadcast %591 : vector<1x48xf32> to vector<8x48xf32>
    %612 = arith.mulf %610, %611 : vector<8x48xf32>
    %613 = vector.broadcast %592 : vector<1x48xf32> to vector<8x48xf32>
    %614 = arith.addf %612, %613 : vector<8x48xf32>
    %c0_356 = arith.constant 0 : index
    %c0_357 = arith.constant 0 : index
    %615 = vector.load %arg36[%c0_356, %c0_357] : memref<48x128xbf16, #tpu.memory_space<vmem>>, vector<48x128xbf16>
    %616 = arith.truncf %614 : vector<8x48xf32> to vector<8x48xbf16>
    %cst_358 = arith.constant dense<0.000000e+00> : vector<8x128xf32>
    %617 = tpu.matmul %616, %615, %cst_358 {dimension_numbers = #tpu.dot_dimension_numbers<[1], [0], [0], [1], [0, 0, 1, 1], [], []>} : vector<8x48xbf16>, vector<48x128xbf16>, vector<8x128xf32> -> vector<8x128xf32>
    %618 = vector.shape_cast %617 : vector<8x128xf32> to vector<1x8x128xf32>
    %c0_359 = arith.constant 0 : index
    %c0_360 = arith.constant 0 : index
    %c0_361 = arith.constant 0 : index
    %619 = vector.load %arg37[%c0_359, %c0_360, %c0_361] : memref<1x8x128xf32, #tpu.memory_space<vmem>>, vector<1x8x128xf32>
    tpu.vector_store %arg37[%c0_359, %c0_360, %c0_361], %618 {strides = array<i32>} : memref<1x8x128xf32, #tpu.memory_space<vmem>>, vector<1x8x128xf32>,
    %c0_362 = arith.constant 0 : index
    %c0_363 = arith.constant 0 : index
    %c0_364 = arith.constant 0 : index
    %620 = vector.load %arg5[%c0_362, %c0_363, %c0_364] : memref<1x8x1xi32, #tpu.memory_space<vmem>>, vector<1x8x1xi32>
    %621 = vector.shape_cast %620 : vector<1x8x1xi32> to vector<8x1xi32>
    %cst_365 = arith.constant dense<0xFF800000> : vector<8xf32>
    %622 = vector.multi_reduction <maximumf>, %617, %cst_365 [1] : vector<8x128xf32> to vector<8xf32>
    %623 = vector.shape_cast %622 : vector<8xf32> to vector<8x1xf32>
    %624 = vector.broadcast %623 : vector<8x1xf32> to vector<8x128xf32>
    %625 = arith.subf %617, %624 : vector<8x128xf32>
    %626 = math.exp %625 : vector<8x128xf32>
    %cst_366 = arith.constant dense<0.000000e+00> : vector<8xf32>
    %627 = vector.multi_reduction <add>, %626, %cst_366 [1] : vector<8x128xf32> to vector<8xf32>
    %628 = vector.shape_cast %627 : vector<8xf32> to vector<8x1xf32>
    %629 = math.log %628 : vector<8x1xf32>
    %630 = arith.addf %629, %623 : vector<8x1xf32>
    %631 = tpu.iota {dimensions = array<i32: 1>} : vector<8x128xi32>
    %632 = vector.broadcast %621 : vector<8x1xi32> to vector<8x128xi32>
    %633 = arith.cmpi eq, %631, %632 : vector<8x128xi32>
    %cst_367 = arith.constant 0.000000e+00 : f32
    %634 = vector.broadcast %cst_367 : f32 to vector<8x128xf32>
    %635 = arith.select %633, %617, %634 : vector<8x128xi1>, vector<8x128xf32>
    %cst_368 = arith.constant dense<0.000000e+00> : vector<8xf32>
    %636 = vector.multi_reduction <add>, %635, %cst_368 [1] : vector<8x128xf32> to vector<8xf32>
    %637 = vector.shape_cast %636 : vector<8xf32> to vector<8x1xf32>
    %638 = arith.subf %630, %637 : vector<8x1xf32>
    %c-100_i32 = arith.constant -100 : i32
    %639 = vector.broadcast %c-100_i32 : i32 to vector<8x1xi32>
    %640 = arith.cmpi ne, %621, %639 : vector<8x1xi32>
    %641 = arith.extui %640 : vector<8x1xi1> to vector<8x1xi32>
    %642 = arith.sitofp %641 : vector<8x1xi32> to vector<8x1xf32>
    %643 = arith.mulf %638, %642 : vector<8x1xf32>
    %cst_369 = arith.constant dense<0.000000e+00> : vector<1xf32>
    %644 = vector.multi_reduction <add>, %643, %cst_369 [0] : vector<8x1xf32> to vector<1xf32>
    %645 = vector.shape_cast %644 : vector<1xf32> to vector<1x1xf32>
    %646 = vector.shape_cast %645 : vector<1x1xf32> to vector<1x1x1xf32>
    %c0_370 = arith.constant 0 : index
    %c0_371 = arith.constant 0 : index
    %c0_372 = arith.constant 0 : index
    %647 = vector.load %arg38[%c0_370, %c0_371, %c0_372] : memref<1x1x1xf32, #tpu.memory_space<vmem>>, vector<1x1x1xf32>
    tpu.vector_store %arg38[%c0_370, %c0_371, %c0_372], %646 {strides = array<i32>} : memref<1x1x1xf32, #tpu.memory_space<vmem>>, vector<1x1x1xf32>,
    %cst_373 = arith.constant dense<0.000000e+00> : vector<1xf32>
    %648 = vector.multi_reduction <add>, %642, %cst_373 [0] : vector<8x1xf32> to vector<1xf32>
    %649 = vector.shape_cast %648 : vector<1xf32> to vector<1x1xf32>
    %650 = vector.shape_cast %649 : vector<1x1xf32> to vector<1x1x1xf32>
    %c0_374 = arith.constant 0 : index
    %c0_375 = arith.constant 0 : index
    %c0_376 = arith.constant 0 : index
    %651 = vector.load %arg39[%c0_374, %c0_375, %c0_376] : memref<1x1x1xf32, #tpu.memory_space<vmem>>, vector<1x1x1xf32>
    tpu.vector_store %arg39[%c0_374, %c0_375, %c0_376], %650 {strides = array<i32>} : memref<1x1x1xf32, #tpu.memory_space<vmem>>, vector<1x1x1xf32>,
    return
  }
  func.func @transform_0(%arg0: i32) -> (i32, i32, i32) {
    %c0_i32 = arith.constant 0 : i32
    %c0_i32_0 = arith.constant 0 : i32
    %c0_i32_1 = arith.constant 0 : i32
    return %arg0, %c0_i32, %c0_i32_0 : i32, i32, i32
  }
  func.func @transform_1(%arg0: i32) -> (i32, i32, i32) {
    %c0_i32 = arith.constant 0 : i32
    %c0_i32_0 = arith.constant 0 : i32
    %c0_i32_1 = arith.constant 0 : i32
    return %arg0, %c0_i32, %c0_i32_0 : i32, i32, i32
  }
  func.func @transform_2(%arg0: i32) -> (i32, i32, i32) {
    %c0_i32 = arith.constant 0 : i32
    %c0_i32_0 = arith.constant 0 : i32
    %c0_i32_1 = arith.constant 0 : i32
    return %arg0, %c0_i32, %c0_i32_0 : i32, i32, i32
  }
  func.func @transform_3(%arg0: i32) -> (i32, i32, i32) {
    %c0_i32 = arith.constant 0 : i32
    %c0_i32_0 = arith.constant 0 : i32
    %c0_i32_1 = arith.constant 0 : i32
    return %arg0, %c0_i32, %c0_i32_0 : i32, i32, i32
  }
  func.func @transform_4(%arg0: i32) -> (i32, i32, i32) {
    %c0_i32 = arith.constant 0 : i32
    %c0_i32_0 = arith.constant 0 : i32
    %c0_i32_1 = arith.constant 0 : i32
    return %arg0, %c0_i32, %c0_i32_0 : i32, i32, i32
  }
  func.func @transform_5(%arg0: i32) -> (i32, i32) {
    %c0_i32 = arith.constant 0 : i32
    %c0_i32_0 = arith.constant 0 : i32
    %c0_i32_1 = arith.constant 0 : i32
    return %c0_i32, %c0_i32_0 : i32, i32
  }
  func.func @transform_6(%arg0: i32) -> (i32, i32) {
    %c0_i32 = arith.constant 0 : i32
    %c0_i32_0 = arith.constant 0 : i32
    %c0_i32_1 = arith.constant 0 : i32
    return %c0_i32, %c0_i32_0 : i32, i32
  }
  func.func @transform_7(%arg0: i32) -> (i32, i32, i32, i32) {
    %c0_i32 = arith.constant 0 : i32
    %c0_i32_0 = arith.constant 0 : i32
    %c0_i32_1 = arith.constant 0 : i32
    %c0_i32_2 = arith.constant 0 : i32
    %c0_i32_3 = arith.constant 0 : i32
    return %c0_i32, %c0_i32_0, %c0_i32_1, %c0_i32_2 : i32, i32, i32, i32
  }
  func.func @transform_8(%arg0: i32) -> (i32, i32, i32, i32) {
    %c0_i32 = arith.constant 0 : i32
    %c0_i32_0 = arith.constant 0 : i32
    %c0_i32_1 = arith.constant 0 : i32
    %c0_i32_2 = arith.constant 0 : i32
    %c0_i32_3 = arith.constant 0 : i32
    return %c0_i32, %c0_i32_0, %c0_i32_1, %c0_i32_2 : i32, i32, i32, i32
  }
  func.func @transform_9(%arg0: i32) -> (i32, i32, i32, i32) {
    %c0_i32 = arith.constant 0 : i32
    %c0_i32_0 = arith.constant 0 : i32
    %c0_i32_1 = arith.constant 0 : i32
    %c0_i32_2 = arith.constant 0 : i32
    %c0_i32_3 = arith.constant 0 : i32
    return %c0_i32, %c0_i32_0, %c0_i32_1, %c0_i32_2 : i32, i32, i32, i32
  }
  func.func @transform_10(%arg0: i32) -> (i32, i32, i32) {
    %c0_i32 = arith.constant 0 : i32
    %c0_i32_0 = arith.constant 0 : i32
    %c0_i32_1 = arith.constant 0 : i32
    %c0_i32_2 = arith.constant 0 : i32
    return %c0_i32, %c0_i32_0, %c0_i32_1 : i32, i32, i32
  }
  func.func @transform_11(%arg0: i32) -> (i32, i32, i32) {
    %c0_i32 = arith.constant 0 : i32
    %c0_i32_0 = arith.constant 0 : i32
    %c0_i32_1 = arith.constant 0 : i32
    %c0_i32_2 = arith.constant 0 : i32
    return %c0_i32, %c0_i32_0, %c0_i32_1 : i32, i32, i32
  }
  func.func @transform_12(%arg0: i32) -> (i32, i32, i32) {
    %c0_i32 = arith.constant 0 : i32
    %c0_i32_0 = arith.constant 0 : i32
    %c0_i32_1 = arith.constant 0 : i32
    %c0_i32_2 = arith.constant 0 : i32
    return %c0_i32, %c0_i32_0, %c0_i32_1 : i32, i32, i32
  }
  func.func @transform_13(%arg0: i32) -> (i32, i32, i32) {
    %c0_i32 = arith.constant 0 : i32
    %c0_i32_0 = arith.constant 0 : i32
    %c0_i32_1 = arith.constant 0 : i32
    %c0_i32_2 = arith.constant 0 : i32
    return %c0_i32, %c0_i32_0, %c0_i32_1 : i32, i32, i32
  }
  func.func @transform_14(%arg0: i32) -> (i32, i32, i32) {
    %c0_i32 = arith.constant 0 : i32
    %c0_i32_0 = arith.constant 0 : i32
    %c0_i32_1 = arith.constant 0 : i32
    %c0_i32_2 = arith.constant 0 : i32
    return %c0_i32, %c0_i32_0, %c0_i32_1 : i32, i32, i32
  }
  func.func @transform_15(%arg0: i32) -> (i32, i32, i32) {
    %c0_i32 = arith.constant 0 : i32
    %c0_i32_0 = arith.constant 0 : i32
    %c0_i32_1 = arith.constant 0 : i32
    %c0_i32_2 = arith.constant 0 : i32
    return %c0_i32, %c0_i32_0, %c0_i32_1 : i32, i32, i32
  }
  func.func @transform_16(%arg0: i32) -> (i32, i32, i32) {
    %c0_i32 = arith.constant 0 : i32
    %c0_i32_0 = arith.constant 0 : i32
    %c0_i32_1 = arith.constant 0 : i32
    %c0_i32_2 = arith.constant 0 : i32
    return %c0_i32, %c0_i32_0, %c0_i32_1 : i32, i32, i32
  }
  func.func @transform_17(%arg0: i32) -> (i32, i32, i32) {
    %c0_i32 = arith.constant 0 : i32
    %c0_i32_0 = arith.constant 0 : i32
    %c0_i32_1 = arith.constant 0 : i32
    %c0_i32_2 = arith.constant 0 : i32
    return %c0_i32, %c0_i32_0, %c0_i32_1 : i32, i32, i32
  }
  func.func @transform_18(%arg0: i32) -> (i32, i32, i32) {
    %c0_i32 = arith.constant 0 : i32
    %c0_i32_0 = arith.constant 0 : i32
    %c0_i32_1 = arith.constant 0 : i32
    %c0_i32_2 = arith.constant 0 : i32
    return %c0_i32, %c0_i32_0, %c0_i32_1 : i32, i32, i32
  }
  func.func @transform_19(%arg0: i32) -> (i32, i32) {
    %c0_i32 = arith.constant 0 : i32
    %c0_i32_0 = arith.constant 0 : i32
    %c0_i32_1 = arith.constant 0 : i32
    return %c0_i32, %c0_i32_0 : i32, i32
  }
  func.func @transform_20(%arg0: i32) -> (i32, i32) {
    %c0_i32 = arith.constant 0 : i32
    %c0_i32_0 = arith.constant 0 : i32
    %c0_i32_1 = arith.constant 0 : i32
    return %c0_i32, %c0_i32_0 : i32, i32
  }
  func.func @transform_21(%arg0: i32) -> (i32, i32, i32) {
    %c0_i32 = arith.constant 0 : i32
    %c0_i32_0 = arith.constant 0 : i32
    %c0_i32_1 = arith.constant 0 : i32
    %c0_i32_2 = arith.constant 0 : i32
    return %c0_i32, %c0_i32_0, %c0_i32_1 : i32, i32, i32
  }
  func.func @transform_22(%arg0: i32) -> (i32, i32, i32) {
    %c0_i32 = arith.constant 0 : i32
    %c0_i32_0 = arith.constant 0 : i32
    %c0_i32_1 = arith.constant 0 : i32
    %c0_i32_2 = arith.constant 0 : i32
    return %c0_i32, %c0_i32_0, %c0_i32_1 : i32, i32, i32
  }
  func.func @transform_23(%arg0: i32) -> (i32, i32, i32, i32) {
    %c0_i32 = arith.constant 0 : i32
    %c0_i32_0 = arith.constant 0 : i32
    %c0_i32_1 = arith.constant 0 : i32
    %c0_i32_2 = arith.constant 0 : i32
    %c0_i32_3 = arith.constant 0 : i32
    return %c0_i32, %c0_i32_0, %c0_i32_1, %c0_i32_2 : i32, i32, i32, i32
  }
  func.func @transform_24(%arg0: i32) -> (i32, i32, i32, i32) {
    %c0_i32 = arith.constant 0 : i32
    %c0_i32_0 = arith.constant 0 : i32
    %c0_i32_1 = arith.constant 0 : i32
    %c0_i32_2 = arith.constant 0 : i32
    %c0_i32_3 = arith.constant 0 : i32
    return %c0_i32, %c0_i32_0, %c0_i32_1, %c0_i32_2 : i32, i32, i32, i32
  }
  func.func @transform_25(%arg0: i32) -> (i32, i32, i32, i32) {
    %c0_i32 = arith.constant 0 : i32
    %c0_i32_0 = arith.constant 0 : i32
    %c0_i32_1 = arith.constant 0 : i32
    %c0_i32_2 = arith.constant 0 : i32
    %c0_i32_3 = arith.constant 0 : i32
    return %c0_i32, %c0_i32_0, %c0_i32_1, %c0_i32_2 : i32, i32, i32, i32
  }
  func.func @transform_26(%arg0: i32) -> (i32, i32, i32) {
    %c0_i32 = arith.constant 0 : i32
    %c0_i32_0 = arith.constant 0 : i32
    %c0_i32_1 = arith.constant 0 : i32
    %c0_i32_2 = arith.constant 0 : i32
    return %c0_i32, %c0_i32_0, %c0_i32_1 : i32, i32, i32
  }
  func.func @transform_27(%arg0: i32) -> (i32, i32, i32) {
    %c0_i32 = arith.constant 0 : i32
    %c0_i32_0 = arith.constant 0 : i32
    %c0_i32_1 = arith.constant 0 : i32
    %c0_i32_2 = arith.constant 0 : i32
    return %c0_i32, %c0_i32_0, %c0_i32_1 : i32, i32, i32
  }
  func.func @transform_28(%arg0: i32) -> (i32, i32, i32) {
    %c0_i32 = arith.constant 0 : i32
    %c0_i32_0 = arith.constant 0 : i32
    %c0_i32_1 = arith.constant 0 : i32
    %c0_i32_2 = arith.constant 0 : i32
    return %c0_i32, %c0_i32_0, %c0_i32_1 : i32, i32, i32
  }
  func.func @transform_29(%arg0: i32) -> (i32, i32, i32) {
    %c0_i32 = arith.constant 0 : i32
    %c0_i32_0 = arith.constant 0 : i32
    %c0_i32_1 = arith.constant 0 : i32
    %c0_i32_2 = arith.constant 0 : i32
    return %c0_i32, %c0_i32_0, %c0_i32_1 : i32, i32, i32
  }
  func.func @transform_30(%arg0: i32) -> (i32, i32, i32) {
    %c0_i32 = arith.constant 0 : i32
    %c0_i32_0 = arith.constant 0 : i32
    %c0_i32_1 = arith.constant 0 : i32
    %c0_i32_2 = arith.constant 0 : i32
    return %c0_i32, %c0_i32_0, %c0_i32_1 : i32, i32, i32
  }
  func.func @transform_31(%arg0: i32) -> (i32, i32, i32) {
    %c0_i32 = arith.constant 0 : i32
    %c0_i32_0 = arith.constant 0 : i32
    %c0_i32_1 = arith.constant 0 : i32
    %c0_i32_2 = arith.constant 0 : i32
    return %c0_i32, %c0_i32_0, %c0_i32_1 : i32, i32, i32
  }
  func.func @transform_32(%arg0: i32) -> (i32, i32, i32) {
    %c0_i32 = arith.constant 0 : i32
    %c0_i32_0 = arith.constant 0 : i32
    %c0_i32_1 = arith.constant 0 : i32
    %c0_i32_2 = arith.constant 0 : i32
    return %c0_i32, %c0_i32_0, %c0_i32_1 : i32, i32, i32
  }
  func.func @transform_33(%arg0: i32) -> (i32, i32) {
    %c0_i32 = arith.constant 0 : i32
    %c0_i32_0 = arith.constant 0 : i32
    %c0_i32_1 = arith.constant 0 : i32
    return %c0_i32, %c0_i32_0 : i32, i32
  }
  func.func @transform_34(%arg0: i32) -> (i32, i32) {
    %c0_i32 = arith.constant 0 : i32
    %c0_i32_0 = arith.constant 0 : i32
    %c0_i32_1 = arith.constant 0 : i32
    return %c0_i32, %c0_i32_0 : i32, i32
  }
  func.func @transform_35(%arg0: i32) -> (i32, i32) {
    %c0_i32 = arith.constant 0 : i32
    %c0_i32_0 = arith.constant 0 : i32
    %c0_i32_1 = arith.constant 0 : i32
    return %c0_i32, %c0_i32_0 : i32, i32
  }
  func.func @transform_36(%arg0: i32) -> (i32, i32, i32) {
    %c0_i32 = arith.constant 0 : i32
    %c0_i32_0 = arith.constant 0 : i32
    %c0_i32_1 = arith.constant 0 : i32
    return %arg0, %c0_i32, %c0_i32_0 : i32, i32, i32
  }
  func.func @transform_37(%arg0: i32) -> (i32, i32, i32) {
    %c0_i32 = arith.constant 0 : i32
    %c0_i32_0 = arith.constant 0 : i32
    %c0_i32_1 = arith.constant 0 : i32
    return %arg0, %c0_i32, %c0_i32_0 : i32, i32, i32
  }
  func.func @transform_38(%arg0: i32) -> (i32, i32, i32) {
    %c0_i32 = arith.constant 0 : i32
    %c0_i32_0 = arith.constant 0 : i32
    %c0_i32_1 = arith.constant 0 : i32
    return %arg0, %c0_i32, %c0_i32_0 : i32, i32, i32
  }
}

</mosaic_0001>

<bundles_post_ra>
// kernel: bert_gpt2_forward.1
= control target key start
LH: loop header
LB: loop body
LE: loop exit
PB: predicated region body
PF: predicated region fallthrough
CT: control target
= control target key end

     0   :  { %s5122_s6 = smov 1   ;;  %s5123_s10 = smov 2   ;;  %s5834_s0 = inlined_call_operand.smem [shape: u32[39], index: -1, kind: input, shape index: {}] }
   0x1   :  { %s5173_s5 = sld [smem:[%s5834_s0]]   ;;  %s5124_s14 = smov 3  }
   0x2   :  { %s5178_s9 = sld [smem:[%s5834_s0 + %s5122_s6]]   ;;  %s5125_s18 = smov 4  }
   0x3   :  { %s5183_s13 = sld [smem:[%s5834_s0 + %s5123_s10]]   ;;  %s5126_s22 = smov 5  }
   0x4   :  { %s5188_s17 = sld [smem:[%s5834_s0 + %s5124_s14]]   ;;  %s5127_s26 = smov 6  }
   0x5   :  { %s5193_s21 = sld [smem:[%s5834_s0 + %s5125_s18]]   ;;  %s5128_s30 = smov 7  }
   0x6   :  { %s5198_s25 = sld [smem:[%s5834_s0 + %s5126_s22]]   ;;  %s5129_s4 = smov 8  }
   0x7   :  { %5869 = sst [smem:[#allocation5_spill]] %s5173_s5  ;;  %s5130_s10 = smov 9  }
   0x8   :  { %5870 = sst [smem:[#allocation6_spill]] %s5178_s9  ;;  %s5131_s15 = smov 10  }
   0x9   :  { %5871 = sst [smem:[#allocation7_spill]] %s5183_s13  ;;  %s5132_s20 = smov 11  }
   0xa   :  { %5872 = sst [smem:[#allocation8_spill]] %s5188_s17  ;;  %s5134_s1 = smov 13  }
   0xb   :  { %5873 = sst [smem:[#allocation9_spill]] %s5193_s21  ;;  %s5135_s7 = smov 14  }
   0xc   :  { %5874 = sst [smem:[#allocation10_spill]] %s5198_s25  ;;  %s5137_s22 = smov 16  }
   0xd   :  { %s5203_s29 = sld [smem:[%s5834_s0 + %s5127_s26]]   ;;  %s5133_s26 = smov 12  }
   0xe   :  { %s5208_s3 = sld [smem:[%s5834_s0 + %s5128_s30]]   ;;  %s5138_s28 = smov 17  }
   0xf   :  { %s5213_s8 = sld [smem:[%s5834_s0 + %s5129_s4]]  }
  0x10   :  { %s5218_s14 = sld [smem:[%s5834_s0 + %s5130_s10]]  }
  0x11   :  { %s5223_s19 = sld [smem:[%s5834_s0 + %s5131_s15]]   ;;  %s5136_s15 = smov 15  }
  0x12   :  { %s5228_s24 = sld [smem:[%s5834_s0 + %s5132_s20]]  }
  0x13   :  { %s5233_s30 = sld [smem:[%s5834_s0 + %s5133_s26]]  }
  0x14   :  { %5875 = sst [smem:[#allocation11_spill]] %s5208_s3 }
  0x15   :  { %5876 = sst [smem:[#allocation12_spill]] %s5213_s8 }
  0x16   :  { %5877 = sst [smem:[#allocation13_spill]] %s5218_s14 }
  0x17   :  { %5878 = sst [smem:[#allocation14_spill]] %s5223_s19 }
  0x18   :  { %5879 = sst [smem:[#allocation15_spill]] %s5228_s24 }
  0x19   :  { %s5238_s6 = sld [smem:[%s5834_s0 + %s5134_s1]]  }
  0x1a   :  { %s5243_s12 = sld [smem:[%s5834_s0 + %s5135_s7]]   ;;  %s5139_s7 = smov 18  }
  0x1b   :  { %s5248_s20 = sld [smem:[%s5834_s0 + %s5136_s15]]   ;;  %s5140_s15 = smov 19  }
  0x1c   :  { %s5253_s27 = sld [smem:[%s5834_s0 + %s5137_s22]]   ;;  %s5141_s22 = smov 20  }
  0x1d   :  { %s5258_s4 = sld [smem:[%s5834_s0 + %s5138_s28]]   ;;  %s5142_s28 = smov 21  }
  0x1e   :  { %s5263_s21 = sld [smem:[%s5834_s0 + %s5139_s7]]   ;;  %s5143_s7 = smov 22  }
  0x1f   :  { %5880 = sst [smem:[#allocation16_spill]] %s5238_s6 }
  0x20   :  { %5881 = sst [smem:[#allocation17_spill]] %s5243_s12 }
  0x21   :  { %5882 = sst [smem:[#allocation18_spill]] %s5248_s20 }
  0x22   :  { %s5268_s17 = sld [smem:[%s5834_s0 + %s5140_s15]]   ;;  %s5144_s15 = smov 23  }
  0x23   :  { %5883 = sst [smem:[#allocation19_spill]] %s5258_s4 }
  0x24   :  { %5884 = sst [smem:[#allocation20_spill]] %s5263_s21 }
  0x25   :  { %s5273_s13 = sld [smem:[%s5834_s0 + %s5141_s22]]   ;;  %s5145_s22 = smov 24  }
  0x26   :  { %s5278_s4 = sld [smem:[%s5834_s0 + %s5142_s28]]   ;;  %s5146_s28 = smov 25  }
  0x27   :  { %s5283_s21 = sld [smem:[%s5834_s0 + %s5143_s7]]   ;;  %s5147_s7 = smov 26  }
  0x28   :  { %5885 = sst [smem:[#allocation21_spill]] %s5268_s17 }
  0x29   :  { %s5288_s17 = sld [smem:[%s5834_s0 + %s5144_s15]]   ;;  %s5148_s15 = smov 27  }
  0x2b   :  { %5886 = sst [smem:[#allocation22_spill]] %s5273_s13 }
  0x2c   :  { %5887 = sst [smem:[#allocation23_spill]] %s5278_s4 }
  0x2d   :  { %5888 = sst [smem:[#allocation24_spill]] %s5283_s21 }
  0x2e   :  { %s5293_s13 = sld [smem:[%s5834_s0 + %s5145_s22]]   ;;  %s5149_s22 = smov 28  }
  0x2f   :  { %5889 = sst [smem:[#allocation25_spill]] %s5288_s17 }
  0x30   :  { %s5298_s4 = sld [smem:[%s5834_s0 + %s5146_s28]]   ;;  %s5150_s28 = smov 29  }
  0x31   :  { %s5303_s21 = sld [smem:[%s5834_s0 + %s5147_s7]]   ;;  %s5151_s7 = smov 30  }
  0x32   :  { %s5308_s17 = sld [smem:[%s5834_s0 + %s5148_s15]]   ;;  %s5152_s15 = smov 31  }
  0x34   :  { %5890 = sst [smem:[#allocation26_spill]] %s5293_s13 }
  0x35   :  { %s5313_s13 = sld [smem:[%s5834_s0 + %s5149_s22]]   ;;  %s5153_s22 = smov 32  }
  0x36   :  { %5891 = sst [smem:[#allocation27_spill]] %s5298_s4 }
  0x37   :  { %5892 = sst [smem:[#allocation28_spill]] %s5303_s21 }
  0x38   :  { %5893 = sst [smem:[#allocation29_spill]] %s5308_s17 }
  0x39   :  { %s5318_s4 = sld [smem:[%s5834_s0 + %s5150_s28]]   ;;  %s5154_s28 = smov 33  }
  0x3a   :  { %s5323_s21 = sld [smem:[%s5834_s0 + %s5151_s7]]   ;;  %s5155_s7 = smov 34  }
  0x3b   :  { %5894 = sst [smem:[#allocation30_spill]] %s5313_s13 }
  0x3c   :  { %s5328_s17 = sld [smem:[%s5834_s0 + %s5152_s15]]   ;;  %s5156_s15 = smov 35  }
  0x3d   :  { %s5333_s13 = sld [smem:[%s5834_s0 + %s5153_s22]]   ;;  %s5157_s22 = smov 36  }
  0x3f   :  { %5895 = sst [smem:[#allocation31_spill]] %s5318_s4 }
  0x40   :  { %5896 = sst [smem:[#allocation32_spill]] %s5323_s21 }
  0x41   :  { %s5338_s4 = sld [smem:[%s5834_s0 + %s5154_s28]]   ;;  %s5158_s28 = smov 37  }
  0x42   :  { %5897 = sst [smem:[#allocation33_spill]] %s5328_s17 }
  0x43   :  { %5898 = sst [smem:[#allocation34_spill]] %s5333_s13 }
  0x44   :  { %s5343_s21 = sld [smem:[%s5834_s0 + %s5155_s7]]   ;;  %s5159_s7 = smov 38  }
  0x45   :  { %s5348_s17 = sld [smem:[%s5834_s0 + %s5156_s15]]  }
  0x46   :  { %s5353_s13 = sld [smem:[%s5834_s0 + %s5157_s22]]  }
  0x47   :  { %5899 = sst [smem:[#allocation35_spill]] %s5338_s4 }
  0x48   :  { %s5358_s4 = sld [smem:[%s5834_s0 + %s5158_s28]]  }
  0x4a   :  { %5900 = sst [smem:[#allocation36_spill]] %s5343_s21 }
  0x4b   :  { %5901 = sst [smem:[#allocation37_spill]] %s5348_s17 }
  0x4c   :  { %s5363_s21 = sld [smem:[%s5834_s0 + %s5159_s7]]  }
  0x4d   :  { %83 = vsyncpa [#allocation3], 0 }
  0x4e   :  { %85 = vsyncpa [#allocation3 + $0x1], 0  ;;  %s5365_s15 = smov 0   ;;  %s5367_s16 = smov 0  }
  0x4f   :  { %s5369_s18 = smov 0   ;;  %s5371_s22 = smov 0  }
  0x50 LB: > { %s5902_s17 = sld [smem:[#allocation37_spill]]  ;;  %s5386_s0 = sadd.s32 4294967295, %s5120_s22   ;;  %s5108_s15 = sphi %s5365_s15, %s5937_s15   ;;  %s5120_s22 = sphi %s5371_s22, %s5940_s22   ;;  %s5116_s18 = sphi %s5369_s18, %s5939_s18   ;;  %s5112_s16 = sphi %s5367_s16, %s5938_s16  }
  0x51   : > { %s5903_s24 = sld [smem:[#allocation15_spill]]  ;;  %s4087_s23 = sadd.s32 4294967294, %s5120_s22  }
  0x52   : > { %s5904_s20 = sld [smem:[#allocation18_spill]]  ;;  %s5390_s26 = sadd.s32 1, %s5120_s22  }
  0x53   : > { %s5905_s19 = sld [smem:[#allocation14_spill]]  ;;  %s879_s28 = sadd.s32 1, %s5116_s18 }
  0x54   : > { %s5906_s14 = sld [smem:[#allocation13_spill]]  ;;  %s876_s1 = ssub.s32 %s5120_s22, %s5390_s26 }
  0x55   : > { %s5907_s12 = sld [smem:[#allocation17_spill]]  ;;  %p889_p0 = scmp.ne.s32.totalorder %s5116_s18, %s5112_s16 }
  0x56   : > { %s5908_s8 = sld [smem:[#allocation12_spill]]  ;;  %p877_p1 = scmp.eq.s32.totalorder %s876_s1, 0 }
  0x57   : > { %s5909_s6 = sld [smem:[#allocation16_spill]]  ;;  %p890_p2 = scmp.eq.s32.totalorder %s5386_s0, 1 }
  0x58   : > { %s5910_s3 = sld [smem:[#allocation11_spill]]  ;;  %p895_p3 = scmp.ne.s32.totalorder %s5112_s16, %s5108_s15 }
  0x59   : > { %p896_p4 = scmp.eq.s32.totalorder %s4087_s23, 1  ;;  %p5403_p5 = por %p890_p2, %p889_p0 }
  0x5a   : > { %s5401_s2 = scalar_select %p877_p1, %s5116_s18, %s879_s28  }
  0x5b   : > { %p5407_p6 = por %p896_p4, %p895_p3  ;;  %p4090_p7 = scmp.ge.s32.totalorder %s5120_s22, 1 }
  0x5c   : > { %p1092_p8 = scmp.lt.s32.totalorder %s5120_s22, 3 }
  0x5e   : > { %p1093_p9 = pnand %p4090_p7, %p1092_p8 }
  0x5f   : > { %s5913_s5 = sld [smem:[#allocation5_spill]] (!%p1093_p9)  ;;  %p1205_p10 = scmp.lt.s32.totalorder (!%p1093_p9), %s5386_s0, 1 }
  0x60   : > { %1096 = sbr.rel (%p1093_p9) target bundleno = 7777 (0x1e61), region = 164  ;;  %s5914_s25 = sld [smem:[#allocation10_spill]] (!%p1093_p9) }
  0x61   : > { %s5915_s9 = sld [smem:[#allocation6_spill]] (!%p1093_p9) }
  0x65   : > { %s5415_s11 = scalar_select %p1205_p10, %s5386_s0, 1  ;;  %vm1233_vm0 = vcmask 261120   ;;  %v5160_v2 = vmov 32.0   ;;  %v4747_v14 = vld [vmem:[%s5910_s3 + $0x8] sm:$0xff]  ;;  %v4749_v15 = vld [vmem:[%s5910_s3 + $0x18] sm:$0xff]  ;;  %v4746_v18 = vld [vmem:[%s5910_s3] sm:$0xff] }
  0x66   : > { %4990 = vrcp.f32 %v5160_v2  ;;  %v4751_v16 = vld [vmem:[%s5910_s3 + $0x28] sm:$0xff]  ;;  %1341 = vmatpush.bf16.msra.mxu3 %v4747_v14  ;;  %1366 = vmatpush.bf16.msra.mxu1 %v4749_v15  ;;  %v4748_v19 = vld [vmem:[%s5910_s3 + $0x10] sm:$0xff]  ;;  %v4750_v20 = vld [vmem:[%s5910_s3 + $0x20] sm:$0xff]  ;;  %vm1565_vm5 = vcmask 1043456   ;;  %vm1489_vm6 = vcmask 130048   ;;  %vm1535_vm7 = vcmask 64512  }
  0x67   : > { %s5418_s23 = sshll.u32 %s5415_s11, 3  ;;  %v4755_v17 = vld [vmem:[%s5910_s3 + $0x48] sm:$0xff]  ;;  %1397 = vmatpush.bf16.msra.mxu2 %v4751_v16  ;;  %v4754_v21 = vld [vmem:[%s5910_s3 + $0x40] sm:$0xff]  ;;  %v4753_v23 = vld [vmem:[%s5910_s3 + $0x38] sm:$0xff]  ;;  %s1211_s1 = scalar_lea.vmem %s5915_s9, %s5415_s11  ;;  %vm1805_vm15 = vcmask 523264  }
  0x68   : > { %s1208_s28 = scalar_lea.vmem %s5913_s5, %s5418_s23  ;;  %1453 = vmatpush.bf16.msra.mxu0 %v4755_v17  ;;  %v4757_v24 = vld [vmem:[%s5910_s3 + $0x58] sm:$0xff]  ;;  %v4752_v26 = vld [vmem:[%s5910_s3 + $0x30] sm:$0xff]  ;;  %v4933_v35 = vld [vmem:[%s5914_s25] ss:$0 sm:$0xff]  ;;  %s5919_s5 = sld [smem:[#allocation7_spill]] }
  0x69   : > { %v1230_v0 = vld [vmem:[%s1208_s28] sm:$0xff]  ;;  %v4756_v27 = vld [vmem:[%s5910_s3 + $0x50] sm:$0xff]  ;;  %s5916_s28 = sld [smem:[#allocation19_spill]] }
  0x6a   : > { %v1234_v1 = vsel %vm1233_vm0, %v1230_v0, 0.0  ;;  %1342 = vmatpush.bf16.msra.mxu3 %v4746_v18  ;;  %1367 = vmatpush.bf16.msra.mxu1 %v4748_v19  ;;  %v4934_v37 = vld [vmem:[%s5203_s29] ss:$0 sm:$0xff]  ;;  %v4936_v42 = vld [vmem:[%s5908_s8 + $0x4] ss:$0 sm:$0xff]  ;;  %s5933_s25 = sld [smem:[#allocation34_spill]] }
  0x6b   : > { %1235 = vadd.xlane.f32.xlu0 %v1234_v1  ;;  %1398 = vmatpush.bf16.msra.mxu2 %v4750_v20  ;;  %v4938_v47 = vld [vmem:[%s5908_s8 + $0x2] ss:$0 sm:$0xff]  ;;  %v4937_v54 = vld [vmem:[%s5908_s8] ss:$0 sm:$0xff]  ;;  %v4939_v57 = vld [vmem:[%s5908_s8 + $0x5] ss:$0 sm:$0xff] }
  0x6c   : > { %v4991_v3 = vpop.eup %4990  ;;  %1454 = vmatpush.bf16.msra.mxu0 %v4754_v21  ;;  %v4940_v1 = vld [vmem:[%s5908_s8 + $0x3] ss:$0 sm:$0xff] }
  0x6d   : > { %v1238_v4 = vmul.f32 32.0, %v4991_v3  ;;  %vm1242_vm1 = vweird.f32 %v4991_v3 }
  0x6e   : > { %1422 = vmatpush.bf16.msrb.mxu3 %v4753_v23  ;;  %1478 = vmatpush.bf16.msrb.mxu1 %v4757_v24 }
  0x6f   : > { %v1239_v5 = vsub.f32 1.0, %v1238_v4 }
  0x71   : > { %v1240_v6 = vmul.f32 %v4991_v3, %v1239_v5 }
  0x72   : > { %1423 = vmatpush.bf16.msrb.mxu3 %v4752_v26  ;;  %1479 = vmatpush.bf16.msrb.mxu1 %v4756_v27 }
  0x73   : > { %v1241_v7 = vadd.f32 %v4991_v3, %v1240_v6  ;;  %v4935_v6 = vld [vmem:[%s5908_s8 + $0x1] ss:$0 sm:$0xff] }
  0x75   : > { %v5423_v8 = vsel %vm1242_vm1, %v4991_v3, %v1241_v7 }
  0xde   : > { %v1236_v9 = vpop.xlane.xlu0 %1235 }
  0xdf   : > { %v1244_v10 = vmul.f32 %v5423_v8, %v1236_v9 }
  0xe1   : > { %v1245_v11 = vsub.f32 %v1230_v0, %v1244_v10 }
  0xe3   : > { %v1246_v12 = vmul.f32 %v1245_v11, %v1245_v11 }
  0xe5   : > { %v1247_v13 = vsel %vm1233_vm0, %v1246_v12, 0.0 }
  0xe6   : > { %1248 = vadd.xlane.f32.xlu0 %v1247_v13  ;;  %v1271_v13 = vld [vmem:[%s1211_s1] sm:$0x1]  ;;  %s5917_s1 = sld [smem:[#allocation20_spill]] }
  0xe7   : > { %v1272_v14 = vsub.f32 1.0, %v1271_v13 }
  0xe9   : > { %v1273_v15 = vmul.f32 -1e+09, %v1272_v14 }
  0xeb   : > { %v5466_v16 = vperm.slane %v1273_v15, 0 }
 0x159   : > { %v1249_v22 = vpop.xlane.xlu0 %1248 }
 0x15a   : > { %v1250_v25 = vmul.f32 %v1249_v22, %v5423_v8 }
 0x15c   : > { %v1251_v28 = vadd.f32 1e-12, %v1250_v25 }
 0x15e   : > { %4992 = vrsqrt.f32 %v1251_v28  ;;  %vm1258_vm3 = vweird.f32 %v1251_v28 }
 0x164   : > { %v4993_v29 = vpop.eup %4992 }
 0x165   : > { %v1253_v30 = vmul.f32 %v4993_v29, %v1251_v28  ;;  %vm1259_vm2 = vweird.f32 %v4993_v29 }
 0x166   : > { %vm1260_vm4 = vmor %vm1258_vm3, %vm1259_vm2 }
 0x167   : > { %v1254_v31 = vmul.f32 %v4993_v29, %v1253_v30 }
 0x169   : > { %v1255_v32 = vmul.f32 0.5, %v1254_v31 }
 0x16b   : > { %v1256_v33 = vsub.f32 1.5, %v1255_v32 }
 0x16d   : > { %v1257_v34 = vmul.f32 %v4993_v29, %v1256_v33 }
 0x16f   : > { %v1261_v36 = vsel %vm1260_vm4, %v4993_v29, %v1257_v34 }
 0x170   : > { %v1262_v38 = vmul.f32 %v1261_v36, %v1245_v11 }
 0x172   : > { %v1266_v39 = vmul.f32 %v4933_v35, %v1262_v38 }
 0x174   : > { %v5442_v40 = vadd.f32 %v4934_v37, %v1266_v39 }
 0x176   : > { %v1313_v41 = vpack.c.bf16 %v5442_v40, %v5442_v40 }
 0x178   : > { %4123 = vmatmul.msk.bf16.vlgmr.msra.gmra.mxu3 %vm1233_vm0, %v1313_v41  ;;  %4132 = vmatmul.msk.bf16.vlgmr.msra.gmra.mxu1 %vm1233_vm0, %v1313_v41 }
 0x179   : > { %4141 = vmatmul.msk.bf16.vlgmr.msra.gmra.mxu2 %vm1233_vm0, %v1313_v41  ;;  %4159 = vmatmul.msk.bf16.vlgmr.msra.gmra.mxu0 %vm1233_vm0, %v1313_v41 }
 0x188   : > { %4150 = vmatmul.msk.bf16.vlgmr.msrb.gmra.mxu3 %vm1233_vm0, %v1313_v41  ;;  %4168 = vmatmul.msk.bf16.vlgmr.msrb.gmra.mxu1 %vm1233_vm0, %v1313_v41 }
 0x1f5   : > { %v1369_v43 = vpop.f32.mrf.mxu1 }
 0x1f6   : > { %v1456_v44 = vpop.f32.mrf.mxu0  ;;  %v1370_v10 = vadd.f32 %v4935_v6, %v1369_v43  ;;  %v4761_v6 = vld [vmem:[%s5909_s6 + $0x8] sm:$0xff] }
 0x1f7   : > { %v1457_v45 = vadd.f32 %v4936_v42, %v1456_v44 }
 0x1f8   : > { %v1486_v12 = vpack.c.bf16 %v1370_v10, %v1370_v10 }
 0x1f9   : > { %v1560_v46 = vpack.c.bf16 %v1457_v45, %v1457_v45 }
 0x1fb   : > { %v1344_v48 = vpop.f32.mrf.mxu3  ;;  %v1567_v49 = vsel %vm1565_vm5, %v1560_v46, 0  ;;  %v4758_v46 = vld [vmem:[%s5906_s14] sm:$0xff] }
 0x1fc   : > { %v1400_v50 = vpop.f32.mrf.mxu2  ;;  %1576 = vmatpush.bf16.msrb.mxu0 %v1567_v49  ;;  %v1345_v58 = vadd.f32 %v4937_v54, %v1344_v48 }
 0x1fd   : > { %v1401_v51 = vadd.f32 %v4938_v47, %v1400_v50  ;;  %v1371_v52 = vpop.f32.mrf.mxu1  ;;  %v4759_v47 = vld [vmem:[%s5906_s14 + $0x8] sm:$0xff] }
 0x1fe   : > { %v1458_v53 = vpop.f32.mrf.mxu0  ;;  %v1485_v63 = vpack.c.bf16 %v1345_v58, %v1345_v58 }
 0x1ff   : > { %v1487_v55 = vpack.c.bf16 %v1401_v51, %v1401_v51 }
 0x200   : > { %1717 = vmatpush.bf16.msra.mxu0 %v4761_v6 }
 0x201   : > { %v1494_v56 = vsel %vm1489_vm6, %v1487_v55, 0 }
 0x202   : > { %1503 = vmatpush.bf16.xpose.msrb.mxu2 %v1494_v56 }
 0x203   : > { %v1346_v59 = vpop.f32.mrf.mxu3 }
 0x204   : > { %v1402_v60 = vpop.f32.mrf.mxu2 }
 0x205   : > { %v1481_v61 = vpop.f32.mrf.mxu1 }
 0x206   : > { %v1482_v62 = vadd.f32 %v4939_v57, %v1481_v61  ;;  %v4941_v57 = vld [vmem:[%s5905_s19] ss:$0 sm:$0xff] }
 0x208   : > { %v1561_v0 = vpack.c.bf16 %v1482_v62, %v1482_v62 }
 0x209   : > { %4169 = vmatmul.msk.bf16.vlgmr.msrb.gmra.mxu2 %vm1489_vm6, %v1485_v63 }
 0x20a   : > { %v1586_v2 = vsel %vm1565_vm5, %v1561_v0, 0  ;;  %1619 = vmatpush.bf16.msra.mxu2 %v4758_v46 }
 0x20b   : > { %v1425_v3 = vpop.f32.mrf.mxu3  ;;  %1595 = vmatpush.bf16.msra.mxu1 %v1586_v2 }
 0x20c   : > { %v1426_v4 = vadd.f32 %v4940_v1, %v1425_v3 }
 0x20d   : > { %v1483_v5 = vpop.f32.mrf.mxu1 }
 0x20e   : > { %v1488_v7 = vpack.c.bf16 %v1426_v4, %v1426_v4 }
 0x210   : > { %v1513_v9 = vsel %vm1489_vm6, %v1488_v7, 0  ;;  %v4760_v7 = vld [vmem:[%s5909_s6] sm:$0xff] }
 0x211   : > { %1522 = vmatpush.bf16.xpose.msra.mxu3 %v1513_v9  ;;  %1718 = vmatpush.bf16.msra.mxu0 %v4760_v7 }
 0x213   : > { %v1427_v11 = vpop.f32.mrf.mxu3 }
 0x218   : > { %4170 = vmatmul.msk.bf16.vlgmr.msra.gmra.mxu3 %vm1489_vm6, %v1486_v12 }
 0x219   : > { %1641 = vmatpush.bf16.msrb.mxu3 %v4759_v47  ;;  %v4762_v47 = vld [vmem:[%s5904_s20] sm:$0xff] }
 0x28c   : > { %v1505_v17 = vpop.f32.mrf.mxu2 }
 0x28d   : > { %v1528_v18 = vmul.f32 0.25, %v1505_v17 }
 0x28f   : > { %v1533_v19 = vadd.f32 %v5466_v16, %v1528_v18  ;;  %v4942_v18 = vld [vmem:[%s5903_s24] ss:$0 sm:$0xff] }
 0x291   : > { %v1536_v20 = vsel %vm1535_vm7, %v1533_v19, -inf }
 0x292   : > { %1537 = vmax.xlane.f32.xlu1 %v1536_v20  ;;  %v4943_v20 = vld [vmem:[%s5233_s30] ss:$0 sm:$0xff] }
 0x294   : > { %v1507_v21 = vpop.f32.mrf.mxu2 }
 0x29b   : > { %v1524_v22 = vpop.f32.mrf.mxu3 }
 0x29c   : > { %v1529_v23 = vmul.f32 0.25, %v1524_v22 }
 0x29e   : > { %v1534_v24 = vadd.f32 %v5466_v16, %v1529_v23 }
 0x2a0   : > { %v1539_v25 = vsel %vm1535_vm7, %v1534_v24, -inf }
 0x2a1   : > { %1540 = vmax.xlane.f32.xlu1 %v1539_v25  ;;  %v4944_v25 = vld [vmem:[%s5907_s12] ss:$0 sm:$0xff] }
 0x2a3   : > { %v1526_v26 = vpop.f32.mrf.mxu3 }
 0x305   : > { %v1538_v27 = vpop.xlane.xlu1 %1537 }
 0x306   : > { %v1542_v28 = vsub.f32 %v1533_v19, %v1538_v27 }
 0x308   : > { %v1544_v29 = vmul.f32 1.442695, %v1542_v28 }
 0x30a   : > { %4994 = vpow2.f32 %v1544_v29 }
 0x310   : > { %v4995_v30 = vpop.eup %4994 }
 0x311   : > { %v1548_v31 = vsel %vm1535_vm7, %v4995_v30, 0.0 }
 0x312   : > { %1549 = vadd.xlane.f32.xlu2 %v1548_v31 }
 0x314   : > { %v1541_v32 = vpop.xlane.xlu1 %1540 }
 0x315   : > { %v1543_v33 = vsub.f32 %v1534_v24, %v1541_v32  ;;  %v4765_v32 = vld [vmem:[%s5904_s20 + $0x18] sm:$0xff] }
 0x316   : > { %1813 = vmatpush.bf16.msrb.mxu1 %v4765_v32  ;;  %v4777_v32 = vld [vmem:[%s5910_s3 + $0xb8] sm:$0xff] }
 0x317   : > { %v1546_v34 = vmul.f32 1.442695, %v1543_v33 }
 0x319   : > { %4996 = vpow2.f32 %v1546_v34 }
 0x31f   : > { %v4997_v35 = vpop.eup %4996 }
 0x320   : > { %v1551_v36 = vsel %vm1535_vm7, %v4997_v35, 0.0 }
 0x321   : > { %1552 = vadd.xlane.f32.xlu2 %v1551_v36 }
 0x385   : > { %v1550_v37 = vpop.xlane.xlu2 %1549 }
 0x386   : > { %4998 = vrcp.f32 %v1550_v37  ;;  %v4764_v37 = vld [vmem:[%s5904_s20 + $0x10] sm:$0xff] }
 0x387   : > { %1814 = vmatpush.bf16.msrb.mxu1 %v4764_v37 }
 0x38c   : > { %v4999_v38 = vpop.eup %4998 }
 0x38d   : > { %v1556_v39 = vmul.f32 %v4999_v38, %v4995_v30 }
 0x38f   : > { %v1558_v41 = vpack.c.bf16 %v1556_v39, %v1556_v39 }
 0x391   : > { %4171 = vmatmul.msk.bf16.vlgmr.msrb.gmra.mxu0 %vm1535_vm7, %v1558_v41 }
 0x394   : > { %v1553_v42 = vpop.xlane.xlu2 %1552 }
 0x395   : > { %5000 = vrcp.f32 %v1553_v42 }
 0x39b   : > { %v5001_v43 = vpop.eup %5000 }
 0x39c   : > { %v1557_v44 = vmul.f32 %v5001_v43, %v4997_v35  ;;  %v4763_v43 = vld [vmem:[%s5904_s20 + $0x8] sm:$0xff] }
 0x39d   : > { %1815 = vmatpush.bf16.msrb.mxu1 %v4763_v43 }
 0x39e   : > { %v1559_v45 = vpack.c.bf16 %v1557_v44, %v1557_v44 }
 0x3a0   : > { %4172 = vmatmul.msk.bf16.vlgmr.msra.gmra.mxu1 %vm1535_vm7, %v1559_v45 }
 0x3a1   : > { %1816 = vmatpush.bf16.msrb.mxu1 %v4762_v47 }
 0x40e   : > { %v1578_v48 = vpop.f32.mrf.mxu0 }
 0x40f   : > { %v1601_v49 = vpack.c.bf16 %v1578_v48, %v1578_v48 }
 0x411   : > { %4177 = vmatmul.msk.bf16.vlgmr.msra.gmra.mxu2 %vm1489_vm6, %v1601_v49 }
 0x416   : > { %v1580_v50 = vpop.f32.mrf.mxu0 }
 0x41d   : > { %v1597_v51 = vpop.f32.mrf.mxu1 }
 0x41e   : > { %v1602_v52 = vpack.c.bf16 %v1597_v51, %v1597_v51 }
 0x420   : > { %4182 = vmatmul.msk.bf16.vlgmr.msrb.gmra.mxu3 %vm1489_vm6, %v1602_v52 }
 0x425   : > { %v1599_v53 = vpop.f32.mrf.mxu1 }
 0x494   : > { %v1621_v54 = vpop.f32.mrf.mxu2 }
 0x495   : > { %v1647_v58 = vsel %vm1233_vm0, %v1621_v54, 0.0 }
 0x49c   : > { %v1623_v55 = vpop.f32.mrf.mxu2 }
 0x4a3   : > { %v1643_v56 = vpop.f32.mrf.mxu3 }
 0x4a4   : > { %v1648_v59 = vsel %vm1233_vm0, %v1643_v56, 0.0 }
 0x4a5   : > { %v1649_v60 = vadd.f32 %v1648_v59, %v1647_v58 }
 0x4a7   : > { %v1653_v61 = vadd.f32 %v4941_v57, %v1649_v60 }
 0x4a9   : > { %v1654_v62 = vadd.f32 %v1653_v61, %v5442_v40 }
 0x4ab   : > { %v1645_v63 = vpop.f32.mrf.mxu3  ;;  %v1657_v0 = vsel %vm1233_vm0, %v1654_v62, 0.0 }
 0x4ac   : > { %1658 = vadd.xlane.f32.xlu0 %v1657_v0 }
 0x51f   : > { %v1659_v1 = vpop.xlane.xlu0 %1658 }
 0x520   : > { %v1660_v2 = vmul.f32 %v1659_v1, %v5423_v8 }
 0x522   : > { %v1661_v3 = vsub.f32 %v1654_v62, %v1660_v2 }
 0x524   : > { %v1662_v4 = vmul.f32 %v1661_v3, %v1661_v3 }
 0x526   : > { %v1663_v5 = vsel %vm1233_vm0, %v1662_v4, 0.0 }
 0x527   : > { %1664 = vadd.xlane.f32.xlu1 %v1663_v5 }
 0x59a   : > { %v1665_v9 = vpop.xlane.xlu1 %1664 }
 0x59b   : > { %v1666_v40 = vmul.f32 %v1665_v9, %v5423_v8 }
 0x59d   : > { %v1667_v10 = vadd.f32 1e-12, %v1666_v40 }
 0x59f   : > { %5002 = vrsqrt.f32 %v1667_v10  ;;  %vm1674_vm9 = vweird.f32 %v1667_v10 }
 0x5a5   : > { %v5003_v11 = vpop.eup %5002 }
 0x5a6   : > { %v1669_v12 = vmul.f32 %v5003_v11, %v1667_v10  ;;  %vm1675_vm8 = vweird.f32 %v5003_v11  ;;  %v4945_v10 = vld [vmem:[%s5253_s27] ss:$0 sm:$0xff] }
 0x5a7   : > { %vm1676_vm10 = vmor %vm1674_vm9, %vm1675_vm8 }
 0x5a8   : > { %v1670_v13 = vmul.f32 %v5003_v11, %v1669_v12 }
 0x5aa   : > { %v1671_v14 = vmul.f32 0.5, %v1670_v13 }
 0x5ac   : > { %v1672_v15 = vsub.f32 1.5, %v1671_v14 }
 0x5ae   : > { %v1673_v17 = vmul.f32 %v5003_v11, %v1672_v15 }
 0x5b0   : > { %v1677_v19 = vsel %vm1676_vm10, %v5003_v11, %v1673_v17 }
 0x5b1   : > { %v1678_v21 = vmul.f32 %v1677_v19, %v1661_v3 }
 0x5b3   : > { %v1682_v22 = vmul.f32 %v4942_v18, %v1678_v21 }
 0x5b5   : > { %v5492_v23 = vadd.f32 %v4943_v20, %v1682_v22  ;;  %v4767_v22 = vld [vmem:[%s5910_s3 + $0x68] sm:$0xff] }
 0x5b6   : > { %1926 = vmatpush.bf16.msrb.mxu2 %v4767_v22 }
 0x5b7   : > { %v1691_v24 = vpack.c.bf16 %v5492_v23, %v5492_v23 }
 0x5b9   : > { %4191 = vmatmul.msk.bf16.vlgmr.msra.gmra.mxu0 %vm1233_vm0, %v1691_v24  ;;  %v4769_v24 = vld [vmem:[%s5910_s3 + $0x78] sm:$0xff] }
 0x5ba   : > { %1951 = vmatpush.bf16.msra.mxu3 %v4769_v24 }
 0x636   : > { %v1720_v26 = vpop.f32.mrf.mxu0 }
 0x637   : > { %v1721_v27 = vadd.f32 %v4944_v25, %v1720_v26  ;;  %v4773_v25 = vld [vmem:[%s5910_s3 + $0x98] sm:$0xff]  ;;  %v4766_v26 = vld [vmem:[%s5910_s3 + $0x60] sm:$0xff] }
 0x638   : > { %2007 = vmatpush.bf16.msra.mxu1 %v4773_v25  ;;  %1927 = vmatpush.bf16.msrb.mxu2 %v4766_v26 }
 0x639   : > { %v1725_v28 = vmul.f32 0.70710677, %v1721_v27  ;;  %v1724_v6 = vmul.f32 0.5, %v1721_v27  ;;  %v4768_v27 = vld [vmem:[%s5910_s3 + $0x70] sm:$0xff] }
 0x63a   : > { %1952 = vmatpush.bf16.msra.mxu3 %v4768_v27 }
 0x63b   : > { %v1726_v29 = vmul.f32 %v1725_v28, %v1725_v28 }
 0x63d   : > { %v1727_v30 = vmin.f32 %v1726_v29, 16.0  ;;  %v4772_v29 = vld [vmem:[%s5910_s3 + $0x90] sm:$0xff] }
 0x63e   : > { %v1722_v31 = vpop.f32.mrf.mxu0  ;;  %2008 = vmatpush.bf16.msra.mxu1 %v4772_v29  ;;  %2063 = vmatpush.bf16.msrb.mxu3 %v4777_v32 }
 0x63f   : > { %v1728_v33 = vmul.f32 2.1237322e-06, %v1727_v30  ;;  %v1739_v34 = vmul.f32 3.8918573e-05, %v1727_v30  ;;  %v4775_v31 = vld [vmem:[%s5910_s3 + $0xa8] sm:$0xff] }
 0x640   : > { %2038 = vmatpush.bf16.msra.mxu2 %v4775_v31 }
 0x641   : > { %v1729_v35 = vadd.f32 0.00028619796, %v1728_v33  ;;  %v1740_v36 = vadd.f32 0.001143296, %v1739_v34  ;;  %v4774_v34 = vld [vmem:[%s5910_s3 + $0xa0] sm:$0xff] }
 0x643   : > { %v1730_v38 = vmul.f32 %v1729_v35, %v1727_v30  ;;  %v1741_v39 = vmul.f32 %v1740_v36, %v1727_v30  ;;  %v4776_v35 = vld [vmem:[%s5910_s3 + $0xb0] sm:$0xff] }
 0x644   : > { %2039 = vmatpush.bf16.msra.mxu2 %v4774_v34  ;;  %2064 = vmatpush.bf16.msrb.mxu3 %v4776_v35 }
 0x645   : > { %v1742_v41 = vadd.f32 0.014752088, %v1741_v39  ;;  %v1731_v42 = vadd.f32 0.0036580483, %v1730_v38 }
 0x647   : > { %v1743_v44 = vmul.f32 %v1742_v41, %v1727_v30  ;;  %v1732_v46 = vmul.f32 %v1731_v42, %v1727_v30 }
 0x649   : > { %v1744_v45 = vadd.f32 0.112945676, %v1743_v44  ;;  %v1733_v50 = vadd.f32 0.05243302, %v1732_v46  ;;  %v4946_v44 = vld [vmem:[%s5916_s28] ss:$0 sm:$0xff] }
 0x64a   : > { %v4947_v46 = vld [vmem:[%s5917_s1] ss:$0 sm:$0xff] }
 0x64b   : > { %v1745_v48 = vmul.f32 %v1744_v45, %v1727_v30  ;;  %v1734_v53 = vmul.f32 %v1733_v50, %v1727_v30 }
 0x64d   : > { %v1746_v49 = vadd.f32 0.4994258, %v1745_v48  ;;  %v1735_v54 = vadd.f32 0.18741608, %v1734_v53 }
 0x64f   : > { %v1747_v51 = vmul.f32 %v1746_v49, %v1727_v30  ;;  %v1736_v56 = vmul.f32 %v1735_v54, %v1727_v30 }
 0x651   : > { %v1748_v52 = vadd.f32 1.0, %v1747_v51  ;;  %v1737_v60 = vadd.f32 1.1283791, %v1736_v56  ;;  %v4948_v51 = vld [vmem:[%s5908_s8 + $0x8] ss:$0 sm:$0xff] }
 0x653   : > { %5004 = vrcp.f32 %v1748_v52  ;;  %v1760_v59 = vand.u32 2147483648, %v1748_v52  ;;  %v1758_v62 = vand.u32 2147483647, %v1748_v52  ;;  %vm1754_vm12 = vweird.f32 %v1748_v52 }
 0x654   : > { %v1738_v1 = vmul.f32 %v1737_v60, %v1725_v28  ;;  %v4770_v28 = vld [vmem:[%s5910_s3 + $0x80] sm:$0xff] }
 0x655   : > { %v1761_v0 = vor.u32 1.1754944e-38, %v1760_v59  ;;  %vm1759_vm14 = vcmp.eq.f32.partialorder %v1758_v62, 8.507059e+37  ;;  %v4950_v59 = vld [vmem:[%s5908_s8 + $0x6] ss:$0 sm:$0xff]  ;;  %v4951_v60 = vld [vmem:[%s5908_s8 + $0x7] ss:$0 sm:$0xff] }
 0x659   : > { %v5005_v55 = vpop.eup %5004 }
 0x65a   : > { %v1750_v57 = vmul.f32 %v5005_v55, %v1748_v52  ;;  %vm1755_vm11 = vweird.f32 %v5005_v55  ;;  %v4949_v52 = vld [vmem:[%s5908_s8 + $0x9] ss:$0 sm:$0xff] }
 0x65b   : > { %vm1756_vm13 = vmor %vm1754_vm12, %vm1755_vm11 }
 0x65c   : > { %v1751_v58 = vsub.f32 1.0, %v1750_v57 }
 0x65e   : > { %v1752_v61 = vmul.f32 %v5005_v55, %v1751_v58 }
 0x660   : > { %v1753_v63 = vadd.f32 %v5005_v55, %v1752_v61 }
 0x662   : > { %v1757_v2 = vsel %vm1756_vm13, %v5005_v55, %v1753_v63 }
 0x663   : > { %v1762_v3 = vsel %vm1759_vm14, %v1761_v0, %v1757_v2 }
 0x664   : > { %v1763_v4 = vmul.f32 %v1762_v3, %v1738_v1 }
 0x666   : > { %v4192_v5 = vclamps-f32 %v1763_v4, 1.0 }
 0x668   : > { %v1766_v7 = vadd.f32 1.0, %v4192_v5 }
 0x66a   : > { %v1767_v9 = vmul.f32 %v1766_v7, %v1724_v6 }
 0x66c   : > { %v1776_v40 = vpack.c.bf16 %v1767_v9, %v1767_v9 }
 0x66e   : > { %4209 = vmatmul.msk.bf16.vlgmr.msrb.gmra.mxu1 %vm1805_vm15, %v1776_v40  ;;  %v4952_v40 = vld [vmem:[%s5908_s8 + $0xa] ss:$0 sm:$0xff] }
 0x6eb   : > { %v1818_v11 = vpop.f32.mrf.mxu1 }
 0x6ec   : > { %v1819_v12 = vadd.f32 %v4945_v10, %v1818_v11  ;;  %v4953_v10 = vld [vmem:[%s5908_s8 + $0xb] ss:$0 sm:$0xff]  ;;  %s5921_s8 = sld [smem:[#allocation25_spill]] }
 0x6ee   : > { %v1822_v13 = vadd.f32 %v1819_v12, %v5492_v23  ;;  %v4771_v23 = vld [vmem:[%s5910_s3 + $0x88] sm:$0xff]  ;;  %s5918_s3 = sld [smem:[#allocation21_spill]] }
 0x6ef   : > { %1982 = vmatpush.bf16.msrb.mxu0 %v4771_v23 }
 0x6f0   : > { %v1825_v14 = vsel %vm1233_vm0, %v1822_v13, 0.0 }
 0x6f1   : > { %1826 = vadd.xlane.f32.xlu2 %v1825_v14 }
 0x6f3   : > { %v1820_v15 = vpop.f32.mrf.mxu1  ;;  %1983 = vmatpush.bf16.msrb.mxu0 %v4770_v28 }
 0x764   : > { %v1827_v17 = vpop.xlane.xlu2 %1826 }
 0x765   : > { %v1828_v18 = vmul.f32 %v1827_v17, %v5423_v8 }
 0x767   : > { %v1829_v19 = vsub.f32 %v1822_v13, %v1828_v18 }
 0x769   : > { %v1830_v20 = vmul.f32 %v1829_v19, %v1829_v19 }
 0x76b   : > { %v1831_v21 = vsel %vm1233_vm0, %v1830_v20, 0.0 }
 0x76c   : > { %1832 = vadd.xlane.f32.xlu0 %v1831_v21 }
 0x7df   : > { %v1833_v30 = vpop.xlane.xlu0 %1832 }
 0x7e0   : > { %v1834_v33 = vmul.f32 %v1833_v30, %v5423_v8 }
 0x7e2   : > { %v1835_v36 = vadd.f32 1e-12, %v1834_v33 }
 0x7e4   : > { %5006 = vrsqrt.f32 %v1835_v36  ;;  %vm1842_vm2 = vweird.f32 %v1835_v36 }
 0x7ea   : > { %v5007_v37 = vpop.eup %5006 }
 0x7eb   : > { %v1837_v38 = vmul.f32 %v5007_v37, %v1835_v36  ;;  %vm1843_vm1 = vweird.f32 %v5007_v37 }
 0x7ec   : > { %vm1844_vm3 = vmor %vm1842_vm2, %vm1843_vm1  ;;  %vm2495_vm1 = vcmask 392192  }
 0x7ed   : > { %v1838_v39 = vmul.f32 %v5007_v37, %v1837_v38 }
 0x7ef   : > { %v1839_v41 = vmul.f32 0.5, %v1838_v39 }
 0x7f1   : > { %v1840_v42 = vsub.f32 1.5, %v1839_v41 }
 0x7f3   : > { %v1841_v43 = vmul.f32 %v5007_v37, %v1840_v42  ;;  %v4778_v42 = vld [vmem:[%s5906_s14 + $0x10] sm:$0xff] }
 0x7f5   : > { %v1845_v45 = vsel %vm1844_vm3, %v5007_v37, %v1841_v43  ;;  %v4779_v43 = vld [vmem:[%s5906_s14 + $0x18] sm:$0xff]  ;;  %s5929_s14 = sld [smem:[#allocation29_spill]] }
 0x7f6   : > { %v1846_v47 = vmul.f32 %v1845_v45, %v1829_v19 }
 0x7f8   : > { %v1850_v48 = vmul.f32 %v4946_v44, %v1846_v47 }
 0x7fa   : > { %v5523_v49 = vadd.f32 %v4947_v46, %v1850_v48 }
 0x7fc   : > { %v1898_v50 = vpack.c.bf16 %v5523_v49, %v5523_v49 }
 0x7fe   : > { %4253 = vmatmul.msk.bf16.vlgmr.msrb.gmra.mxu2 %vm1233_vm0, %v1898_v50  ;;  %4262 = vmatmul.msk.bf16.vlgmr.msra.gmra.mxu3 %vm1233_vm0, %v1898_v50 }
 0x7ff   : > { %4271 = vmatmul.msk.bf16.vlgmr.msrb.gmra.mxu0 %vm1233_vm0, %v1898_v50  ;;  %4280 = vmatmul.msk.bf16.vlgmr.msra.gmra.mxu1 %vm1233_vm0, %v1898_v50 }
 0x80e   : > { %4289 = vmatmul.msk.bf16.vlgmr.msra.gmra.mxu2 %vm1233_vm0, %v1898_v50  ;;  %4298 = vmatmul.msk.bf16.vlgmr.msrb.gmra.mxu3 %vm1233_vm0, %v1898_v50 }
 0x87c   : > { %v1985_v53 = vpop.f32.mrf.mxu0  ;;  %v2010_v54 = vpop.f32.mrf.mxu1 }
 0x87d   : > { %v1986_v55 = vadd.f32 %v4948_v51, %v1985_v53  ;;  %v2011_v56 = vadd.f32 %v4949_v52, %v2010_v54 }
 0x87f   : > { %v2072_v57 = vpack.c.bf16 %v1986_v55, %v1986_v55  ;;  %v2073_v58 = vpack.c.bf16 %v2011_v56, %v2011_v56 }
 0x881   : > { %v2078_v61 = vsel %vm1489_vm6, %v2072_v57, 0  ;;  %v2097_v62 = vsel %vm1489_vm6, %v2073_v58, 0  ;;  %v1929_v63 = vpop.f32.mrf.mxu2  ;;  %v1954_v0 = vpop.f32.mrf.mxu3 }
 0x882   : > { %2087 = vmatpush.bf16.xpose.msra.mxu0 %v2078_v61  ;;  %2106 = vmatpush.bf16.xpose.msrb.mxu1 %v2097_v62  ;;  %v1930_v1 = vadd.f32 %v4950_v59, %v1929_v63  ;;  %v1955_v2 = vadd.f32 %v4951_v60, %v1954_v0  ;;  %v4954_v62 = vld [vmem:[%s5905_s19 + $0x1] ss:$0 sm:$0xff]  ;;  %s5930_s19 = sld [smem:[#allocation30_spill]] }
 0x884   : > { %v1987_v3 = vpop.f32.mrf.mxu0  ;;  %v2012_v4 = vpop.f32.mrf.mxu1  ;;  %v2070_v5 = vpack.c.bf16 %v1930_v1, %v1930_v1  ;;  %v2071_v6 = vpack.c.bf16 %v1955_v2, %v1955_v2 }
 0x889   : > { %4299 = vmatmul.msk.bf16.vlgmr.msra.gmra.mxu0 %vm1489_vm6, %v2070_v5  ;;  %4300 = vmatmul.msk.bf16.vlgmr.msrb.gmra.mxu1 %vm1489_vm6, %v2071_v6  ;;  %v1931_v7 = vpop.f32.mrf.mxu2  ;;  %v1956_v9 = vpop.f32.mrf.mxu3 }
 0x88a   : > { %2198 = vmatpush.bf16.msrb.mxu0 %v4778_v42  ;;  %2220 = vmatpush.bf16.msra.mxu1 %v4779_v43 }
 0x891   : > { %v2041_v11 = vpop.f32.mrf.mxu2  ;;  %v2066_v12 = vpop.f32.mrf.mxu3 }
 0x892   : > { %v2042_v13 = vadd.f32 %v4952_v40, %v2041_v11  ;;  %v2067_v14 = vadd.f32 %v4953_v10, %v2066_v12  ;;  %v4781_v11 = vld [vmem:[%s5909_s6 + $0x18] sm:$0xff]  ;;  %v4780_v12 = vld [vmem:[%s5909_s6 + $0x10] sm:$0xff]  ;;  %s5920_s6 = sld [smem:[#allocation22_spill]] }
 0x894   : > { %v2140_v15 = vpack.c.bf16 %v2042_v13, %v2042_v13  ;;  %v2141_v17 = vpack.c.bf16 %v2067_v14, %v2067_v14 }
 0x896   : > { %v2146_v18 = vsel %vm1565_vm5, %v2140_v15, 0  ;;  %v2165_v19 = vsel %vm1565_vm5, %v2141_v17, 0 }
 0x897   : > { %2155 = vmatpush.bf16.msrb.mxu2 %v2146_v18  ;;  %2174 = vmatpush.bf16.msra.mxu3 %v2165_v19 }
 0x899   : > { %v2043_v20 = vpop.f32.mrf.mxu2  ;;  %v2068_v21 = vpop.f32.mrf.mxu3 }
 0x89b   : > { %2300 = vmatpush.bf16.msra.mxu2 %v4781_v11 }
 0x89f   : > { %2301 = vmatpush.bf16.msra.mxu2 %v4780_v12 }
 0x906   : > { %v2089_v22 = vpop.f32.mrf.mxu0  ;;  %v2108_v24 = vpop.f32.mrf.mxu1 }
 0x907   : > { %v2112_v23 = vmul.f32 0.25, %v2089_v22  ;;  %v2113_v25 = vmul.f32 0.25, %v2108_v24  ;;  %v4955_v22 = vld [vmem:[%s5903_s24 + $0x1] ss:$0 sm:$0xff]  ;;  %s5932_s24 = sld [smem:[#allocation32_spill]] }
 0x909   : > { %v2115_v26 = vadd.f32 %v2113_v25, %v5466_v16  ;;  %v2114_v27 = vadd.f32 %v2112_v23, %v5466_v16  ;;  %v4956_v23 = vld [vmem:[%s5233_s30 + $0x1] ss:$0 sm:$0xff] }
 0x90b   : > { %v2119_v28 = vsel %vm1535_vm7, %v2115_v26, -inf  ;;  %v2116_v29 = vsel %vm1535_vm7, %v2114_v27, -inf }
 0x90c   : > { %2120 = vmax.xlane.f32.xlu2 %v2119_v28  ;;  %2117 = vmax.xlane.f32.xlu1 %v2116_v29  ;;  %v4957_v29 = vld [vmem:[%s5907_s12 + $0x1] ss:$0 sm:$0xff]  ;;  %s5928_s12 = sld [smem:[#allocation31_spill]] }
 0x90e   : > { %v2091_v30 = vpop.f32.mrf.mxu0  ;;  %v2110_v31 = vpop.f32.mrf.mxu1 }
 0x97f   : > { %v2121_v32 = vpop.xlane.xlu2 %2120  ;;  %v2118_v33 = vpop.xlane.xlu1 %2117 }
 0x980   : > { %v2123_v34 = vsub.f32 %v2115_v26, %v2121_v32  ;;  %v2122_v35 = vsub.f32 %v2114_v27, %v2118_v33 }
 0x982   : > { %v2126_v36 = vmul.f32 1.442695, %v2123_v34  ;;  %v2124_v37 = vmul.f32 1.442695, %v2122_v35 }
 0x984   : > { %5008 = vpow2.f32 %v2126_v36  ;;  %v4785_v36 = vld [vmem:[%s5904_s20 + $0x38] sm:$0xff] }
 0x985   : > { %5010 = vpow2.f32 %v2124_v37  ;;  %2397 = vmatpush.bf16.msrb.mxu3 %v4785_v36  ;;  %v4959_v36 = vld [vmem:[%s5916_s28 + $0x1] ss:$0 sm:$0xff] }
 0x98a   : > { %v5009_v38 = vpop.eup %5008 }
 0x98b   : > { %v5011_v16 = vpop.eup %5010  ;;  %v2131_v39 = vsel %vm1535_vm7, %v5009_v38, 0.0 }
 0x98c   : > { %2132 = vadd.xlane.f32.xlu1 %v2131_v39  ;;  %v2128_v41 = vsel %vm1535_vm7, %v5011_v16, 0.0 }
 0x98d   : > { %2129 = vadd.xlane.f32.xlu0 %v2128_v41  ;;  %v4784_v41 = vld [vmem:[%s5904_s20 + $0x30] sm:$0xff] }
 0x98e   : > { %2398 = vmatpush.bf16.msrb.mxu3 %v4784_v41 }
 0x9ff   : > { %v2133_v44 = vpop.xlane.xlu1 %2132 }
 0xa00   : > { %v2130_v45 = vpop.xlane.xlu0 %2129  ;;  %5012 = vrcp.f32 %v2133_v44 }
 0xa01   : > { %5014 = vrcp.f32 %v2130_v45 }
 0xa06   : > { %v5013_v46 = vpop.eup %5012 }
 0xa07   : > { %v5015_v47 = vpop.eup %5014  ;;  %v2137_v48 = vmul.f32 %v5013_v46, %v5009_v38  ;;  %v4783_v46 = vld [vmem:[%s5904_s20 + $0x28] sm:$0xff] }
 0xa08   : > { %v2136_v50 = vmul.f32 %v5015_v47, %v5011_v16  ;;  %2399 = vmatpush.bf16.msrb.mxu3 %v4783_v46 }
 0xa09   : > { %v2139_v51 = vpack.c.bf16 %v2137_v48, %v2137_v48 }
 0xa0a   : > { %v2138_v52 = vpack.c.bf16 %v2136_v50, %v2136_v50 }
 0xa0b   : > { %4302 = vmatmul.msk.bf16.vlgmr.msra.gmra.mxu3 %vm1535_vm7, %v2139_v51  ;;  %v4782_v51 = vld [vmem:[%s5904_s20 + $0x20] sm:$0xff]  ;;  %s5931_s20 = sld [smem:[#allocation33_spill]] }
 0xa0c   : > { %4301 = vmatmul.msk.bf16.vlgmr.msrb.gmra.mxu2 %vm1535_vm7, %v2138_v52  ;;  %2400 = vmatpush.bf16.msrb.mxu3 %v4782_v51 }
 0xa8e   : > { %v2176_v53 = vpop.f32.mrf.mxu3 }
 0xa8f   : > { %v2157_v54 = vpop.f32.mrf.mxu2  ;;  %v2181_v55 = vpack.c.bf16 %v2176_v53, %v2176_v53 }
 0xa90   : > { %v2180_v56 = vpack.c.bf16 %v2157_v54, %v2157_v54 }
 0xa91   : > { %4312 = vmatmul.msk.bf16.vlgmr.msra.gmra.mxu1 %vm1489_vm6, %v2181_v55 }
 0xa92   : > { %4307 = vmatmul.msk.bf16.vlgmr.msrb.gmra.mxu0 %vm1489_vm6, %v2180_v56 }
 0xa96   : > { %v2178_v57 = vpop.f32.mrf.mxu3 }
 0xa97   : > { %v2159_v58 = vpop.f32.mrf.mxu2 }
 0xb0e   : > { %v2222_v59 = vpop.f32.mrf.mxu1 }
 0xb0f   : > { %v2200_v60 = vpop.f32.mrf.mxu0  ;;  %v2227_v61 = vsel %vm1233_vm0, %v2222_v59, 0.0 }
 0xb10   : > { %v2226_v63 = vsel %vm1233_vm0, %v2200_v60, 0.0 }
 0xb11   : > { %v2228_v0 = vadd.f32 %v2227_v61, %v2226_v63 }
 0xb13   : > { %v2232_v1 = vadd.f32 %v4954_v62, %v2228_v0 }
 0xb15   : > { %v2233_v2 = vadd.f32 %v2232_v1, %v5523_v49 }
 0xb16   : > { %v2224_v3 = vpop.f32.mrf.mxu1 }
 0xb17   : > { %v2202_v4 = vpop.f32.mrf.mxu0  ;;  %v2238_v5 = vsel %vm1233_vm0, %v2233_v2, 0.0 }
 0xb18   : > { %2239 = vadd.xlane.f32.xlu2 %v2238_v5 }
 0xb8b   : > { %v2240_v6 = vpop.xlane.xlu2 %2239 }
 0xb8c   : > { %v2241_v7 = vmul.f32 %v2240_v6, %v5423_v8 }
 0xb8e   : > { %v2242_v9 = vsub.f32 %v2233_v2, %v2241_v7 }
 0xb90   : > { %v2243_v40 = vmul.f32 %v2242_v9, %v2242_v9 }
 0xb92   : > { %v2244_v10 = vsel %vm1233_vm0, %v2243_v40, 0.0 }
 0xb93   : > { %2245 = vadd.xlane.f32.xlu0 %v2244_v10 }
 0xc06   : > { %v2246_v49 = vpop.xlane.xlu0 %2245 }
 0xc07   : > { %v2247_v13 = vmul.f32 %v2246_v49, %v5423_v8 }
 0xc09   : > { %v2248_v14 = vadd.f32 1e-12, %v2247_v13  ;;  %v4958_v13 = vld [vmem:[%s5253_s27 + $0x1] ss:$0 sm:$0xff] }
 0xc0b   : > { %5016 = vrsqrt.f32 %v2248_v14  ;;  %vm2255_vm6 = vweird.f32 %v2248_v14 }
 0xc11   : > { %v5017_v15 = vpop.eup %5016 }
 0xc12   : > { %v2250_v17 = vmul.f32 %v5017_v15, %v2248_v14  ;;  %vm2256_vm4 = vweird.f32 %v5017_v15 }
 0xc13   : > { %vm2257_vm8 = vmor %vm2255_vm6, %vm2256_vm4  ;;  %vm2798_vm6 = vcmask 195584  }
 0xc14   : > { %v2251_v18 = vmul.f32 %v5017_v15, %v2250_v17 }
 0xc16   : > { %v2252_v19 = vmul.f32 0.5, %v2251_v18 }
 0xc18   : > { %v2253_v20 = vsub.f32 1.5, %v2252_v19 }
 0xc1a   : > { %v2254_v21 = vmul.f32 %v5017_v15, %v2253_v20 }
 0xc1c   : > { %v2258_v24 = vsel %vm2257_vm8, %v5017_v15, %v2254_v21 }
 0xc1d   : > { %v2259_v25 = vmul.f32 %v2258_v24, %v2242_v9 }
 0xc1f   : > { %v2263_v26 = vmul.f32 %v4955_v22, %v2259_v25  ;;  %v4787_v25 = vld [vmem:[%s5918_s3 + $0x8] sm:$0xff] }
 0xc20   : > { %2471 = vmatpush.bf16.msra.mxu0 %v4787_v25 }
 0xc21   : > { %v5569_v27 = vadd.f32 %v4956_v23, %v2263_v26  ;;  %v4786_v26 = vld [vmem:[%s5918_s3] sm:$0xff]  ;;  %s1215_s3 = scalar_lea.vmem %s5919_s5, %s5418_s23  ;;  %s5922_s5 = sld [smem:[#allocation23_spill]] }
 0xc23   : > { %v2273_v28 = vpack.c.bf16 %v5569_v27, %v5569_v27 }
 0xc24   : > { %2472 = vmatpush.bf16.msra.mxu0 %v4786_v26 }
 0xc25   : > { %4328 = vmatmul.msk.bf16.vlgmr.msra.gmra.mxu2 %vm1233_vm0, %v2273_v28 }
 0xc27   : > { %v4962_v25 = vld [vmem:[%s5922_s5] ss:$0 sm:$0xff] }
 0xca8   : > { %v2303_v30 = vpop.f32.mrf.mxu2 }
 0xca9   : > { %v2304_v31 = vadd.f32 %v4957_v29, %v2303_v30 }
 0xcab   : > { %v2308_v32 = vmul.f32 0.70710677, %v2304_v31  ;;  %v2307_v10 = vmul.f32 0.5, %v2304_v31 }
 0xcad   : > { %v2309_v33 = vmul.f32 %v2308_v32, %v2308_v32 }
 0xcaf   : > { %v2310_v34 = vmin.f32 %v2309_v33, 16.0 }
 0xcb0   : > { %v2305_v35 = vpop.f32.mrf.mxu2 }
 0xcb1   : > { %v2311_v37 = vmul.f32 2.1237322e-06, %v2310_v34  ;;  %v2322_v38 = vmul.f32 3.8918573e-05, %v2310_v34 }
 0xcb3   : > { %v2312_v16 = vadd.f32 0.00028619796, %v2311_v37  ;;  %v2323_v39 = vadd.f32 0.001143296, %v2322_v38 }
 0xcb5   : > { %v2313_v42 = vmul.f32 %v2312_v16, %v2310_v34  ;;  %v2324_v43 = vmul.f32 %v2323_v39, %v2310_v34  ;;  %v4960_v16 = vld [vmem:[%s5917_s1 + $0x1] ss:$0 sm:$0xff]  ;;  %s5925_s1 = sld [smem:[#allocation8_spill]] }
 0xcb7   : > { %v2325_v44 = vadd.f32 0.014752088, %v2324_v43  ;;  %v2314_v45 = vadd.f32 0.0036580483, %v2313_v42  ;;  %v4961_v42 = vld [vmem:[%s5920_s6] ss:$0 sm:$0xff] }
 0xcb8   : > { %s5924_s6 = sld [smem:[#allocation26_spill]] }
 0xcb9   : > { %v2326_v47 = vmul.f32 %v2325_v44, %v2310_v34  ;;  %v2315_v50 = vmul.f32 %v2314_v45, %v2310_v34  ;;  %v2478_v44 = vld [vmem:[%s1215_s3] sm:$0xff]  ;;  %s5923_s3 = sld [smem:[#allocation24_spill]] }
 0xcbb   : > { %v2327_v48 = vadd.f32 0.112945676, %v2326_v47  ;;  %v2316_v54 = vadd.f32 0.05243302, %v2315_v50  ;;  %v5161_v50 = vmov 48.0   ;;  %s1218_s9 = scalar_lea.vmem %s5925_s1, %s5415_s11  ;;  %s5927_s1 = sld [smem:[#allocation28_spill]] }
 0xcbd   : > { %v2328_v52 = vmul.f32 %v2327_v48, %v2310_v34  ;;  %v2317_v57 = vmul.f32 %v2316_v54, %v2310_v34 }
 0xcbf   : > { %v2329_v53 = vadd.f32 0.4994258, %v2328_v52  ;;  %v2318_v58 = vadd.f32 0.18741608, %v2317_v57 }
 0xcc1   : > { %v2330_v55 = vmul.f32 %v2329_v53, %v2310_v34  ;;  %v2319_v60 = vmul.f32 %v2318_v58, %v2310_v34 }
 0xcc3   : > { %v2331_v56 = vadd.f32 1.0, %v2330_v55  ;;  %v2320_v0 = vadd.f32 1.1283791, %v2319_v60 }
 0xcc5   : > { %5018 = vrcp.f32 %v2331_v56  ;;  %v2343_v63 = vand.u32 2147483648, %v2331_v56  ;;  %v2341_v2 = vand.u32 2147483647, %v2331_v56  ;;  %vm2337_vm10 = vweird.f32 %v2331_v56 }
 0xcc6   : > { %v2321_v5 = vmul.f32 %v2320_v0, %v2308_v32  ;;  %v4796_v0 = vld [vmem:[%s5921_s8 + $0x40] sm:$0xff] }
 0xcc7   : > { %v2344_v4 = vor.u32 1.1754944e-38, %v2343_v63  ;;  %vm2342_vm12 = vcmp.eq.f32.partialorder %v2341_v2, 8.507059e+37  ;;  %v4793_v63 = vld [vmem:[%s5921_s8 + $0x28] sm:$0xff]  ;;  %2687 = vmatpush.bf16.msra.mxu3 %v4796_v0 }
 0xcc8   : > { %2650 = vmatpush.bf16.msrb.mxu2 %v4793_v63  ;;  %v4789_v2 = vld [vmem:[%s5921_s8 + $0x8] sm:$0xff] }
 0xccb   : > { %v5019_v59 = vpop.eup %5018 }
 0xccc   : > { %v2333_v61 = vmul.f32 %v5019_v59, %v2331_v56  ;;  %vm2338_vm9 = vweird.f32 %v5019_v59 }
 0xccd   : > { %vm2339_vm11 = vmor %vm2337_vm10, %vm2338_vm9 }
 0xcce   : > { %v2334_v62 = vsub.f32 1.0, %v2333_v61 }
 0xcd0   : > { %v2335_v1 = vmul.f32 %v5019_v59, %v2334_v62  ;;  %v4790_v62 = vld [vmem:[%s5921_s8 + $0x10] sm:$0xff] }
 0xcd1   : > { %2619 = vmatpush.bf16.msrb.mxu1 %v4790_v62 }
 0xcd2   : > { %v2336_v3 = vadd.f32 %v5019_v59, %v2335_v1  ;;  %v4799_v1 = vld [vmem:[%s5921_s8 + $0x58] sm:$0xff] }
 0xcd3   : > { %2718 = vmatpush.bf16.msrb.mxu0 %v4799_v1 }
 0xcd4   : > { %v2340_v6 = vsel %vm2339_vm11, %v5019_v59, %v2336_v3  ;;  %v4792_v3 = vld [vmem:[%s5921_s8 + $0x20] sm:$0xff] }
 0xcd5   : > { %v2345_v7 = vsel %vm2342_vm12, %v2344_v4, %v2340_v6  ;;  %v4795_v4 = vld [vmem:[%s5921_s8 + $0x38] sm:$0xff]  ;;  %2620 = vmatpush.bf16.msrb.mxu1 %v4789_v2  ;;  %2651 = vmatpush.bf16.msrb.mxu2 %v4792_v3  ;;  %v4788_v6 = vld [vmem:[%s5921_s8] sm:$0xff]  ;;  %vm3106_vm12 = vcmask 785408  }
 0xcd6   : > { %v2346_v9 = vmul.f32 %v2345_v7, %v2321_v5  ;;  %v4798_v5 = vld [vmem:[%s5921_s8 + $0x50] sm:$0xff]  ;;  %2688 = vmatpush.bf16.msra.mxu3 %v4795_v4  ;;  %v4791_v7 = vld [vmem:[%s5921_s8 + $0x18] sm:$0xff]  ;;  %v2486_v4 = vld [vmem:[%s1218_s9] sm:$0x1]  ;;  %s5926_s9 = sld [smem:[#allocation27_spill]] }
 0xcd7   : > { %2719 = vmatpush.bf16.msrb.mxu0 %v4798_v5  ;;  %v2480_v5 = vlaneseq }
 0xcd8   : > { %v4329_v40 = vclamps-f32 %v2346_v9, 1.0  ;;  %v4794_v9 = vld [vmem:[%s5921_s8 + $0x30] sm:$0xff] }
 0xcd9   : > { %2621 = vmatpush.bf16.msrb.mxu1 %v4788_v6  ;;  %2652 = vmatpush.bf16.msrb.mxu2 %v4791_v7  ;;  %v2487_v6 = vsub.f32 1.0, %v2486_v4  ;;  %v2481_v7 = vshrl.u32 %v2480_v5, 7 }
 0xcda   : > { %v2349_v11 = vadd.f32 1.0, %v4329_v40  ;;  %v4797_v40 = vld [vmem:[%s5921_s8 + $0x48] sm:$0xff]  ;;  %2689 = vmatpush.bf16.msra.mxu3 %v4794_v9  ;;  %v5644_v9 = vand.u32 127, %v2480_v5 }
 0xcdb   : > { %2720 = vmatpush.bf16.msrb.mxu0 %v4797_v40  ;;  %v2488_v40 = vmul.f32 -1e+09, %v2487_v6 }
 0xcdc   : > { %v2350_v12 = vmul.f32 %v2349_v11, %v2307_v10  ;;  %v4802_v11 = vld [vmem:[%s5921_s8 + $0x70] sm:$0xff]  ;;  %vm2484_vm8 = vcmp.le.s32.totalorder %v5644_v9, %v2481_v7 }
 0xcdd   : > { %2755 = vmatpush.bf16.msra.mxu1 %v4802_v11  ;;  %v5162_v11 = vmov -1e+09  }
 0xcde   : > { %v2360_v49 = vpack.c.bf16 %v2350_v12, %v2350_v12  ;;  %v4805_v12 = vld [vmem:[%s5921_s8 + $0x88] sm:$0xff] }
 0xcdf   : > { %2786 = vmatpush.bf16.msra.mxu2 %v4805_v12  ;;  %v2485_v12 = vsel %vm2484_vm8, 0.0, %v5162_v11 }
 0xce0   : > { %4355 = vmatmul.msk.bf16.vlgmr.msrb.gmra.mxu3 %vm1805_vm15, %v2360_v49 }
 0xd63   : > { %v2402_v14 = vpop.f32.mrf.mxu3 }
 0xd64   : > { %v2403_v15 = vadd.f32 %v4958_v13, %v2402_v14  ;;  %v4801_v13 = vld [vmem:[%s5921_s8 + $0x68] sm:$0xff]  ;;  %v4804_v14 = vld [vmem:[%s5921_s8 + $0x80] sm:$0xff] }
 0xd65   : > { %2756 = vmatpush.bf16.msra.mxu1 %v4801_v13  ;;  %2787 = vmatpush.bf16.msra.mxu2 %v4804_v14 }
 0xd66   : > { %v2406_v17 = vadd.f32 %v2403_v15, %v5569_v27 }
 0xd68   : > { %v2411_v18 = vsel %vm1233_vm0, %v2406_v17, 0.0 }
 0xd69   : > { %2412 = vadd.xlane.f32.xlu1 %v2411_v18  ;;  %v4803_v18 = vld [vmem:[%s5921_s8 + $0x78] sm:$0xff] }
 0xd6a   : > { %2788 = vmatpush.bf16.msra.mxu2 %v4803_v18 }
 0xd6b   : > { %v2404_v19 = vpop.f32.mrf.mxu3 }
 0xddc   : > { %v2413_v20 = vpop.xlane.xlu1 %2412 }
 0xddd   : > { %v2414_v21 = vmul.f32 %v2413_v20, %v5423_v8 }
 0xddf   : > { %v2415_v22 = vsub.f32 %v2406_v17, %v2414_v21  ;;  %v4800_v17 = vld [vmem:[%s5921_s8 + $0x60] sm:$0xff] }
 0xde0   : > { %2757 = vmatpush.bf16.msra.mxu1 %v4800_v17 }
 0xde1   : > { %v2416_v24 = vmul.f32 %v2415_v22, %v2415_v22 }
 0xde3   : > { %v2417_v23 = vsel %vm1233_vm0, %v2416_v24, 0.0 }
 0xde4   : > { %2418 = vadd.xlane.f32.xlu2 %v2417_v23 }
 0xe57   : > { %v2419_v28 = vpop.xlane.xlu2 %2418 }
 0xe58   : > { %v2420_v27 = vmul.f32 %v2419_v28, %v5423_v8  ;;  %v4963_v28 = vld [vmem:[%s5923_s3] ss:$0 sm:$0xff] }
 0xe5a   : > { %v2421_v29 = vadd.f32 1e-12, %v2420_v27 }
 0xe5c   : > { %5020 = vrsqrt.f32 %v2421_v29  ;;  %vm2428_vm14 = vweird.f32 %v2421_v29 }
 0xe5d   : > { %5022 = vrcp.f32 %v5161_v50 }
 0xe62   : > { %v5021_v30 = vpop.eup %5020 }
 0xe63   : > { %v2423_v31 = vmul.f32 %v5021_v30, %v2421_v29  ;;  %vm2429_vm13 = vweird.f32 %v5021_v30  ;;  %v5023_v51 = vpop.eup %5022 }
 0xe64   : > { %vm2430_vm15 = vmor %vm2428_vm14, %vm2429_vm13  ;;  %v2500_v52 = vmul.f32 48.0, %v5023_v51 }
 0xe65   : > { %v2424_v32 = vmul.f32 %v5021_v30, %v2423_v31 }
 0xe66   : > { %v2501_v53 = vsub.f32 1.0, %v2500_v52 }
 0xe67   : > { %v2425_v33 = vmul.f32 0.5, %v2424_v32  ;;  %v4965_v32 = vld [vmem:[%s5924_s6 + $0x3] ss:$0 sm:$0xff] }
 0xe68   : > { %v2502_v54 = vmul.f32 %v5023_v51, %v2501_v53 }
 0xe69   : > { %v2426_v34 = vsub.f32 1.5, %v2425_v33 }
 0xe6a   : > { %v2503_v55 = vadd.f32 %v5023_v51, %v2502_v54 }
 0xe6b   : > { %v2427_v35 = vmul.f32 %v5021_v30, %v2426_v34 }
 0xe6d   : > { %v2431_v37 = vsel %vm2430_vm15, %v5021_v30, %v2427_v35 }
 0xe6e   : > { %v2432_v38 = vmul.f32 %v2431_v37, %v2415_v22  ;;  %v4966_v37 = vld [vmem:[%s5924_s6 + $0x1] ss:$0 sm:$0xff] }
 0xe70   : > { %v2436_v39 = vmul.f32 %v4959_v36, %v2432_v38  ;;  %v4967_v38 = vld [vmem:[%s5924_s6 + $0x2] ss:$0 sm:$0xff] }
 0xe72   : > { %v2440_v8 = vadd.f32 %v4960_v16, %v2436_v39 }
 0xe74   : > { %v2445_v41 = vpack.c.bf16 %v2440_v8, %v2440_v8 }
 0xe76   : > { %4366 = vmatmul.msk.bf16.vlgmr.msra.gmra.mxu0 %vm1233_vm0, %v2445_v41  ;;  %vm2504_vm0 = vweird.f32 %v5023_v51 }
 0xe77   : > { %v5598_v56 = vsel %vm2504_vm0, %v5023_v51, %v2503_v55  ;;  %v4968_v51 = vld [vmem:[%s5924_s6 + $0x4] ss:$0 sm:$0xff] }
 0xef3   : > { %v2474_v43 = vpop.f32.mrf.mxu0 }
 0xef4   : > { %v2475_v45 = vadd.f32 %v4961_v42, %v2474_v43 }
 0xef6   : > { %v5594_v46 = vadd.f32 %v2478_v44, %v2475_v45  ;;  %v4964_v45 = vld [vmem:[%s5924_s6] ss:$0 sm:$0xff] }
 0xef8   : > { %v2496_v47 = vsel %vm2495_vm1, %v5594_v46, 0.0 }
 0xef9   : > { %2497 = vadd.xlane.f32.xlu0 %v2496_v47 }
 0xefb   : > { %v2476_v48 = vpop.f32.mrf.mxu0 }
 0xf6c   : > { %v2498_v57 = vpop.xlane.xlu0 %2497 }
 0xf6d   : > { %v2506_v58 = vmul.f32 %v5598_v56, %v2498_v57 }
 0xf6f   : > { %v2507_v59 = vsub.f32 %v5594_v46, %v2506_v58 }
 0xf71   : > { %v2508_v60 = vmul.f32 %v2507_v59, %v2507_v59 }
 0xf73   : > { %v2509_v61 = vsel %vm2495_vm1, %v2508_v60, 0.0  ;;  %v4969_v60 = vld [vmem:[%s5924_s6 + $0x5] ss:$0 sm:$0xff] }
 0xf74   : > { %2510 = vadd.xlane.f32.xlu1 %v2509_v61 }
 0xfe7   : > { %v2511_v10 = vpop.xlane.xlu1 %2510 }
 0xfe8   : > { %v2512_v49 = vmul.f32 %v2511_v10, %v5598_v56  ;;  %v2490_v10 = vperm.slane %v2488_v40, 0 }
 0xfea   : > { %v2513_v15 = vadd.f32 1e-05, %v2512_v49  ;;  %v5647_v49 = vadd.f32 %v2490_v10, %v2485_v12 }
 0xfec   : > { %5024 = vrsqrt.f32 %v2513_v15  ;;  %vm2520_vm3 = vweird.f32 %v2513_v15 }
 0xff2   : > { %v5025_v19 = vpop.eup %5024 }
 0xff3   : > { %v2515_v20 = vmul.f32 %v5025_v19, %v2513_v15  ;;  %vm2521_vm2 = vweird.f32 %v5025_v19 }
 0xff4   : > { %vm2522_vm4 = vmor %vm2520_vm3, %vm2521_vm2  ;;  %vm3864_vm2 = vcmask 7168  }
 0xff5   : > { %v2516_v21 = vmul.f32 %v5025_v19, %v2515_v20 }
 0xff7   : > { %v2517_v22 = vmul.f32 0.5, %v2516_v21 }
 0xff9   : > { %v2518_v24 = vsub.f32 1.5, %v2517_v22 }
 0xffb   : > { %v2519_v23 = vmul.f32 %v5025_v19, %v2518_v24 }
 0xffd   : > { %v2523_v26 = vsel %vm2522_vm4, %v5025_v19, %v2519_v23  ;;  %vm3872_vm4 = vcmask 0  }
 0xffe   : > { %v2524_v27 = vmul.f32 %v2523_v26, %v2507_v59 }
0x1000   : > { %v2528_v29 = vmul.f32 %v4962_v25, %v2524_v27 }
0x1002   : > { %v2532_v30 = vadd.f32 %v4963_v28, %v2528_v29 }
0x1004   : > { %v2586_v31 = vpack.c.bf16 %v2532_v30, %v2532_v30 }
0x1006   : > { %4407 = vmatmul.msk.bf16.vlgmr.msrb.gmra.mxu1 %vm2495_vm1, %v2586_v31  ;;  %4420 = vmatmul.msk.bf16.vlgmr.msrb.gmra.mxu2 %vm2495_vm1, %v2586_v31 }
0x1007   : > { %4433 = vmatmul.msk.bf16.vlgmr.msra.gmra.mxu3 %vm2495_vm1, %v2586_v31  ;;  %4446 = vmatmul.msk.bf16.vlgmr.msrb.gmra.mxu0 %vm2495_vm1, %v2586_v31 }
0x1016   : > { %4459 = vmatmul.msk.bf16.vlgmr.msra.gmra.mxu1 %vm2495_vm1, %v2586_v31  ;;  %4472 = vmatmul.msk.bf16.vlgmr.msra.gmra.mxu2 %vm2495_vm1, %v2586_v31 }
0x1083   : > { %v2623_v33 = vpop.f32.mrf.mxu1 }
0x1084   : > { %v2722_v34 = vpop.f32.mrf.mxu0  ;;  %v2624_v52 = vadd.f32 %v4964_v45, %v2623_v33  ;;  %v2581_v45 = vld [vmem:[%s5926_s9 + $0x8] sm:$0xf] }
0x1085   : > { %v2723_v35 = vadd.f32 %v4965_v32, %v2722_v34  ;;  %v2584_v34 = vld [vmem:[%s5926_s9 + $0x14] sm:$0xf] }
0x1086   : > { %v2794_v58 = vpack.c.bf16 %v2624_v52, %v2624_v52  ;;  %v4806_v52 = vld [vmem:[%s5926_s9] sm:$0xff] }
0x1087   : > { %v2797_v36 = vpack.c.bf16 %v2723_v35, %v2723_v35  ;;  %v2940_v35 = vunpack.c.l.b16 %v2584_v34  ;;  %v4814_v34 = vld [vmem:[%s5931_s20 + $0x18] sm:$0xff] }
0x1089   : > { %v2822_v16 = vsel %vm2798_vm6, %v2797_v36, 0  ;;  %v2654_v39 = vpop.f32.mrf.mxu2  ;;  %v2942_v36 = vpack.c.b16 %v2940_v35, %v2940_v35  ;;  %v4813_v35 = vld [vmem:[%s5931_s20 + $0x10] sm:$0xff] }
0x108a   : > { %v2691_v8 = vpop.f32.mrf.mxu3  ;;  %2831 = vmatpush.bf16.xpose.msra.mxu0 %v2822_v16  ;;  %v2655_v41 = vadd.f32 %v4966_v37, %v2654_v39 }
0x108b   : > { %v2692_v42 = vadd.f32 %v4967_v38, %v2691_v8  ;;  %v2625_v43 = vpop.f32.mrf.mxu1  ;;  %v2948_v37 = vsel %vm1565_vm5, %v2942_v36, 0  ;;  %v4812_v36 = vld [vmem:[%s5931_s20 + $0x8] sm:$0xff] }
0x108c   : > { %v2724_v44 = vpop.f32.mrf.mxu0  ;;  %v2795_v48 = vpack.c.bf16 %v2655_v41, %v2655_v41 }
0x108d   : > { %v2796_v47 = vpack.c.bf16 %v2692_v42, %v2692_v42 }
0x108f   : > { %v2803_v50 = vsel %vm2798_vm6, %v2796_v47, 0  ;;  %v2912_v47 = vunpack.c.l.b16 %v2581_v45 }
0x1090   : > { %2812 = vmatpush.bf16.xpose.msrb.mxu3 %v2803_v50 }
0x1091   : > { %4474 = vmatmul.msk.bf16.vlgmr.msra.gmra.mxu0 %vm2798_vm6, %v2795_v48  ;;  %v2656_v53 = vpop.f32.mrf.mxu2  ;;  %v4807_v48 = vld [vmem:[%s5926_s9 + $0xc] sm:$0xff]  ;;  %v2914_v50 = vpack.c.b16 %v2912_v47, %v2912_v47 }
0x1092   : > { %v2693_v54 = vpop.f32.mrf.mxu3  ;;  %2956 = vmatpush.bf16.msrb.mxu0 %v2948_v37  ;;  %v4811_v37 = vld [vmem:[%s5931_s20] sm:$0xff] }
0x1093   : > { %v2759_v55 = vpop.f32.mrf.mxu1 }
0x1094   : > { %v2760_v57 = vadd.f32 %v4968_v51, %v2759_v55  ;;  %v2920_v51 = vsel %vm1565_vm5, %v2914_v50, 0 }
0x1096   : > { %v2865_v59 = vpack.c.bf16 %v2760_v57, %v2760_v57  ;;  %2957 = vmatpush.bf16.msrb.mxu0 %v4807_v48 }
0x1097   : > { %4473 = vmatmul.msk.bf16.vlgmr.msrb.gmra.mxu3 %vm2798_vm6, %v2794_v58 }
0x1098   : > { %v2871_v61 = vsel %vm1565_vm5, %v2865_v59, 0  ;;  %2928 = vmatpush.bf16.msra.mxu3 %v2920_v51 }
0x1099   : > { %v2790_v62 = vpop.f32.mrf.mxu2  ;;  %2880 = vmatpush.bf16.msrb.mxu1 %v2871_v61 }
0x109a   : > { %v2791_v63 = vadd.f32 %v4969_v60, %v2790_v62 }
0x109b   : > { %v2761_v0 = vpop.f32.mrf.mxu1 }
0x109c   : > { %v2866_v1 = vpack.c.bf16 %v2791_v63, %v2791_v63  ;;  %2929 = vmatpush.bf16.msra.mxu3 %v4806_v52  ;;  %v4970_v63 = vld [vmem:[%s5927_s1] ss:$0 sm:$0xff] }
0x109e   : > { %v2890_v2 = vsel %vm1565_vm5, %v2866_v1, 0 }
0x109f   : > { %2899 = vmatpush.bf16.msrb.mxu2 %v2890_v2 }
0x10a1   : > { %v2792_v3 = vpop.f32.mrf.mxu2 }
0x110e   : > { %v2833_v13 = vpop.f32.mrf.mxu0 }
0x110f   : > { %v2838_v14 = vmul.f32 0.20412415, %v2833_v13  ;;  %v4810_v13 = vld [vmem:[%s5928_s12 + $0x10] sm:$0xff] }
0x1110   : > { %3040 = vmatpush.bf16.msra.mxu1 %v4810_v13  ;;  %v4829_v13 = vld [vmem:[%s5921_s8 + $0xf0] sm:$0xff] }
0x1111   : > { %v2840_v15 = vadd.f32 %v2838_v14, %v5647_v49  ;;  %v4809_v14 = vld [vmem:[%s5928_s12 + $0x8] sm:$0xff] }
0x1113   : > { %v2844_v17 = vsel %vm1535_vm7, %v2840_v15, -inf }
0x1114   : > { %2845 = vmax.xlane.f32.xlu0 %v2844_v17  ;;  %3041 = vmatpush.bf16.msra.mxu1 %v4809_v14 }
0x1116   : > { %v2835_v18 = vpop.f32.mrf.mxu0 }
0x111a   : > { %v2814_v19 = vpop.f32.mrf.mxu3 }
0x111b   : > { %v2837_v20 = vmul.f32 0.20412415, %v2814_v19 }
0x111d   : > { %v2839_v21 = vadd.f32 %v2837_v20, %v5647_v49 }
0x111f   : > { %v2841_v22 = vsel %vm1535_vm7, %v2839_v21, -inf }
0x1120   : > { %2842 = vmax.xlane.f32.xlu2 %v2841_v22 }
0x1122   : > { %v2816_v24 = vpop.f32.mrf.mxu3 }
0x1187   : > { %v2846_v23 = vpop.xlane.xlu0 %2845 }
0x1188   : > { %v2848_v25 = vsub.f32 %v2840_v15, %v2846_v23 }
0x118a   : > { %v2851_v26 = vmul.f32 1.442695, %v2848_v25  ;;  %v4971_v25 = vld [vmem:[%s5929_s14] ss:$0 sm:$0xff] }
0x118c   : > { %5026 = vpow2.f32 %v2851_v26 }
0x1192   : > { %v5027_v28 = vpop.eup %5026 }
0x1193   : > { %v2843_v27 = vpop.xlane.xlu2 %2842  ;;  %v2856_v29 = vsel %vm1535_vm7, %v5027_v28, 0.0 }
0x1194   : > { %v2847_v30 = vsub.f32 %v2839_v21, %v2843_v27  ;;  %2857 = vadd.xlane.f32.xlu2 %v2856_v29  ;;  %v4972_v27 = vld [vmem:[%s5930_s19] ss:$0 sm:$0xff] }
0x1196   : > { %v2849_v31 = vmul.f32 1.442695, %v2847_v30 }
0x1198   : > { %5028 = vpow2.f32 %v2849_v31 }
0x119e   : > { %v5029_v32 = vpop.eup %5028 }
0x119f   : > { %v2853_v33 = vsel %vm1535_vm7, %v5029_v32, 0.0 }
0x11a0   : > { %2854 = vadd.xlane.f32.xlu1 %v2853_v33  ;;  %v4815_v33 = vld [vmem:[%s5931_s20 + $0x20] sm:$0xff] }
0x1207   : > { %v2858_v38 = vpop.xlane.xlu2 %2857 }
0x1208   : > { %5030 = vrcp.f32 %v2858_v38  ;;  %v4973_v38 = vld [vmem:[%s5932_s24] ss:$0 sm:$0xff] }
0x120e   : > { %v5031_v16 = vpop.eup %5030 }
0x120f   : > { %v2862_v39 = vmul.f32 %v5031_v16, %v5027_v28 }
0x1211   : > { %v2864_v8 = vpack.c.bf16 %v2862_v39, %v2862_v39 }
0x1213   : > { %v2855_v41 = vpop.xlane.xlu1 %2854  ;;  %4476 = vmatmul.msk.bf16.vlgmr.msrb.gmra.mxu2 %vm1535_vm7, %v2864_v8 }
0x1214   : > { %5032 = vrcp.f32 %v2855_v41 }
0x121a   : > { %v5033_v42 = vpop.eup %5032 }
0x121b   : > { %v2861_v43 = vmul.f32 %v5033_v42, %v5029_v32  ;;  %v4816_v32 = vld [vmem:[%s5931_s20 + $0x28] sm:$0xff] }
0x121c   : > { %3112 = vmatpush.bf16.msra.mxu2 %v4816_v32 }
0x121d   : > { %v2863_v44 = vpack.c.bf16 %v2861_v43, %v2861_v43 }
0x121f   : > { %4475 = vmatmul.msk.bf16.vlgmr.msrb.gmra.mxu1 %vm1535_vm7, %v2863_v44 }
0x1220   : > { %3113 = vmatpush.bf16.msra.mxu2 %v4815_v33 }
0x1224   : > { %3114 = vmatpush.bf16.msra.mxu2 %v4814_v34 }
0x1228   : > { %3115 = vmatpush.bf16.msra.mxu2 %v4813_v35 }
0x122c   : > { %3116 = vmatpush.bf16.msra.mxu2 %v4812_v36  ;;  %v4978_v36 = vld [vmem:[%s5924_s6 + $0x8] ss:$0 sm:$0xff] }
0x1230   : > { %3117 = vmatpush.bf16.msra.mxu2 %v4811_v37 }
0x1296   : > { %v2901_v53 = vpop.f32.mrf.mxu2 }
0x1297   : > { %v2906_v54 = vpack.c.bf16 %v2901_v53, %v2901_v53  ;;  %v4974_v53 = vld [vmem:[%s5933_s25] ss:$0 sm:$0xff] }
0x1299   : > { %4486 = vmatmul.msk.bf16.vlgmr.msrb.gmra.mxu0 %vm2798_vm6, %v2906_v54 }
0x129c   : > { %v2882_v55 = vpop.f32.mrf.mxu1 }
0x129d   : > { %v2905_v57 = vpack.c.bf16 %v2882_v55, %v2882_v55 }
0x129e   : > { %v2903_v58 = vpop.f32.mrf.mxu2 }
0x129f   : > { %4481 = vmatmul.msk.bf16.vlgmr.msra.gmra.mxu3 %vm2798_vm6, %v2905_v57 }
0x12a4   : > { %v2884_v59 = vpop.f32.mrf.mxu1 }
0x1316   : > { %v2959_v60 = vpop.f32.mrf.mxu0 }
0x1317   : > { %v2964_v0 = vsel %vm2495_vm1, %v2959_v60, 0.0 }
0x131e   : > { %v2961_v61 = vpop.f32.mrf.mxu0 }
0x1322   : > { %v2931_v62 = vpop.f32.mrf.mxu3 }
0x1323   : > { %v2963_v1 = vsel %vm2495_vm1, %v2931_v62, 0.0 }
0x1324   : > { %v2965_v2 = vadd.f32 %v2964_v0, %v2963_v1  ;;  %v4819_v1 = vld [vmem:[%s5921_s8 + $0xa0] sm:$0xff] }
0x1325   : > { %3253 = vmatpush.bf16.msrb.mxu3 %v4819_v1 }
0x1326   : > { %v2969_v3 = vadd.f32 %v4970_v63, %v2965_v2  ;;  %v4822_v2 = vld [vmem:[%s5921_s8 + $0xb8] sm:$0xff] }
0x1327   : > { %3284 = vmatpush.bf16.msra.mxu0 %v4822_v2 }
0x1328   : > { %v5669_v4 = vadd.f32 %v2969_v3, %v5594_v46  ;;  %v4808_v46 = vld [vmem:[%s5928_s12] sm:$0xff]  ;;  %v4825_v3 = vld [vmem:[%s5921_s8 + $0xd0] sm:$0xff] }
0x1329   : > { %3042 = vmatpush.bf16.msra.mxu1 %v4808_v46  ;;  %v4828_v46 = vld [vmem:[%s5921_s8 + $0xe8] sm:$0xff] }
0x132a   : > { %v2933_v5 = vpop.f32.mrf.mxu3  ;;  %v2973_v6 = vsel %vm2495_vm1, %v5669_v4, 0.0 }
0x132b   : > { %2974 = vadd.xlane.f32.xlu0 %v2973_v6  ;;  %v4818_v5 = vld [vmem:[%s5921_s8 + $0x98] sm:$0xff]  ;;  %v4821_v6 = vld [vmem:[%s5921_s8 + $0xb0] sm:$0xff] }
0x132c   : > { %3254 = vmatpush.bf16.msrb.mxu3 %v4818_v5  ;;  %3285 = vmatpush.bf16.msra.mxu0 %v4821_v6 }
0x132d   : > { %3321 = vmatpush.bf16.msrb.mxu1 %v4825_v3  ;;  %v4977_v3 = vld [vmem:[%s5924_s6 + $0x7] ss:$0 sm:$0xff] }
0x139e   : > { %v2975_v7 = vpop.xlane.xlu0 %2974 }
0x139f   : > { %v2976_v40 = vmul.f32 %v2975_v7, %v5598_v56  ;;  %v4824_v7 = vld [vmem:[%s5921_s8 + $0xc8] sm:$0xff] }
0x13a0   : > { %3322 = vmatpush.bf16.msrb.mxu1 %v4824_v7 }
0x13a1   : > { %v2977_v10 = vsub.f32 %v5669_v4, %v2976_v40  ;;  %v4830_v40 = vld [vmem:[%s5921_s8 + $0xf8] sm:$0xff] }
0x13a3   : > { %v2978_v11 = vmul.f32 %v2977_v10, %v2977_v10 }
0x13a5   : > { %v2979_v12 = vsel %vm2495_vm1, %v2978_v11, 0.0  ;;  %v4820_v11 = vld [vmem:[%s5921_s8 + $0xa8] sm:$0xff] }
0x13a6   : > { %2980 = vadd.xlane.f32.xlu1 %v2979_v12  ;;  %v4823_v12 = vld [vmem:[%s5921_s8 + $0xc0] sm:$0xff]  ;;  %3286 = vmatpush.bf16.msra.mxu0 %v4820_v11 }
0x13a7   : > { %3323 = vmatpush.bf16.msrb.mxu1 %v4823_v12 }
0x1419   : > { %v2981_v15 = vpop.xlane.xlu1 %2980 }
0x141a   : > { %v2982_v17 = vmul.f32 %v2981_v15, %v5598_v56  ;;  %v4834_v15 = vld [vmem:[%s5921_s8 + $0x118] sm:$0xff] }
0x141b   : > { %3420 = vmatpush.bf16.msrb.mxu0 %v4834_v15 }
0x141c   : > { %v2983_v18 = vadd.f32 1e-05, %v2982_v17 }
0x141e   : > { %5034 = vrsqrt.f32 %v2983_v18  ;;  %vm2990_vm10 = vweird.f32 %v2983_v18 }
0x1424   : > { %v5035_v19 = vpop.eup %5034 }
0x1425   : > { %v2985_v20 = vmul.f32 %v5035_v19, %v2983_v18  ;;  %vm2991_vm9 = vweird.f32 %v5035_v19  ;;  %v4827_v18 = vld [vmem:[%s5921_s8 + $0xe0] sm:$0xff] }
0x1426   : > { %vm2992_vm11 = vmor %vm2990_vm10, %vm2991_vm9 }
0x1427   : > { %v2986_v21 = vmul.f32 %v5035_v19, %v2985_v20 }
0x1429   : > { %v2987_v22 = vmul.f32 0.5, %v2986_v21  ;;  %v4826_v21 = vld [vmem:[%s5921_s8 + $0xd8] sm:$0xff] }
0x142b   : > { %v2988_v24 = vsub.f32 1.5, %v2987_v22  ;;  %v4832_v22 = vld [vmem:[%s5921_s8 + $0x108] sm:$0xff] }
0x142d   : > { %v2989_v23 = vmul.f32 %v5035_v19, %v2988_v24 }
0x142f   : > { %v2993_v26 = vsel %vm2992_vm11, %v5035_v19, %v2989_v23  ;;  %v4833_v19 = vld [vmem:[%s5921_s8 + $0x110] sm:$0xff] }
0x1430   : > { %v2994_v28 = vmul.f32 %v2993_v26, %v2977_v10  ;;  %v4817_v10 = vld [vmem:[%s5921_s8 + $0x90] sm:$0xff]  ;;  %3421 = vmatpush.bf16.msrb.mxu0 %v4833_v19 }
0x1431   : > { %3255 = vmatpush.bf16.msrb.mxu3 %v4817_v10 }
0x1432   : > { %v2998_v29 = vmul.f32 %v4971_v25, %v2994_v28 }
0x1434   : > { %v3002_v30 = vadd.f32 %v4972_v27, %v2998_v29  ;;  %3422 = vmatpush.bf16.msrb.mxu0 %v4832_v22  ;;  %v4975_v29 = vld [vmem:[%s5922_s5 + $0x1] ss:$0 sm:$0xff]  ;;  %s1192_s5 = sand.u32 1, %s5112_s16  }
0x1435   : > { %3352 = vmatpush.bf16.msra.mxu3 %v4828_v46 }
0x1436   : > { %v3009_v31 = vpack.c.bf16 %v3002_v30, %v3002_v30 }
0x1438   : > { %4499 = vmatmul.msk.bf16.vlgmr.msra.gmra.mxu1 %vm2495_vm1, %v3009_v31  ;;  %v4976_v31 = vld [vmem:[%s5923_s3 + $0x1] ss:$0 sm:$0xff] }
0x1439   : > { %3353 = vmatpush.bf16.msra.mxu3 %v4827_v18 }
0x143d   : > { %3354 = vmatpush.bf16.msra.mxu3 %v4826_v21 }
0x14b5   : > { %v3044_v16 = vpop.f32.mrf.mxu1 }
0x14b6   : > { %v3045_v39 = vadd.f32 %v4973_v38, %v3044_v16 }
0x14b8   : > { %v3049_v8 = vmul.f32 0.044715, %v3045_v39  ;;  %v3048_v48 = vmul.f32 0.5, %v3045_v39 }
0x14ba   : > { %v3050_v41 = vmul.f32 %v3049_v8, %v3045_v39  ;;  %v4979_v8 = vld [vmem:[%s5924_s6 + $0x6] ss:$0 sm:$0xff] }
0x14bc   : > { %v3051_v42 = vmul.f32 %v3050_v41, %v3045_v39  ;;  %v4980_v41 = vld [vmem:[%s5924_s6 + $0xa] ss:$0 sm:$0xff] }
0x14bd   : > { %v3046_v43 = vpop.f32.mrf.mxu1 }
0x14be   : > { %v3052_v44 = vadd.f32 %v3051_v42, %v3045_v39 }
0x14c0   : > { %v3053_v45 = vmul.f32 0.7978846, %v3052_v44 }
0x14c2   : > { %5036 = vtanh.f32 %v3053_v45 }
0x14c8   : > { %v5037_v47 = vpop.eup %5036 }
0x14c9   : > { %v3055_v50 = vadd.f32 1.0, %v5037_v47 }
0x14cb   : > { %v3056_v51 = vmul.f32 %v3055_v50, %v3048_v48 }
0x14cd   : > { %v3069_v52 = vpack.c.bf16 %v3056_v51, %v3056_v51 }
0x14cf   : > { %4524 = vmatmul.msk.bf16.vlgmr.msra.gmra.mxu2 %vm3106_vm12, %v3069_v52 }
0x1552   : > { %v3119_v54 = vpop.f32.mrf.mxu2 }
0x1553   : > { %v3123_v55 = vadd.f32 %v3119_v54, %v5669_v4  ;;  %v4831_v4 = vld [vmem:[%s5921_s8 + $0x100] sm:$0xff]  ;;  %v4981_v54 = vld [vmem:[%s5924_s6 + $0xb] ss:$0 sm:$0xff] }
0x1554   : > { %3389 = vmatpush.bf16.msrb.mxu2 %v4831_v4 }
0x1555   : > { %v5693_v57 = vadd.f32 %v4974_v53, %v3123_v55 }
0x1557   : > { %v3133_v58 = vsel %vm2495_vm1, %v5693_v57, 0.0 }
0x1558   : > { %3134 = vadd.xlane.f32.xlu2 %v3133_v58  ;;  %3390 = vmatpush.bf16.msrb.mxu2 %v4830_v40 }
0x155a   : > { %v3121_v59 = vpop.f32.mrf.mxu2 }
0x155c   : > { %3391 = vmatpush.bf16.msrb.mxu2 %v4829_v13 }
0x15cb   : > { %v3135_v60 = vpop.xlane.xlu2 %3134 }
0x15cc   : > { %v3136_v61 = vmul.f32 %v3135_v60, %v5598_v56 }
0x15ce   : > { %v3137_v62 = vsub.f32 %v5693_v57, %v3136_v61 }
0x15d0   : > { %v3138_v63 = vmul.f32 %v3137_v62, %v3137_v62 }
0x15d2   : > { %v3139_v0 = vsel %vm2495_vm1, %v3138_v63, 0.0 }
0x15d3   : > { %3140 = vadd.xlane.f32.xlu0 %v3139_v0 }
0x1646   : > { %v3141_v14 = vpop.xlane.xlu0 %3140 }
0x1647   : > { %v3142_v17 = vmul.f32 %v3141_v14, %v5598_v56 }
0x1649   : > { %v3143_v20 = vadd.f32 1e-05, %v3142_v17 }
0x164b   : > { %5038 = vrsqrt.f32 %v3143_v20  ;;  %vm3150_vm14 = vweird.f32 %v3143_v20 }
0x1651   : > { %v5039_v24 = vpop.eup %5038 }
0x1652   : > { %v3145_v23 = vmul.f32 %v5039_v24, %v3143_v20  ;;  %vm3151_vm13 = vweird.f32 %v5039_v24 }
0x1653   : > { %vm3152_vm15 = vmor %vm3150_vm14, %vm3151_vm13 }
0x1654   : > { %v3146_v25 = vmul.f32 %v5039_v24, %v3145_v23 }
0x1656   : > { %v3147_v26 = vmul.f32 0.5, %v3146_v25 }
0x1658   : > { %v3148_v28 = vsub.f32 1.5, %v3147_v26 }
0x165a   : > { %v3149_v27 = vmul.f32 %v5039_v24, %v3148_v28 }
0x165c   : > { %v3153_v30 = vsel %vm3152_vm15, %v5039_v24, %v3149_v27 }
0x165d   : > { %v3154_v32 = vmul.f32 %v3153_v30, %v3137_v62  ;;  %v4982_v62 = vld [vmem:[%s5924_s6 + $0x9] ss:$0 sm:$0xff]  ;;  %s4091_s6 = sshll.u32 %s1192_s5, 3 }
0x165f   : > { %v3158_v33 = vmul.f32 %v4975_v29, %v3154_v32 }
0x1661   : > { %v3162_v34 = vadd.f32 %v4976_v31, %v3158_v33  ;;  %v4571_v31 = vld [vmem:[%s5926_s9 + $0x20] sm:$0xf] }
0x1662   : > { %v3545_v33 = vunpack.c.l.b16 %v4571_v31  ;;  %v4840_v31 = vld [vmem:[%s5931_s20 + $0x30] sm:$0xff] }
0x1663   : > { %v3220_v35 = vpack.c.bf16 %v3162_v34, %v3162_v34 }
0x1665   : > { %4588 = vmatmul.msk.bf16.vlgmr.msrb.gmra.mxu3 %vm2495_vm1, %v3220_v35  ;;  %4601 = vmatmul.msk.bf16.vlgmr.msra.gmra.mxu0 %vm2495_vm1, %v3220_v35 }
0x1666   : > { %4614 = vmatmul.msk.bf16.vlgmr.msrb.gmra.mxu1 %vm2495_vm1, %v3220_v35  ;;  %4640 = vmatmul.msk.bf16.vlgmr.msrb.gmra.mxu2 %vm2495_vm1, %v3220_v35 }
0x1675   : > { %4627 = vmatmul.msk.bf16.vlgmr.msra.gmra.mxu3 %vm2495_vm1, %v3220_v35  ;;  %4653 = vmatmul.msk.bf16.vlgmr.msrb.gmra.mxu0 %vm2495_vm1, %v3220_v35  ;;  %v3547_v35 = vpack.c.b16 %v3545_v33, %v3545_v33 }
0x16e2   : > { %v3288_v37 = vpop.f32.mrf.mxu0 }
0x16e3   : > { %v3325_v38 = vpop.f32.mrf.mxu1  ;;  %v3289_v6 = vadd.f32 %v4977_v3, %v3288_v37 }
0x16e4   : > { %v3326_v16 = vadd.f32 %v4978_v36, %v3325_v38  ;;  %v3553_v36 = vsel %vm1565_vm5, %v3547_v35, 0 }
0x16e5   : > { %v3429_v40 = vpack.c.bf16 %v3289_v6, %v3289_v6 }
0x16e6   : > { %v3430_v39 = vpack.c.bf16 %v3326_v16, %v3326_v16 }
0x16e8   : > { %v3436_v42 = vsel %vm2798_vm6, %v3430_v39, 0  ;;  %v3257_v43 = vpop.f32.mrf.mxu3 }
0x16e9   : > { %v3393_v44 = vpop.f32.mrf.mxu2  ;;  %3445 = vmatpush.bf16.xpose.msra.mxu1 %v3436_v42  ;;  %v3258_v45 = vadd.f32 %v4979_v8, %v3257_v43  ;;  %v4835_v8 = vld [vmem:[%s5926_s9 + $0x18] sm:$0xff] }
0x16ea   : > { %v3394_v47 = vadd.f32 %v4980_v41, %v3393_v44  ;;  %v3290_v48 = vpop.f32.mrf.mxu0  ;;  %v4574_v41 = vld [vmem:[%s5926_s9 + $0x2c] sm:$0xf] }
0x16eb   : > { %v3327_v50 = vpop.f32.mrf.mxu1  ;;  %v3428_v52 = vpack.c.bf16 %v3258_v45, %v3258_v45  ;;  %v3573_v42 = vunpack.c.l.b16 %v4574_v41  ;;  %v4836_v45 = vld [vmem:[%s5926_s9 + $0x24] sm:$0xff]  ;;  %s3883_s9 = scalar_lea.sflag [#allocation3], %s1192_s5 }
0x16ec   : > { %v3498_v51 = vpack.c.bf16 %v3394_v47, %v3394_v47 }
0x16ed   : > { %v3575_v43 = vpack.c.b16 %v3573_v42, %v3573_v42 }
0x16ee   : > { %v3504_v53 = vsel %vm1565_vm5, %v3498_v51, 0 }
0x16ef   : > { %3513 = vmatpush.bf16.msra.mxu2 %v3504_v53  ;;  %v3581_v44 = vsel %vm1565_vm5, %v3575_v43, 0 }
0x16f0   : > { %4654 = vmatmul.msk.bf16.vlgmr.msra.gmra.mxu1 %vm2798_vm6, %v3428_v52  ;;  %v3259_v55 = vpop.f32.mrf.mxu3 }
0x16f1   : > { %v3395_v58 = vpop.f32.mrf.mxu2  ;;  %3561 = vmatpush.bf16.msrb.mxu1 %v3553_v36 }
0x16f2   : > { %v3424_v59 = vpop.f32.mrf.mxu0 }
0x16f3   : > { %v3425_v60 = vadd.f32 %v4981_v54, %v3424_v59  ;;  %v4983_v59 = vld [vmem:[%s5927_s1 + $0x1] ss:$0 sm:$0xff]  ;;  %s5934_s1 = sld [smem:[#allocation9_spill]] }
0x16f5   : > { %v3499_v61 = vpack.c.bf16 %v3425_v60, %v3425_v60  ;;  %3562 = vmatpush.bf16.msrb.mxu1 %v4835_v8 }
0x16f7   : > { %v3523_v63 = vsel %vm1565_vm5, %v3499_v61, 0 }
0x16f8   : > { %v3356_v0 = vpop.f32.mrf.mxu3  ;;  %3532 = vmatpush.bf16.msra.mxu0 %v3523_v63 }
0x16f9   : > { %v3357_v1 = vadd.f32 %v4982_v62, %v3356_v0  ;;  %s1222_s3 = scalar_lea.vmem %s5934_s1, %s5418_s23  ;;  %s5935_s23 = sld [smem:[#allocation35_spill]] }
0x16fa   : > { %v3426_v2 = vpop.f32.mrf.mxu0  ;;  %s1228_s1 = scalar_lea.vmem %s5363_s21, %s5415_s11 }
0x16fb   : > { %v3431_v4 = vpack.c.bf16 %v3357_v1, %v3357_v1 }
0x16fd   : > { %v3455_v5 = vsel %vm2798_vm6, %v3431_v4, 0 }
0x16fe   : > { %3464 = vmatpush.bf16.xpose.msrb.mxu3 %v3455_v5 }
0x1700   : > { %v3358_v7 = vpop.f32.mrf.mxu3 }
0x1705   : > { %4655 = vmatmul.msk.bf16.vlgmr.msrb.gmra.mxu3 %vm2798_vm6, %v3429_v40  ;;  %v4839_v40 = vld [vmem:[%s5928_s12 + $0x28] sm:$0xff] }
0x1706   : > { %3589 = vmatpush.bf16.msra.mxu3 %v3581_v44  ;;  %3677 = vmatpush.bf16.msrb.mxu2 %v4839_v40 }
0x170a   : > { %3590 = vmatpush.bf16.msra.mxu3 %v4836_v45  ;;  %v4987_v45 = vld [vmem:[%s5933_s25 + $0x1] ss:$0 sm:$0xff] }
0x176d   : > { %v3447_v10 = vpop.f32.mrf.mxu1 }
0x176e   : > { %v3470_v11 = vmul.f32 0.20412415, %v3447_v10  ;;  %v4838_v10 = vld [vmem:[%s5928_s12 + $0x20] sm:$0xff] }
0x176f   : > { %3678 = vmatpush.bf16.msrb.mxu2 %v4838_v10 }
0x1770   : > { %v3472_v12 = vadd.f32 %v3470_v11, %v5647_v49 }
0x1772   : > { %v3474_v13 = vsel %vm1535_vm7, %v3472_v12, -inf }
0x1773   : > { %3475 = vmax.xlane.f32.xlu1 %v3474_v13 }
0x1775   : > { %v3449_v14 = vpop.f32.mrf.mxu1 }
0x1788   : > { %v3466_v46 = vpop.f32.mrf.mxu3 }
0x1789   : > { %v3471_v15 = vmul.f32 0.20412415, %v3466_v46 }
0x178b   : > { %v3473_v17 = vadd.f32 %v3471_v15, %v5647_v49 }
0x178d   : > { %v3477_v18 = vsel %vm1535_vm7, %v3473_v17, -inf }
0x178e   : > { %3478 = vmax.xlane.f32.xlu2 %v3477_v18 }
0x1790   : > { %v3468_v19 = vpop.f32.mrf.mxu3 }
0x17e6   : > { %v3476_v20 = vpop.xlane.xlu1 %3475 }
0x17e7   : > { %v3480_v21 = vsub.f32 %v3472_v12, %v3476_v20  ;;  %v4984_v20 = vld [vmem:[%s5929_s14 + $0x1] ss:$0 sm:$0xff] }
0x17e9   : > { %v3482_v22 = vmul.f32 1.442695, %v3480_v21 }
0x17eb   : > { %5040 = vpow2.f32 %v3482_v22  ;;  %v4985_v22 = vld [vmem:[%s5930_s19 + $0x1] ss:$0 sm:$0xff] }
0x17f1   : > { %v5041_v24 = vpop.eup %5040 }
0x17f2   : > { %v3486_v23 = vsel %vm1535_vm7, %v5041_v24, 0.0 }
0x17f3   : > { %3487 = vadd.xlane.f32.xlu0 %v3486_v23 }
0x1801   : > { %v3479_v25 = vpop.xlane.xlu2 %3478 }
0x1802   : > { %v3481_v26 = vsub.f32 %v3473_v17, %v3479_v25 }
0x1804   : > { %v3484_v28 = vmul.f32 1.442695, %v3481_v26 }
0x1806   : > { %5042 = vpow2.f32 %v3484_v28  ;;  %v4845_v28 = vld [vmem:[%s5931_s20 + $0x58] sm:$0xff] }
0x1807   : > { %3749 = vmatpush.bf16.msrb.mxu0 %v4845_v28 }
0x180c   : > { %v5043_v27 = vpop.eup %5042 }
0x180d   : > { %v3489_v49 = vsel %vm1535_vm7, %v5043_v27, 0.0 }
0x180e   : > { %3490 = vadd.xlane.f32.xlu1 %v3489_v49  ;;  %v4843_v49 = vld [vmem:[%s5931_s20 + $0x48] sm:$0xff] }
0x1866   : > { %v3488_v29 = vpop.xlane.xlu0 %3487 }
0x1867   : > { %5044 = vrcp.f32 %v3488_v29  ;;  %v4842_v29 = vld [vmem:[%s5931_s20 + $0x40] sm:$0xff] }
0x186d   : > { %v5045_v30 = vpop.eup %5044 }
0x186e   : > { %v3494_v32 = vmul.f32 %v5045_v30, %v5041_v24  ;;  %v4841_v30 = vld [vmem:[%s5931_s20 + $0x38] sm:$0xff] }
0x1870   : > { %v3496_v34 = vpack.c.bf16 %v3494_v32, %v3494_v32  ;;  %v4986_v32 = vld [vmem:[%s5932_s24 + $0x1] ss:$0 sm:$0xff] }
0x1872   : > { %4656 = vmatmul.msk.bf16.vlgmr.msra.gmra.mxu2 %vm1535_vm7, %v3496_v34 }
0x1881   : > { %v3491_v37 = vpop.xlane.xlu1 %3490 }
0x1882   : > { %5046 = vrcp.f32 %v3491_v37 }
0x1888   : > { %v5047_v38 = vpop.eup %5046 }
0x1889   : > { %v3495_v16 = vmul.f32 %v5047_v38, %v5043_v27  ;;  %v4844_v27 = vld [vmem:[%s5931_s20 + $0x50] sm:$0xff] }
0x188a   : > { %3750 = vmatpush.bf16.msrb.mxu0 %v4844_v27 }
0x188b   : > { %v3497_v39 = vpack.c.bf16 %v3495_v16, %v3495_v16 }
0x188d   : > { %4657 = vmatmul.msk.bf16.vlgmr.msra.gmra.mxu0 %vm1535_vm7, %v3497_v39 }
0x188e   : > { %3751 = vmatpush.bf16.msrb.mxu0 %v4843_v49 }
0x1892   : > { %3752 = vmatpush.bf16.msrb.mxu0 %v4842_v29 }
0x1896   : > { %3753 = vmatpush.bf16.msrb.mxu0 %v4841_v30 }
0x189a   : > { %3754 = vmatpush.bf16.msrb.mxu0 %v4840_v31 }
0x18f5   : > { %v3515_v47 = vpop.f32.mrf.mxu2 }
0x18f6   : > { %v3538_v48 = vpack.c.bf16 %v3515_v47, %v3515_v47 }
0x18f8   : > { %4662 = vmatmul.msk.bf16.vlgmr.msrb.gmra.mxu1 %vm2798_vm6, %v3538_v48 }
0x18fd   : > { %v3517_v50 = vpop.f32.mrf.mxu2 }
0x190a   : > { %v3534_v51 = vpop.f32.mrf.mxu0 }
0x190b   : > { %v3539_v52 = vpack.c.bf16 %v3534_v51, %v3534_v51 }
0x190d   : > { %4667 = vmatmul.msk.bf16.vlgmr.msra.gmra.mxu3 %vm2798_vm6, %v3539_v52 }
0x1912   : > { %v3536_v53 = vpop.f32.mrf.mxu0 }
0x1975   : > { %v3564_v54 = vpop.f32.mrf.mxu1 }
0x1976   : > { %v3596_v60 = vsel %vm2495_vm1, %v3564_v54, 0.0 }
0x197d   : > { %v3566_v55 = vpop.f32.mrf.mxu1 }
0x1990   : > { %v3592_v58 = vpop.f32.mrf.mxu3 }
0x1991   : > { %v3597_v61 = vsel %vm2495_vm1, %v3592_v58, 0.0 }
0x1992   : > { %v3598_v62 = vadd.f32 %v3597_v61, %v3596_v60  ;;  %v4848_v60 = vld [vmem:[%s5902_s17 + $0x10] sm:$0xff]  ;;  %v4847_v61 = vld [vmem:[%s5902_s17 + $0x8] sm:$0xff] }
0x1993   : > { %3832 = vmatpush.bf16.msra.mxu1 %v4848_v60 }
0x1994   : > { %v3602_v63 = vadd.f32 %v4983_v59, %v3598_v62  ;;  %v4846_v62 = vld [vmem:[%s5902_s17] sm:$0xff]  ;;  %s5078_s17 = scalar_lea.hbm %s5353_s13, 16 }
0x1996   : > { %v5759_v0 = vadd.f32 %v3602_v63, %v5693_v57  ;;  %v4837_v57 = vld [vmem:[%s5928_s12 + $0x18] sm:$0xff]  ;;  %v3841_v63 = vld [vmem:[%s1222_s3] sm:$0xff]  ;;  %s5936_s3 = sld [smem:[#allocation36_spill]] }
0x1997   : > { %3679 = vmatpush.bf16.msrb.mxu2 %v4837_v57  ;;  %3833 = vmatpush.bf16.msra.mxu1 %v4847_v61  ;;  %vm3860_vm3 = vcmp.ne.s32.totalorder %v3841_v63, 4294967196 }
0x1998   : > { %v3594_v1 = vpop.f32.mrf.mxu3  ;;  %v3608_v2 = vsel %vm2495_vm1, %v5759_v0, 0.0 }
0x1999   : > { %3609 = vadd.xlane.f32.xlu2 %v3608_v2  ;;  %v5163_v1 = vmov 0  }
0x199a   : > { %4931 = vset.pattern.permute.xlu1 %v5163_v1  ;;  %4932 = vset.pattern.permute.xlu0 %v5163_v1 }
0x199b   : > { %3834 = vmatpush.bf16.msra.mxu1 %v4846_v62 }
0x1a0c   : > { %v3610_v3 = vpop.xlane.xlu2 %3609 }
0x1a0d   : > { %v3611_v4 = vmul.f32 %v3610_v3, %v5598_v56  ;;  %v5164_v3 = vmov 0.0  }
0x1a0f   : > { %v3612_v5 = vsub.f32 %v5759_v0, %v3611_v4  ;;  %v5792_v4 = vsel %vm3860_vm3, 1.0, %v5164_v3 }
0x1a11   : > { %v3613_v6 = vmul.f32 %v3612_v5, %v3612_v5 }
0x1a13   : > { %v3614_v7 = vsel %vm2495_vm1, %v3613_v6, 0.0 }
0x1a14   : > { %3615 = vadd.xlane.f32.xlu0 %v3614_v7 }
0x1a87   : > { %v3616_v11 = vpop.xlane.xlu0 %3615 }
0x1a88   : > { %v3617_v12 = vmul.f32 %v3616_v11, %v5598_v56 }
0x1a8a   : > { %v3618_v13 = vadd.f32 1e-05, %v3617_v12 }
0x1a8c   : > { %5048 = vrsqrt.f32 %v3618_v13  ;;  %vm3625_vm7 = vweird.f32 %v3618_v13 }
0x1a92   : > { %v5049_v14 = vpop.eup %5048 }
0x1a93   : > { %v3620_v46 = vmul.f32 %v5049_v14, %v3618_v13  ;;  %vm3626_vm5 = vweird.f32 %v5049_v14 }
0x1a94   : > { %vm3627_vm0 = vmor %vm3625_vm7, %vm3626_vm5 }
0x1a95   : > { %v3621_v15 = vmul.f32 %v5049_v14, %v3620_v46 }
0x1a97   : > { %v3622_v17 = vmul.f32 0.5, %v3621_v15 }
0x1a99   : > { %v3623_v18 = vsub.f32 1.5, %v3622_v17 }
0x1a9b   : > { %v3624_v19 = vmul.f32 %v5049_v14, %v3623_v18  ;;  %v4988_v18 = vld [vmem:[%s5935_s23] ss:$0 sm:$0xff]  ;;  %s4743_s23 = sshll.u32 %s5386_s0, 3 }
0x1a9d   : > { %v3628_v21 = vsel %vm3627_vm0, %v5049_v14, %v3624_v19 }
0x1a9e   : > { %v3629_v24 = vmul.f32 %v3628_v21, %v3612_v5  ;;  %v3874_v5 = vsel %vm3864_vm2, %v5792_v4, 0.0 }
0x1a9f   : > { %v3875_v7 = vrot.slane %v3874_v5, 4 }
0x1aa0   : > { %v3633_v23 = vmul.f32 %v4984_v20, %v3629_v24  ;;  %v4989_v20 = vld [vmem:[%s5936_s3] ss:$0 sm:$0xff]  ;;  %s3899_s3 = scalar_lea.hbm %s5353_s13, %s4743_s23 }
0x1aa1   : > { %v3876_v40 = vadd.f32 %v3875_v7, %v3874_v5 }
0x1aa2   : > { %v3637_v25 = vadd.f32 %v4985_v22, %v3633_v23 }
0x1aa3   : > { %v3877_v10 = vrot.slane %v3876_v40, 2 }
0x1aa4   : > { %v3645_v26 = vpack.c.bf16 %v3637_v25, %v3637_v25 }
0x1aa5   : > { %v3878_v57 = vadd.f32 %v3877_v10, %v3876_v40 }
0x1aa6   : > { %4689 = vmatmul.msk.bf16.vlgmr.msrb.gmra.mxu2 %vm2495_vm1, %v3645_v26 }
0x1aa7   : > { %v3879_v12 = vrot.slane %v3878_v57, 1 }
0x1b29   : > { %v3681_v33 = vpop.f32.mrf.mxu2 }
0x1b2a   : > { %v3682_v34 = vadd.f32 %v4986_v32, %v3681_v33 }
0x1b2c   : > { %v3686_v35 = vmul.f32 0.044715, %v3682_v34  ;;  %v3685_v41 = vmul.f32 0.5, %v3682_v34 }
0x1b2e   : > { %v3687_v36 = vmul.f32 %v3686_v35, %v3682_v34 }
0x1b30   : > { %v3688_v37 = vmul.f32 %v3687_v36, %v3682_v34 }
0x1b31   : > { %v3683_v38 = vpop.f32.mrf.mxu2 }
0x1b32   : > { %v3689_v16 = vadd.f32 %v3688_v37, %v3682_v34 }
0x1b34   : > { %v3690_v39 = vmul.f32 0.7978846, %v3689_v16 }
0x1b36   : > { %5050 = vtanh.f32 %v3690_v39 }
0x1b3c   : > { %v5051_v8 = vpop.eup %5050 }
0x1b3d   : > { %v3692_v42 = vadd.f32 1.0, %v5051_v8 }
0x1b3f   : > { %v3693_v43 = vmul.f32 %v3692_v42, %v3685_v41 }
0x1b41   : > { %v3707_v44 = vpack.c.bf16 %v3693_v43, %v3693_v43 }
0x1b43   : > { %4726 = vmatmul.msk.bf16.vlgmr.msrb.gmra.mxu0 %vm3106_vm12, %v3707_v44 }
0x1bc0   : > { %v3756_v47 = vpop.f32.mrf.mxu0 }
0x1bc1   : > { %v3760_v48 = vadd.f32 %v3756_v47, %v5759_v0 }
0x1bc3   : > { %v3766_v50 = vadd.f32 %v4987_v45, %v3760_v48 }
0x1bc5   : > { %v3769_v51 = vsel %vm2495_vm1, %v3766_v50, 0.0 }
0x1bc6   : > { %3770 = vadd.xlane.f32.xlu1 %v3769_v51 }
0x1bc8   : > { %v3758_v52 = vpop.f32.mrf.mxu0 }
0x1bdf   : > { %3853 = vperm.xlu1 %4931, %v3841_v63  }
0x1c39   : > { %v3771_v53 = vpop.xlane.xlu1 %3770 }
0x1c3a   : > { %v3772_v54 = vmul.f32 %v3771_v53, %v5598_v56 }
0x1c3c   : > { %v3773_v55 = vsub.f32 %v3766_v50, %v3772_v54 }
0x1c3e   : > { %v3774_v58 = vmul.f32 %v3773_v55, %v3773_v55 }
0x1c40   : > { %v3775_v59 = vsel %vm2495_vm1, %v3774_v58, 0.0 }
0x1c41   : > { %3776 = vadd.xlane.f32.xlu2 %v3775_v59 }
0x1c51   : > { %v3854_v26 = vpop.permute.xlu1 %3853 }
0x1c52   : > { %vm3855_vm10 = vcmp.eq.s32.totalorder %v5644_v9, %v3854_v26 }
0x1cb4   : > { %v3777_v0 = vpop.xlane.xlu2 %3776 }
0x1cb5   : > { %v3778_v2 = vmul.f32 %v3777_v0, %v5598_v56  ;;  %v3880_v56 = vadd.f32 %v3879_v12, %v3878_v57 }
0x1cb7   : > { %v3779_v6 = vadd.f32 1e-05, %v3778_v2  ;;  %3881 = vst.msk [vmem:[%s1228_s1] sm:$0x1] %vm3872_vm4, %v3880_v56  ;;  %s1194_s1 = scalar_lea.vmem [#allocation2], %s4091_s6  ;;  %s3903_s6 = sshll.u32 %s3899_s3, 4  ;;  %s3904_s6 = int_to_ptr.hbm [resolvable:$true] %s3903_s6 }
0x1cb8   : > { %s3901_s8 = sshll.u32 %s1194_s1, 4  ;;  %s5072_s12 = sshra.s32 %s3904_s6, 4  ;;  %s3902_s8 = int_to_ptr.vmem [resolvable:$true] %s3901_s8  ;;  %s5073_s12 = int_to_ptr.hbm [resolvable:$true] %s5072_s12 }
0x1cb9   : > { %5052 = vrsqrt.f32 %v3779_v6  ;;  %vm3786_vm8 = vweird.f32 %v3779_v6  ;;  %s5074_s14 = scalar_lea.hbm %s5073_s12, 8  ;;  %p5079_p0 = scmp.lt.s32.totalorder %s5073_s12, %s5353_s13 }
0x1cba   : > { %p5075_p11 = scmp.ne.s32.totalorder %s5073_s12, %s5074_s14  ;;  %p5080_p1 = scmp.lt.s32.totalorder %s5078_s17, %s5074_s14 }
0x1cbc   : > { %p5076_p12 = pnand %p5075_p11, %p5403_p5  ;;  %p5081_p2 = por %p5080_p1, %p5079_p0 }
0x1cbe   : > { %p5077_p13 = pneg %p5076_p12 }
0x1cbf   : > { %v5053_v11 = vpop.eup %5052 }
0x1cc0   : > { %v3781_v13 = vmul.f32 %v5053_v11, %v3779_v6  ;;  %vm3787_vm6 = vweird.f32 %v5053_v11  ;;  %p5082_p3 = pnand %p5081_p2, %p5077_p13 }
0x1cc1   : > { %vm3788_vm9 = vmor %vm3786_vm8, %vm3787_vm6 }
0x1cc2   : > { %v3782_v14 = vmul.f32 %v5053_v11, %v3781_v13 }
0x1cc4   : > { %v3783_v46 = vmul.f32 0.5, %v3782_v14 }
0x1cc6   : > { %v3784_v15 = vsub.f32 1.5, %v3783_v46 }
0x1cc8   : > { %v3785_v17 = vmul.f32 %v5053_v11, %v3784_v15 }
0x1cca   : > { %v3789_v19 = vsel %vm3788_vm9, %v5053_v11, %v3785_v17 }
0x1ccb   : > { %v3790_v21 = vmul.f32 %v3789_v19, %v3773_v55 }
0x1ccd   : > { %v3794_v22 = vmul.f32 %v4988_v18, %v3790_v21 }
0x1ccf   : > { %v3798_v24 = vadd.f32 %v4989_v20, %v3794_v22 }
0x1cd1   : > { %v3805_v23 = vpack.c.bf16 %v3798_v24, %v3798_v24 }
0x1cd3   : > { %4740 = vmatmul.msk.bf16.vlgmr.msra.gmra.mxu1 %vm2495_vm1, %v3805_v23 }
0x1d50   : > { %v3836_v25 = vpop.f32.mrf.mxu1 }
0x1d51   : > { %3842 = vmax.xlane.f32.xlu0 %v3836_v25  ;;  %3840 = vst [vmem:[%s1194_s1] sm:$0xff] %v3836_v25  ;;  %v3856_v27 = vsel %vm3855_vm10, %v3836_v25, 0.0 }
0x1d58   : > { %v3838_v28 = vpop.f32.mrf.mxu1 }
0x1d59   : > { %3857 = vadd.xlane.f32.xlu0 %v3856_v27 }
0x1dc4   : > { %v3843_v49 = vpop.xlane.xlu0 %3842 }
0x1dc5   : > { %v3844_v29 = vsub.f32 %v3836_v25, %v3843_v49 }
0x1dc7   : > { %v3845_v30 = vmul.f32 1.442695, %v3844_v29 }
0x1dc9   : > { %5054 = vpow2.f32 %v3845_v30 }
0x1dcf   : > { %v5055_v31 = vpop.eup %5054 }
0x1dd0   : > { %3847 = vadd.xlane.f32.xlu2 %v5055_v31 }
0x1dd1   : > { %5085 = shalt.err (!%p5082_p3)
}
0x1dd2   : > { %4849 = dma.vmem_to_hbm [thread:$0]  (%p5403_p5), %s3902_s8, 128, %s3904_s6, %s3883_s9   ;;  %v3858_v35 = vpop.xlane.xlu0 %3857 }
0x1dd3   : > { %s1225_s17 = scalar_lea.vmem %s5358_s4, %s5415_s11 }
0x1e43   : > { %v3848_v9 = vpop.xlane.xlu2 %3847 }
0x1e44   : > { %5056 = vlog2.f32 %v3848_v9 }
0x1e4a   : > { %v5057_v32 = vpop.eup %5056 }
0x1e4b   : > { %v3850_v33 = vmul.f32 0.6931472, %v5057_v32 }
0x1e4d   : > { %v3851_v34 = vadd.f32 %v3850_v33, %v3843_v49 }
0x1e4f   : > { %v3859_v36 = vsub.f32 %v3851_v34, %v3858_v35 }
0x1e51   : > { %v3863_v37 = vmul.f32 %v5792_v4, %v3859_v36 }
0x1e53   : > { %v3865_v38 = vsel %vm3864_vm2, %v3863_v37, 0.0 }
0x1e54   : > { %v3866_v16 = vrot.slane %v3865_v38, 4 }
0x1e56   : > { %v3867_v39 = vadd.f32 %v3866_v16, %v3865_v38 }
0x1e58   : > { %v3868_v8 = vrot.slane %v3867_v39, 2 }
0x1e5a   : > { %v3869_v41 = vadd.f32 %v3868_v8, %v3867_v39 }
0x1e5c   : > { %v3870_v42 = vrot.slane %v3869_v41, 1 }
0x1e5e   : > { %v3871_v43 = vadd.f32 %v3870_v42, %v3869_v41 }
0x1e60   : > { %3873 = vst.msk [vmem:[%s1225_s17] sm:$0x1] %vm3872_vm4, %v3871_v43 }
0x1e61 PF: > { %p4855_p4 = scmp.ge.s32.totalorder %s5120_s22, 2  ;;  %s3921_s8 = sand.u32 1, %s5108_s15  }
0x1e62   : > { %s3922_s14 = scalar_lea.sflag [#allocation3], %s3921_s8 }
0x1e63   : > { %p4852_p5 = pnand %p4855_p4, %p5407_p6 }
0x1e65   : > { %p4853_p7 = pneg %p4852_p5 }
0x1e67   : > { %5103 = dma.done.wait (%p4853_p7), %s3922_s14, 128  }
0x1e68   : > { %5105 = vsyncadd (%p4853_p7), %s3922_s14, 4294967168  ;;  %p88_p8 = scmp.ge.s32.totalorder %s5390_s26, 4   ;;  %s5937_s15 = smov %s5112_s16 }
0x1e69   : > { %s5938_s16 = smov %s5116_s18  ;;  %s5939_s18 = smov %s5401_s2 }
0x1e6a   : > { %s5940_s22 = smov %s5390_s26  ;;  %90 = sbr.rel (!%p88_p8) target bundleno = 80 (0x50), region = 313 }
0x1e6f   :  { %3940 = vsyncpa [#allocation3], 1 }
0x1e70   :  { %3942 = vsyncpa [#allocation3 + $0x1], 1 }

</bundles_post_ra>
